<compile_context>
chip_gen: v6e
topology: v6e:2x2x1
jax: 0.10.0
libtpu: 0.0.40
codegen_flags: <defaults>
</compile_context>

<pallas_src>
import functools

import jax
import jax.numpy as jnp
from jax import lax
from jax.experimental import pallas as pl
from jax.experimental.pallas import tpu as pltpu

# ----------------------------- config ---------------------------------------
VOCAB = 64          # vocabulary size
VOCAB_PAD = 128     # vocab padded to a full 128-lane vreg (padded logits = -1e9)
EMB = 32            # embedding dim
HID = 32            # GRU hidden dim
L_IN = 8            # input sequence length
MAX_SEQ_LEN = 8     # max_seq_length argument
EOS_IDX = 2
SOS_IDX = 1         # torch.ones((1,1)) -> start token = 1

_VMEM = pl.BlockSpec(memory_space=pltpu.MemorySpace.VMEM)
_SMEM = pl.BlockSpec(memory_space=pltpu.MemorySpace.SMEM)


# ----------------------------- fused kernel ----------------------------------
def _sampler_kernel(max_seq_length,
                    qlen_ref, x_emb_ref,
                    enc_wih_ref, enc_whh_ref, enc_bih_ref, enc_bhh_ref,
                    dec_wx_ref, dec_wh_ref, dec_b_ref,
                    w_cat_h_ref, w_cat_c_ref, b_cat_ref,
                    w_out_ref, b_out_ref,
                    gumbel_ref,
                    tok_ref, enc_state_ref):
    """Fused EncoderGRU + LuongAttnDecoderGRU + Gumbel-max multinomial sampling."""
    f32 = jnp.float32
    qlen = qlen_ref[0]
    l_in = x_emb_ref.shape[0]

    # ----- encoder: single-layer GRU (PyTorch gate semantics) ----------------
    # Hoisted input-gate matmul: one (L_in, E) x (E, 3H) dot before the loop;
    # only the recurrent (1, H) x (H, 3H) dot stays on the serial path.
    gi_all = (jnp.dot(x_emb_ref[...], enc_wih_ref[...],
                      preferred_element_type=f32) + enc_bih_ref[...])    # (L_in, 3H)
    whh = enc_whh_ref[...]
    bhh = enc_bhh_ref[...]

    h = jnp.zeros((1, HID), f32)
    for t in range(l_in):                       # static trip count -> fully unrolled
        gh = jnp.dot(h, whh, preferred_element_type=f32) + bhh           # (1, 3H)
        gi = gi_all[t:t + 1, :]
        r = jax.nn.sigmoid(gi[:, 0:HID] + gh[:, 0:HID])
        z = jax.nn.sigmoid(gi[:, HID:2 * HID] + gh[:, HID:2 * HID])
        n = jnp.tanh(gi[:, 2 * HID:3 * HID] + r * gh[:, 2 * HID:3 * HID])
        h_new = (1.0 - z) * n + z * h
        enc_state_ref[pl.ds(t, 1), :] = h_new
        # positions >= query_length are padding: hidden state stops updating
        h = jnp.where(t < qlen, h_new, h)

    # zero padded rows (mimics pad_packed_sequence); keep value VMEM-resident
    pos_row = lax.broadcasted_iota(jnp.int32, (l_in, 1), 0)
    enc = jnp.where(pos_row < qlen, enc_state_ref[...], 0.0)             # (L_in, H)
    enc_state_ref[...] = enc

    # ----- decoder: per-step GRU + Luong dot attention + sampling ------------
    dec_wx = dec_wx_ref[...]        # (VOCAB, 4H) == embedding @ W_ih (4-gate layout)
    dec_wh = dec_wh_ref[...]        # (H, 4H)
    dec_b = dec_b_ref[...]          # (1, 4H)
    w_cat_h = w_cat_h_ref[...]      # (H, H)
    w_cat_c = w_cat_c_ref[...]      # (H, H)
    b_cat = b_cat_ref[...]          # (1, H)
    w_out = w_out_ref[...]          # (H, VOCAB_PAD)
    b_out = b_out_ref[...]          # (1, VOCAB_PAD); padded columns = -1e9

    kmask = lax.broadcasted_iota(jnp.int32, (1, l_in), 1) < qlen         # (1, L_in)
    vocab_iota = lax.broadcasted_iota(jnp.int32, (1, VOCAB), 1)
    pad_iota = lax.broadcasted_iota(jnp.int32, (1, VOCAB_PAD), 1)

    tok = jnp.full((1, 1), SOS_IDX, jnp.int32)                           # SOS token
    for step in range(max_seq_length):          # static trip count -> fully unrolled
        # Embedding lookup folded into the input matmul; the input and recurrent
        # dots are independent, so they pipeline through the MXU back-to-back.
        onehot = (vocab_iota == tok).astype(f32)                         # (1, VOCAB)
        g = (jnp.dot(onehot, dec_wx, preferred_element_type=f32)
             + jnp.dot(h, dec_wh, preferred_element_type=f32)
             + dec_b)                                                    # (1, 4H)
        r = jax.nn.sigmoid(g[:, 0:HID])
        z = jax.nn.sigmoid(g[:, HID:2 * HID])
        n = jnp.tanh(g[:, 2 * HID:3 * HID] + r * g[:, 3 * HID:4 * HID])
        h = (1.0 - z) * n + z * h                                        # (1, H)

        # Luong dot attention over the (masked) encoder state.
        scores = lax.dot_general(h, enc, (((1,), (1,)), ((), ())),
                                 preferred_element_type=f32)             # (1, L_in)
        scores = jnp.where(kmask, scores, -1e30)
        scores = scores - jnp.max(scores, axis=-1, keepdims=True)
        e = jnp.exp(scores)
        attn = e / jnp.sum(e, axis=-1, keepdims=True)
        context = jnp.dot(attn, enc, preferred_element_type=f32)         # (1, H)

        cat_out = jnp.tanh(jnp.dot(h, w_cat_h, preferred_element_type=f32)
                           + jnp.dot(context, w_cat_c, preferred_element_type=f32)
                           + b_cat)                                      # (1, H)
        logits = (jnp.dot(cat_out, w_out, preferred_element_type=f32)
                  + b_out)                                               # (1, VOCAB_PAD)

        # Multinomial sampling == Gumbel-max over logits (padded lanes ~ -1e9).
        vals = logits + gumbel_ref[pl.ds(step, 1), :]
        m = jnp.max(vals, axis=-1, keepdims=True)
        tok = jnp.min(jnp.where(vals >= m, pad_iota, VOCAB_PAD),
                      axis=-1, keepdims=True).astype(jnp.int32)          # (1, 1)
        tok_ref[pl.ds(step, 1), :] = tok


@functools.lru_cache(maxsize=None)
def _make_sampler(max_seq_length, l_in):
    kernel = functools.partial(_sampler_kernel, max_seq_length)
    return pl.pallas_call(
        kernel,
        out_shape=(jax.ShapeDtypeStruct((max_seq_length, 1), jnp.int32),
                   jax.ShapeDtypeStruct((l_in, HID), jnp.float32)),
        in_specs=[_SMEM] + [_VMEM] * 14,
        out_specs=(_VMEM, _VMEM),
    )


# ----------------------------- parameters ------------------------------------
def init_params(key):
    ks = jax.random.split(key, 12)
    s = 0.1
    return {
        "embedding": s * jax.random.normal(ks[0], (VOCAB, EMB), jnp.float32),
        # encoder GRU
        "enc_wih": s * jax.random.normal(ks[1], (EMB, 3 * HID), jnp.float32),
        "enc_whh": s * jax.random.normal(ks[2], (HID, 3 * HID), jnp.float32),
        "enc_bih": s * jax.random.normal(ks[3], (1, 3 * HID), jnp.float32),
        "enc_bhh": s * jax.random.normal(ks[4], (1, 3 * HID), jnp.float32),
        # decoder GRU
        "dec_wih": s * jax.random.normal(ks[5], (EMB, 3 * HID), jnp.float32),
        "dec_whh": s * jax.random.normal(ks[6], (HID, 3 * HID), jnp.float32),
        "dec_bih": s * jax.random.normal(ks[7], (1, 3 * HID), jnp.float32),
        "dec_bhh": s * jax.random.normal(ks[8], (1, 3 * HID), jnp.float32),
        # Luong concat layer, split as [W_h | W_c]
        "w_cat_h": s * jax.random.normal(ks[9], (HID, HID), jnp.float32),
        "w_cat_c": s * jax.random.normal(ks[10], (HID, HID), jnp.float32),
        "b_cat": jnp.zeros((1, HID), jnp.float32),
        # output projection
        "w_out": s * jax.random.normal(ks[11], (HID, VOCAB), jnp.float32),
        "b_out": jnp.zeros((1, VOCAB), jnp.float32),
    }


def pack_params(p):
    """One-time repacking of raw parameters into the fused-kernel layout."""
    H = HID
    # Decoder GRU weights in a 4-gate column layout [r | z | n_in | n_hid] so the
    # pre-activation is one lane-dense (1, 4H=128) row; the n-gate keeps its two
    # halves separate (PyTorch semantics: n = tanh(gi_n + r * gh_n)).
    wih, whh = p["dec_wih"], p["dec_whh"]
    wih4 = jnp.concatenate([wih[:, 0:H], wih[:, H:2 * H], wih[:, 2 * H:3 * H],
                            jnp.zeros((EMB, H), jnp.float32)], axis=1)       # (EMB, 4H)
    whh4 = jnp.concatenate([whh[:, 0:H], whh[:, H:2 * H],
                            jnp.zeros((HID, H), jnp.float32),
                            whh[:, 2 * H:3 * H]], axis=1)                    # (HID, 4H)
    bih, bhh = p["dec_bih"], p["dec_bhh"]
    dec_b = jnp.concatenate([bih[:, 0:H] + bhh[:, 0:H],
                             bih[:, H:2 * H] + bhh[:, H:2 * H],
                             bih[:, 2 * H:3 * H], bhh[:, 2 * H:3 * H]], axis=1)
    # Fold the embedding lookup into the decoder input matmul:
    # one_hot(tok) @ (embedding @ W_ih) == embedding[tok] @ W_ih.
    dec_wx = jnp.dot(p["embedding"], wih4)                                   # (VOCAB, 4H)

    # Output projection padded to a full 128-lane vreg; padded logits get a
    # -1e9 bias so Gumbel-max can never select them.
    w_out = jnp.concatenate(
        [p["w_out"], jnp.zeros((HID, VOCAB_PAD - VOCAB), jnp.float32)], axis=1)
    b_out = jnp.concatenate(
        [p["b_out"], jnp.full((1, VOCAB_PAD - VOCAB), -1e9, jnp.float32)], axis=1)

    return {
        "embedding": p["embedding"],
        "enc_wih": p["enc_wih"], "enc_whh": p["enc_whh"],
        "enc_bih": p["enc_bih"], "enc_bhh": p["enc_bhh"],
        "dec_wx": dec_wx, "dec_wh": whh4, "dec_b": dec_b,
        "w_cat_h": p["w_cat_h"], "w_cat_c": p["w_cat_c"], "b_cat": p["b_cat"],
        "w_out": w_out, "b_out": b_out,
    }


# ----------------------------- forward ----------------------------------------
@functools.partial(jax.jit, static_argnames=("max_seq_length", "eos_idx"))
def _device_forward(packed, input_seq, query_length, key, *, max_seq_length, eos_idx):
    """Everything up to the data-dependent EOS cut runs as one XLA executable."""
    l_in = input_seq.shape[0]
    qlen = query_length.astype(jnp.int32).reshape((1,))
    x_emb = jnp.take(packed["embedding"], input_seq.astype(jnp.int32), axis=0)
    # Pre-drawn Gumbel noise: argmax(logits + gumbel) == multinomial(softmax(logits)).
    gumbel = jax.random.gumbel(key, (max_seq_length, VOCAB_PAD), dtype=jnp.float32)

    sampler = _make_sampler(max_seq_length, l_in)
    toks, _enc_state = sampler(
        qlen, x_emb,
        packed["enc_wih"], packed["enc_whh"], packed["enc_bih"], packed["enc_bhh"],
        packed["dec_wx"], packed["dec_wh"], packed["dec_b"],
        packed["w_cat_h"], packed["w_cat_c"], packed["b_cat"],
        packed["w_out"], packed["b_out"],
        gumbel)

    tokens = toks[:, 0]                                                  # (max_seq_length,)
    eos_hit = tokens == eos_idx
    length = jnp.where(jnp.any(eos_hit),
                       jnp.argmax(eos_hit).astype(jnp.int32) + 1,
                       jnp.int32(max_seq_length))
    return tokens, length


def random_search_sampler(packed_params, input_seq, query_length, max_seq_length,
                          *, key, eos_idx=EOS_IDX):
    """Mirrors RandomSearchSampler.forward.

    input_seq: (L_in,) int32 token ids (torch shape (L_in, 1) with batch=1).
    query_length: (1,) int32.
    Returns: (L_out,) int32 sampled token ids, cut at the first EOS (inclusive).
    """
    tokens, length = _device_forward(packed_params, input_seq, query_length, key,
                                     max_seq_length=max_seq_length, eos_idx=eos_idx)
    tokens, length = jax.block_until_ready((tokens, length))
    # TODO(synk): torch returns int64 token ids; JAX default integer dtype is int32.
    return tokens[: int(length)]


# ----------------------------- main -------------------------------------------
if __name__ == "__main__":
    key = jax.random.PRNGKey(0)
    k_param, k_seq, k_sample = jax.random.split(key, 3)

    params = init_params(k_param)
    packed = pack_params(params)

    input_seq = jax.random.randint(k_seq, (L_IN,), 0, VOCAB, dtype=jnp.int32)
    query_length = jnp.array([6], dtype=jnp.int32)

    out = random_search_sampler(packed, input_seq, query_length, MAX_SEQ_LEN,
                                key=k_sample)
    out = jax.block_until_ready(out)
    assert out.ndim == 1 and 1 <= out.shape[0] <= MAX_SEQ_LEN
    print("KERNEL_OK")
</pallas_src>

<mosaic_0001>
module attributes {stable_mosaic.version = 11 : i64} {
  func.func @_sampler_kernel(%arg0: memref<1xi32, #tpu.memory_space<smem>>, %arg1: memref<8x32xf32, #tpu.memory_space<vmem>>, %arg2: memref<32x96xf32, #tpu.memory_space<vmem>>, %arg3: memref<32x96xf32, #tpu.memory_space<vmem>>, %arg4: memref<1x96xf32, #tpu.memory_space<vmem>>, %arg5: memref<1x96xf32, #tpu.memory_space<vmem>>, %arg6: memref<64x128xf32, #tpu.memory_space<vmem>>, %arg7: memref<32x128xf32, #tpu.memory_space<vmem>>, %arg8: memref<1x128xf32, #tpu.memory_space<vmem>>, %arg9: memref<32x32xf32, #tpu.memory_space<vmem>>, %arg10: memref<32x32xf32, #tpu.memory_space<vmem>>, %arg11: memref<1x32xf32, #tpu.memory_space<vmem>>, %arg12: memref<32x128xf32, #tpu.memory_space<vmem>>, %arg13: memref<1x128xf32, #tpu.memory_space<vmem>>, %arg14: memref<8x128xf32, #tpu.memory_space<vmem>>, %arg15: memref<8x1xi32, #tpu.memory_space<vmem>>, %arg16: memref<8x32xf32, #tpu.memory_space<vmem>>) attributes {dimension_semantics = [], scalar_prefetch = 0 : i64, scratch_operands = 0 : i64, tpu.core_type = #tpu.core_type<tc>} {
    %c0 = arith.constant 0 : index
    %0 = memref.load %arg0[%c0] : memref<1xi32, #tpu.memory_space<smem>>
    %c0_0 = arith.constant 0 : index
    %c0_1 = arith.constant 0 : index
    %1 = vector.load %arg1[%c0_0, %c0_1] : memref<8x32xf32, #tpu.memory_space<vmem>>, vector<8x32xf32>
    %c0_2 = arith.constant 0 : index
    %c0_3 = arith.constant 0 : index
    %2 = vector.load %arg2[%c0_2, %c0_3] : memref<32x96xf32, #tpu.memory_space<vmem>>, vector<32x96xf32>
    %cst = arith.constant dense<0.000000e+00> : vector<8x96xf32>
    %3 = tpu.matmul %1, %2, %cst {dimension_numbers = #tpu.dot_dimension_numbers<[1], [0], [0], [1], [0, 0, 1, 1], [], []>} : vector<8x32xf32>, vector<32x96xf32>, vector<8x96xf32> -> vector<8x96xf32>
    %c0_4 = arith.constant 0 : index
    %c0_5 = arith.constant 0 : index
    %4 = vector.load %arg4[%c0_4, %c0_5] : memref<1x96xf32, #tpu.memory_space<vmem>>, vector<1x96xf32>
    %5 = vector.broadcast %4 : vector<1x96xf32> to vector<8x96xf32>
    %6 = arith.addf %3, %5 : vector<8x96xf32>
    %c0_6 = arith.constant 0 : index
    %c0_7 = arith.constant 0 : index
    %7 = vector.load %arg3[%c0_6, %c0_7] : memref<32x96xf32, #tpu.memory_space<vmem>>, vector<32x96xf32>
    %c0_8 = arith.constant 0 : index
    %c0_9 = arith.constant 0 : index
    %8 = vector.load %arg5[%c0_8, %c0_9] : memref<1x96xf32, #tpu.memory_space<vmem>>, vector<1x96xf32>
    %cst_10 = arith.constant 0.000000e+00 : f32
    %9 = vector.broadcast %cst_10 : f32 to vector<1x32xf32>
    %cst_11 = arith.constant dense<0.000000e+00> : vector<1x96xf32>
    %10 = tpu.matmul %9, %7, %cst_11 {dimension_numbers = #tpu.dot_dimension_numbers<[1], [0], [0], [1], [0, 0, 1, 1], [], []>} : vector<1x32xf32>, vector<32x96xf32>, vector<1x96xf32> -> vector<1x96xf32>
    %11 = arith.addf %10, %8 : vector<1x96xf32>
    %12 = vector.extract_strided_slice %6 {offsets = [0, 0], sizes = [1, 96], strides = [1, 1]} : vector<8x96xf32> to vector<1x96xf32>
    %13 = vector.extract_strided_slice %12 {offsets = [0, 0], sizes = [1, 32], strides = [1, 1]} : vector<1x96xf32> to vector<1x32xf32>
    %14 = vector.extract_strided_slice %11 {offsets = [0, 0], sizes = [1, 32], strides = [1, 1]} : vector<1x96xf32> to vector<1x32xf32>
    %15 = arith.addf %13, %14 : vector<1x32xf32>
    %16 = arith.negf %15 : vector<1x32xf32>
    %17 = math.exp %16 : vector<1x32xf32>
    %cst_12 = arith.constant 1.000000e+00 : f32
    %18 = vector.broadcast %cst_12 : f32 to vector<1x32xf32>
    %19 = arith.addf %18, %17 : vector<1x32xf32>
    %20 = arith.divf %18, %19 : vector<1x32xf32>
    %21 = vector.extract_strided_slice %12 {offsets = [0, 32], sizes = [1, 32], strides = [1, 1]} : vector<1x96xf32> to vector<1x32xf32>
    %22 = vector.extract_strided_slice %11 {offsets = [0, 32], sizes = [1, 32], strides = [1, 1]} : vector<1x96xf32> to vector<1x32xf32>
    %23 = arith.addf %21, %22 : vector<1x32xf32>
    %24 = arith.negf %23 : vector<1x32xf32>
    %25 = math.exp %24 : vector<1x32xf32>
    %cst_13 = arith.constant 1.000000e+00 : f32
    %26 = vector.broadcast %cst_13 : f32 to vector<1x32xf32>
    %27 = arith.addf %26, %25 : vector<1x32xf32>
    %28 = arith.divf %26, %27 : vector<1x32xf32>
    %29 = vector.extract_strided_slice %12 {offsets = [0, 64], sizes = [1, 32], strides = [1, 1]} : vector<1x96xf32> to vector<1x32xf32>
    %30 = vector.extract_strided_slice %11 {offsets = [0, 64], sizes = [1, 32], strides = [1, 1]} : vector<1x96xf32> to vector<1x32xf32>
    %31 = arith.mulf %20, %30 : vector<1x32xf32>
    %32 = arith.addf %29, %31 : vector<1x32xf32>
    %33 = math.tanh %32 : vector<1x32xf32>
    %cst_14 = arith.constant 1.000000e+00 : f32
    %34 = vector.broadcast %cst_14 : f32 to vector<1x32xf32>
    %35 = arith.subf %34, %28 : vector<1x32xf32>
    %36 = arith.mulf %35, %33 : vector<1x32xf32>
    %37 = arith.mulf %28, %9 : vector<1x32xf32>
    %38 = arith.addf %36, %37 : vector<1x32xf32>
    %c0_15 = arith.constant 0 : index
    %c0_16 = arith.constant 0 : index
    %39 = vector.load %arg16[%c0_15, %c0_16] : memref<8x32xf32, #tpu.memory_space<vmem>>, vector<1x32xf32>
    tpu.vector_store %arg16[%c0_15, %c0_16], %38 {strides = array<i32>} : memref<8x32xf32, #tpu.memory_space<vmem>>, vector<1x32xf32>,
    %c0_i32 = arith.constant 0 : i32
    %40 = arith.cmpi sgt, %0, %c0_i32 : i32
    %41 = arith.select %40, %38, %9 : vector<1x32xf32>
    %cst_17 = arith.constant dense<0.000000e+00> : vector<1x96xf32>
    %42 = tpu.matmul %41, %7, %cst_17 {dimension_numbers = #tpu.dot_dimension_numbers<[1], [0], [0], [1], [0, 0, 1, 1], [], []>} : vector<1x32xf32>, vector<32x96xf32>, vector<1x96xf32> -> vector<1x96xf32>
    %43 = arith.addf %42, %8 : vector<1x96xf32>
    %44 = vector.extract_strided_slice %6 {offsets = [1, 0], sizes = [1, 96], strides = [1, 1]} : vector<8x96xf32> to vector<1x96xf32>
    %45 = vector.extract_strided_slice %44 {offsets = [0, 0], sizes = [1, 32], strides = [1, 1]} : vector<1x96xf32> to vector<1x32xf32>
    %46 = vector.extract_strided_slice %43 {offsets = [0, 0], sizes = [1, 32], strides = [1, 1]} : vector<1x96xf32> to vector<1x32xf32>
    %47 = arith.addf %45, %46 : vector<1x32xf32>
    %48 = arith.negf %47 : vector<1x32xf32>
    %49 = math.exp %48 : vector<1x32xf32>
    %cst_18 = arith.constant 1.000000e+00 : f32
    %50 = vector.broadcast %cst_18 : f32 to vector<1x32xf32>
    %51 = arith.addf %50, %49 : vector<1x32xf32>
    %52 = arith.divf %50, %51 : vector<1x32xf32>
    %53 = vector.extract_strided_slice %44 {offsets = [0, 32], sizes = [1, 32], strides = [1, 1]} : vector<1x96xf32> to vector<1x32xf32>
    %54 = vector.extract_strided_slice %43 {offsets = [0, 32], sizes = [1, 32], strides = [1, 1]} : vector<1x96xf32> to vector<1x32xf32>
    %55 = arith.addf %53, %54 : vector<1x32xf32>
    %56 = arith.negf %55 : vector<1x32xf32>
    %57 = math.exp %56 : vector<1x32xf32>
    %cst_19 = arith.constant 1.000000e+00 : f32
    %58 = vector.broadcast %cst_19 : f32 to vector<1x32xf32>
    %59 = arith.addf %58, %57 : vector<1x32xf32>
    %60 = arith.divf %58, %59 : vector<1x32xf32>
    %61 = vector.extract_strided_slice %44 {offsets = [0, 64], sizes = [1, 32], strides = [1, 1]} : vector<1x96xf32> to vector<1x32xf32>
    %62 = vector.extract_strided_slice %43 {offsets = [0, 64], sizes = [1, 32], strides = [1, 1]} : vector<1x96xf32> to vector<1x32xf32>
    %63 = arith.mulf %52, %62 : vector<1x32xf32>
    %64 = arith.addf %61, %63 : vector<1x32xf32>
    %65 = math.tanh %64 : vector<1x32xf32>
    %cst_20 = arith.constant 1.000000e+00 : f32
    %66 = vector.broadcast %cst_20 : f32 to vector<1x32xf32>
    %67 = arith.subf %66, %60 : vector<1x32xf32>
    %68 = arith.mulf %67, %65 : vector<1x32xf32>
    %69 = arith.mulf %60, %41 : vector<1x32xf32>
    %70 = arith.addf %68, %69 : vector<1x32xf32>
    %c1 = arith.constant 1 : index
    %c0_21 = arith.constant 0 : index
    %71 = vector.load %arg16[%c1, %c0_21] : memref<8x32xf32, #tpu.memory_space<vmem>>, vector<1x32xf32>
    tpu.vector_store %arg16[%c1, %c0_21], %70 {strides = array<i32>} : memref<8x32xf32, #tpu.memory_space<vmem>>, vector<1x32xf32>,
    %c1_i32 = arith.constant 1 : i32
    %72 = arith.cmpi sgt, %0, %c1_i32 : i32
    %73 = arith.select %72, %70, %41 : vector<1x32xf32>
    %cst_22 = arith.constant dense<0.000000e+00> : vector<1x96xf32>
    %74 = tpu.matmul %73, %7, %cst_22 {dimension_numbers = #tpu.dot_dimension_numbers<[1], [0], [0], [1], [0, 0, 1, 1], [], []>} : vector<1x32xf32>, vector<32x96xf32>, vector<1x96xf32> -> vector<1x96xf32>
    %75 = arith.addf %74, %8 : vector<1x96xf32>
    %76 = vector.extract_strided_slice %6 {offsets = [2, 0], sizes = [1, 96], strides = [1, 1]} : vector<8x96xf32> to vector<1x96xf32>
    %77 = vector.extract_strided_slice %76 {offsets = [0, 0], sizes = [1, 32], strides = [1, 1]} : vector<1x96xf32> to vector<1x32xf32>
    %78 = vector.extract_strided_slice %75 {offsets = [0, 0], sizes = [1, 32], strides = [1, 1]} : vector<1x96xf32> to vector<1x32xf32>
    %79 = arith.addf %77, %78 : vector<1x32xf32>
    %80 = arith.negf %79 : vector<1x32xf32>
    %81 = math.exp %80 : vector<1x32xf32>
    %cst_23 = arith.constant 1.000000e+00 : f32
    %82 = vector.broadcast %cst_23 : f32 to vector<1x32xf32>
    %83 = arith.addf %82, %81 : vector<1x32xf32>
    %84 = arith.divf %82, %83 : vector<1x32xf32>
    %85 = vector.extract_strided_slice %76 {offsets = [0, 32], sizes = [1, 32], strides = [1, 1]} : vector<1x96xf32> to vector<1x32xf32>
    %86 = vector.extract_strided_slice %75 {offsets = [0, 32], sizes = [1, 32], strides = [1, 1]} : vector<1x96xf32> to vector<1x32xf32>
    %87 = arith.addf %85, %86 : vector<1x32xf32>
    %88 = arith.negf %87 : vector<1x32xf32>
    %89 = math.exp %88 : vector<1x32xf32>
    %cst_24 = arith.constant 1.000000e+00 : f32
    %90 = vector.broadcast %cst_24 : f32 to vector<1x32xf32>
    %91 = arith.addf %90, %89 : vector<1x32xf32>
    %92 = arith.divf %90, %91 : vector<1x32xf32>
    %93 = vector.extract_strided_slice %76 {offsets = [0, 64], sizes = [1, 32], strides = [1, 1]} : vector<1x96xf32> to vector<1x32xf32>
    %94 = vector.extract_strided_slice %75 {offsets = [0, 64], sizes = [1, 32], strides = [1, 1]} : vector<1x96xf32> to vector<1x32xf32>
    %95 = arith.mulf %84, %94 : vector<1x32xf32>
    %96 = arith.addf %93, %95 : vector<1x32xf32>
    %97 = math.tanh %96 : vector<1x32xf32>
    %cst_25 = arith.constant 1.000000e+00 : f32
    %98 = vector.broadcast %cst_25 : f32 to vector<1x32xf32>
    %99 = arith.subf %98, %92 : vector<1x32xf32>
    %100 = arith.mulf %99, %97 : vector<1x32xf32>
    %101 = arith.mulf %92, %73 : vector<1x32xf32>
    %102 = arith.addf %100, %101 : vector<1x32xf32>
    %c2 = arith.constant 2 : index
    %c0_26 = arith.constant 0 : index
    %103 = vector.load %arg16[%c2, %c0_26] : memref<8x32xf32, #tpu.memory_space<vmem>>, vector<1x32xf32>
    tpu.vector_store %arg16[%c2, %c0_26], %102 {strides = array<i32>} : memref<8x32xf32, #tpu.memory_space<vmem>>, vector<1x32xf32>,
    %c2_i32 = arith.constant 2 : i32
    %104 = arith.cmpi sgt, %0, %c2_i32 : i32
    %105 = arith.select %104, %102, %73 : vector<1x32xf32>
    %cst_27 = arith.constant dense<0.000000e+00> : vector<1x96xf32>
    %106 = tpu.matmul %105, %7, %cst_27 {dimension_numbers = #tpu.dot_dimension_numbers<[1], [0], [0], [1], [0, 0, 1, 1], [], []>} : vector<1x32xf32>, vector<32x96xf32>, vector<1x96xf32> -> vector<1x96xf32>
    %107 = arith.addf %106, %8 : vector<1x96xf32>
    %108 = vector.extract_strided_slice %6 {offsets = [3, 0], sizes = [1, 96], strides = [1, 1]} : vector<8x96xf32> to vector<1x96xf32>
    %109 = vector.extract_strided_slice %108 {offsets = [0, 0], sizes = [1, 32], strides = [1, 1]} : vector<1x96xf32> to vector<1x32xf32>
    %110 = vector.extract_strided_slice %107 {offsets = [0, 0], sizes = [1, 32], strides = [1, 1]} : vector<1x96xf32> to vector<1x32xf32>
    %111 = arith.addf %109, %110 : vector<1x32xf32>
    %112 = arith.negf %111 : vector<1x32xf32>
    %113 = math.exp %112 : vector<1x32xf32>
    %cst_28 = arith.constant 1.000000e+00 : f32
    %114 = vector.broadcast %cst_28 : f32 to vector<1x32xf32>
    %115 = arith.addf %114, %113 : vector<1x32xf32>
    %116 = arith.divf %114, %115 : vector<1x32xf32>
    %117 = vector.extract_strided_slice %108 {offsets = [0, 32], sizes = [1, 32], strides = [1, 1]} : vector<1x96xf32> to vector<1x32xf32>
    %118 = vector.extract_strided_slice %107 {offsets = [0, 32], sizes = [1, 32], strides = [1, 1]} : vector<1x96xf32> to vector<1x32xf32>
    %119 = arith.addf %117, %118 : vector<1x32xf32>
    %120 = arith.negf %119 : vector<1x32xf32>
    %121 = math.exp %120 : vector<1x32xf32>
    %cst_29 = arith.constant 1.000000e+00 : f32
    %122 = vector.broadcast %cst_29 : f32 to vector<1x32xf32>
    %123 = arith.addf %122, %121 : vector<1x32xf32>
    %124 = arith.divf %122, %123 : vector<1x32xf32>
    %125 = vector.extract_strided_slice %108 {offsets = [0, 64], sizes = [1, 32], strides = [1, 1]} : vector<1x96xf32> to vector<1x32xf32>
    %126 = vector.extract_strided_slice %107 {offsets = [0, 64], sizes = [1, 32], strides = [1, 1]} : vector<1x96xf32> to vector<1x32xf32>
    %127 = arith.mulf %116, %126 : vector<1x32xf32>
    %128 = arith.addf %125, %127 : vector<1x32xf32>
    %129 = math.tanh %128 : vector<1x32xf32>
    %cst_30 = arith.constant 1.000000e+00 : f32
    %130 = vector.broadcast %cst_30 : f32 to vector<1x32xf32>
    %131 = arith.subf %130, %124 : vector<1x32xf32>
    %132 = arith.mulf %131, %129 : vector<1x32xf32>
    %133 = arith.mulf %124, %105 : vector<1x32xf32>
    %134 = arith.addf %132, %133 : vector<1x32xf32>
    %c3 = arith.constant 3 : index
    %c0_31 = arith.constant 0 : index
    %135 = vector.load %arg16[%c3, %c0_31] : memref<8x32xf32, #tpu.memory_space<vmem>>, vector<1x32xf32>
    tpu.vector_store %arg16[%c3, %c0_31], %134 {strides = array<i32>} : memref<8x32xf32, #tpu.memory_space<vmem>>, vector<1x32xf32>,
    %c3_i32 = arith.constant 3 : i32
    %136 = arith.cmpi sgt, %0, %c3_i32 : i32
    %137 = arith.select %136, %134, %105 : vector<1x32xf32>
    %cst_32 = arith.constant dense<0.000000e+00> : vector<1x96xf32>
    %138 = tpu.matmul %137, %7, %cst_32 {dimension_numbers = #tpu.dot_dimension_numbers<[1], [0], [0], [1], [0, 0, 1, 1], [], []>} : vector<1x32xf32>, vector<32x96xf32>, vector<1x96xf32> -> vector<1x96xf32>
    %139 = arith.addf %138, %8 : vector<1x96xf32>
    %140 = vector.extract_strided_slice %6 {offsets = [4, 0], sizes = [1, 96], strides = [1, 1]} : vector<8x96xf32> to vector<1x96xf32>
    %141 = vector.extract_strided_slice %140 {offsets = [0, 0], sizes = [1, 32], strides = [1, 1]} : vector<1x96xf32> to vector<1x32xf32>
    %142 = vector.extract_strided_slice %139 {offsets = [0, 0], sizes = [1, 32], strides = [1, 1]} : vector<1x96xf32> to vector<1x32xf32>
    %143 = arith.addf %141, %142 : vector<1x32xf32>
    %144 = arith.negf %143 : vector<1x32xf32>
    %145 = math.exp %144 : vector<1x32xf32>
    %cst_33 = arith.constant 1.000000e+00 : f32
    %146 = vector.broadcast %cst_33 : f32 to vector<1x32xf32>
    %147 = arith.addf %146, %145 : vector<1x32xf32>
    %148 = arith.divf %146, %147 : vector<1x32xf32>
    %149 = vector.extract_strided_slice %140 {offsets = [0, 32], sizes = [1, 32], strides = [1, 1]} : vector<1x96xf32> to vector<1x32xf32>
    %150 = vector.extract_strided_slice %139 {offsets = [0, 32], sizes = [1, 32], strides = [1, 1]} : vector<1x96xf32> to vector<1x32xf32>
    %151 = arith.addf %149, %150 : vector<1x32xf32>
    %152 = arith.negf %151 : vector<1x32xf32>
    %153 = math.exp %152 : vector<1x32xf32>
    %cst_34 = arith.constant 1.000000e+00 : f32
    %154 = vector.broadcast %cst_34 : f32 to vector<1x32xf32>
    %155 = arith.addf %154, %153 : vector<1x32xf32>
    %156 = arith.divf %154, %155 : vector<1x32xf32>
    %157 = vector.extract_strided_slice %140 {offsets = [0, 64], sizes = [1, 32], strides = [1, 1]} : vector<1x96xf32> to vector<1x32xf32>
    %158 = vector.extract_strided_slice %139 {offsets = [0, 64], sizes = [1, 32], strides = [1, 1]} : vector<1x96xf32> to vector<1x32xf32>
    %159 = arith.mulf %148, %158 : vector<1x32xf32>
    %160 = arith.addf %157, %159 : vector<1x32xf32>
    %161 = math.tanh %160 : vector<1x32xf32>
    %cst_35 = arith.constant 1.000000e+00 : f32
    %162 = vector.broadcast %cst_35 : f32 to vector<1x32xf32>
    %163 = arith.subf %162, %156 : vector<1x32xf32>
    %164 = arith.mulf %163, %161 : vector<1x32xf32>
    %165 = arith.mulf %156, %137 : vector<1x32xf32>
    %166 = arith.addf %164, %165 : vector<1x32xf32>
    %c4 = arith.constant 4 : index
    %c0_36 = arith.constant 0 : index
    %167 = vector.load %arg16[%c4, %c0_36] : memref<8x32xf32, #tpu.memory_space<vmem>>, vector<1x32xf32>
    tpu.vector_store %arg16[%c4, %c0_36], %166 {strides = array<i32>} : memref<8x32xf32, #tpu.memory_space<vmem>>, vector<1x32xf32>,
    %c4_i32 = arith.constant 4 : i32
    %168 = arith.cmpi sgt, %0, %c4_i32 : i32
    %169 = arith.select %168, %166, %137 : vector<1x32xf32>
    %cst_37 = arith.constant dense<0.000000e+00> : vector<1x96xf32>
    %170 = tpu.matmul %169, %7, %cst_37 {dimension_numbers = #tpu.dot_dimension_numbers<[1], [0], [0], [1], [0, 0, 1, 1], [], []>} : vector<1x32xf32>, vector<32x96xf32>, vector<1x96xf32> -> vector<1x96xf32>
    %171 = arith.addf %170, %8 : vector<1x96xf32>
    %172 = vector.extract_strided_slice %6 {offsets = [5, 0], sizes = [1, 96], strides = [1, 1]} : vector<8x96xf32> to vector<1x96xf32>
    %173 = vector.extract_strided_slice %172 {offsets = [0, 0], sizes = [1, 32], strides = [1, 1]} : vector<1x96xf32> to vector<1x32xf32>
    %174 = vector.extract_strided_slice %171 {offsets = [0, 0], sizes = [1, 32], strides = [1, 1]} : vector<1x96xf32> to vector<1x32xf32>
    %175 = arith.addf %173, %174 : vector<1x32xf32>
    %176 = arith.negf %175 : vector<1x32xf32>
    %177 = math.exp %176 : vector<1x32xf32>
    %cst_38 = arith.constant 1.000000e+00 : f32
    %178 = vector.broadcast %cst_38 : f32 to vector<1x32xf32>
    %179 = arith.addf %178, %177 : vector<1x32xf32>
    %180 = arith.divf %178, %179 : vector<1x32xf32>
    %181 = vector.extract_strided_slice %172 {offsets = [0, 32], sizes = [1, 32], strides = [1, 1]} : vector<1x96xf32> to vector<1x32xf32>
    %182 = vector.extract_strided_slice %171 {offsets = [0, 32], sizes = [1, 32], strides = [1, 1]} : vector<1x96xf32> to vector<1x32xf32>
    %183 = arith.addf %181, %182 : vector<1x32xf32>
    %184 = arith.negf %183 : vector<1x32xf32>
    %185 = math.exp %184 : vector<1x32xf32>
    %cst_39 = arith.constant 1.000000e+00 : f32
    %186 = vector.broadcast %cst_39 : f32 to vector<1x32xf32>
    %187 = arith.addf %186, %185 : vector<1x32xf32>
    %188 = arith.divf %186, %187 : vector<1x32xf32>
    %189 = vector.extract_strided_slice %172 {offsets = [0, 64], sizes = [1, 32], strides = [1, 1]} : vector<1x96xf32> to vector<1x32xf32>
    %190 = vector.extract_strided_slice %171 {offsets = [0, 64], sizes = [1, 32], strides = [1, 1]} : vector<1x96xf32> to vector<1x32xf32>
    %191 = arith.mulf %180, %190 : vector<1x32xf32>
    %192 = arith.addf %189, %191 : vector<1x32xf32>
    %193 = math.tanh %192 : vector<1x32xf32>
    %cst_40 = arith.constant 1.000000e+00 : f32
    %194 = vector.broadcast %cst_40 : f32 to vector<1x32xf32>
    %195 = arith.subf %194, %188 : vector<1x32xf32>
    %196 = arith.mulf %195, %193 : vector<1x32xf32>
    %197 = arith.mulf %188, %169 : vector<1x32xf32>
    %198 = arith.addf %196, %197 : vector<1x32xf32>
    %c5 = arith.constant 5 : index
    %c0_41 = arith.constant 0 : index
    %199 = vector.load %arg16[%c5, %c0_41] : memref<8x32xf32, #tpu.memory_space<vmem>>, vector<1x32xf32>
    tpu.vector_store %arg16[%c5, %c0_41], %198 {strides = array<i32>} : memref<8x32xf32, #tpu.memory_space<vmem>>, vector<1x32xf32>,
    %c5_i32 = arith.constant 5 : i32
    %200 = arith.cmpi sgt, %0, %c5_i32 : i32
    %201 = arith.select %200, %198, %169 : vector<1x32xf32>
    %cst_42 = arith.constant dense<0.000000e+00> : vector<1x96xf32>
    %202 = tpu.matmul %201, %7, %cst_42 {dimension_numbers = #tpu.dot_dimension_numbers<[1], [0], [0], [1], [0, 0, 1, 1], [], []>} : vector<1x32xf32>, vector<32x96xf32>, vector<1x96xf32> -> vector<1x96xf32>
    %203 = arith.addf %202, %8 : vector<1x96xf32>
    %204 = vector.extract_strided_slice %6 {offsets = [6, 0], sizes = [1, 96], strides = [1, 1]} : vector<8x96xf32> to vector<1x96xf32>
    %205 = vector.extract_strided_slice %204 {offsets = [0, 0], sizes = [1, 32], strides = [1, 1]} : vector<1x96xf32> to vector<1x32xf32>
    %206 = vector.extract_strided_slice %203 {offsets = [0, 0], sizes = [1, 32], strides = [1, 1]} : vector<1x96xf32> to vector<1x32xf32>
    %207 = arith.addf %205, %206 : vector<1x32xf32>
    %208 = arith.negf %207 : vector<1x32xf32>
    %209 = math.exp %208 : vector<1x32xf32>
    %cst_43 = arith.constant 1.000000e+00 : f32
    %210 = vector.broadcast %cst_43 : f32 to vector<1x32xf32>
    %211 = arith.addf %210, %209 : vector<1x32xf32>
    %212 = arith.divf %210, %211 : vector<1x32xf32>
    %213 = vector.extract_strided_slice %204 {offsets = [0, 32], sizes = [1, 32], strides = [1, 1]} : vector<1x96xf32> to vector<1x32xf32>
    %214 = vector.extract_strided_slice %203 {offsets = [0, 32], sizes = [1, 32], strides = [1, 1]} : vector<1x96xf32> to vector<1x32xf32>
    %215 = arith.addf %213, %214 : vector<1x32xf32>
    %216 = arith.negf %215 : vector<1x32xf32>
    %217 = math.exp %216 : vector<1x32xf32>
    %cst_44 = arith.constant 1.000000e+00 : f32
    %218 = vector.broadcast %cst_44 : f32 to vector<1x32xf32>
    %219 = arith.addf %218, %217 : vector<1x32xf32>
    %220 = arith.divf %218, %219 : vector<1x32xf32>
    %221 = vector.extract_strided_slice %204 {offsets = [0, 64], sizes = [1, 32], strides = [1, 1]} : vector<1x96xf32> to vector<1x32xf32>
    %222 = vector.extract_strided_slice %203 {offsets = [0, 64], sizes = [1, 32], strides = [1, 1]} : vector<1x96xf32> to vector<1x32xf32>
    %223 = arith.mulf %212, %222 : vector<1x32xf32>
    %224 = arith.addf %221, %223 : vector<1x32xf32>
    %225 = math.tanh %224 : vector<1x32xf32>
    %cst_45 = arith.constant 1.000000e+00 : f32
    %226 = vector.broadcast %cst_45 : f32 to vector<1x32xf32>
    %227 = arith.subf %226, %220 : vector<1x32xf32>
    %228 = arith.mulf %227, %225 : vector<1x32xf32>
    %229 = arith.mulf %220, %201 : vector<1x32xf32>
    %230 = arith.addf %228, %229 : vector<1x32xf32>
    %c6 = arith.constant 6 : index
    %c0_46 = arith.constant 0 : index
    %231 = vector.load %arg16[%c6, %c0_46] : memref<8x32xf32, #tpu.memory_space<vmem>>, vector<1x32xf32>
    tpu.vector_store %arg16[%c6, %c0_46], %230 {strides = array<i32>} : memref<8x32xf32, #tpu.memory_space<vmem>>, vector<1x32xf32>,
    %c6_i32 = arith.constant 6 : i32
    %232 = arith.cmpi sgt, %0, %c6_i32 : i32
    %233 = arith.select %232, %230, %201 : vector<1x32xf32>
    %cst_47 = arith.constant dense<0.000000e+00> : vector<1x96xf32>
    %234 = tpu.matmul %233, %7, %cst_47 {dimension_numbers = #tpu.dot_dimension_numbers<[1], [0], [0], [1], [0, 0, 1, 1], [], []>} : vector<1x32xf32>, vector<32x96xf32>, vector<1x96xf32> -> vector<1x96xf32>
    %235 = arith.addf %234, %8 : vector<1x96xf32>
    %236 = vector.extract_strided_slice %6 {offsets = [7, 0], sizes = [1, 96], strides = [1, 1]} : vector<8x96xf32> to vector<1x96xf32>
    %237 = vector.extract_strided_slice %236 {offsets = [0, 0], sizes = [1, 32], strides = [1, 1]} : vector<1x96xf32> to vector<1x32xf32>
    %238 = vector.extract_strided_slice %235 {offsets = [0, 0], sizes = [1, 32], strides = [1, 1]} : vector<1x96xf32> to vector<1x32xf32>
    %239 = arith.addf %237, %238 : vector<1x32xf32>
    %240 = arith.negf %239 : vector<1x32xf32>
    %241 = math.exp %240 : vector<1x32xf32>
    %cst_48 = arith.constant 1.000000e+00 : f32
    %242 = vector.broadcast %cst_48 : f32 to vector<1x32xf32>
    %243 = arith.addf %242, %241 : vector<1x32xf32>
    %244 = arith.divf %242, %243 : vector<1x32xf32>
    %245 = vector.extract_strided_slice %236 {offsets = [0, 32], sizes = [1, 32], strides = [1, 1]} : vector<1x96xf32> to vector<1x32xf32>
    %246 = vector.extract_strided_slice %235 {offsets = [0, 32], sizes = [1, 32], strides = [1, 1]} : vector<1x96xf32> to vector<1x32xf32>
    %247 = arith.addf %245, %246 : vector<1x32xf32>
    %248 = arith.negf %247 : vector<1x32xf32>
    %249 = math.exp %248 : vector<1x32xf32>
    %cst_49 = arith.constant 1.000000e+00 : f32
    %250 = vector.broadcast %cst_49 : f32 to vector<1x32xf32>
    %251 = arith.addf %250, %249 : vector<1x32xf32>
    %252 = arith.divf %250, %251 : vector<1x32xf32>
    %253 = vector.extract_strided_slice %236 {offsets = [0, 64], sizes = [1, 32], strides = [1, 1]} : vector<1x96xf32> to vector<1x32xf32>
    %254 = vector.extract_strided_slice %235 {offsets = [0, 64], sizes = [1, 32], strides = [1, 1]} : vector<1x96xf32> to vector<1x32xf32>
    %255 = arith.mulf %244, %254 : vector<1x32xf32>
    %256 = arith.addf %253, %255 : vector<1x32xf32>
    %257 = math.tanh %256 : vector<1x32xf32>
    %cst_50 = arith.constant 1.000000e+00 : f32
    %258 = vector.broadcast %cst_50 : f32 to vector<1x32xf32>
    %259 = arith.subf %258, %252 : vector<1x32xf32>
    %260 = arith.mulf %259, %257 : vector<1x32xf32>
    %261 = arith.mulf %252, %233 : vector<1x32xf32>
    %262 = arith.addf %260, %261 : vector<1x32xf32>
    %c7 = arith.constant 7 : index
    %c0_51 = arith.constant 0 : index
    %263 = vector.load %arg16[%c7, %c0_51] : memref<8x32xf32, #tpu.memory_space<vmem>>, vector<1x32xf32>
    tpu.vector_store %arg16[%c7, %c0_51], %262 {strides = array<i32>} : memref<8x32xf32, #tpu.memory_space<vmem>>, vector<1x32xf32>,
    %c7_i32 = arith.constant 7 : i32
    %264 = arith.cmpi sgt, %0, %c7_i32 : i32
    %265 = arith.select %264, %262, %233 : vector<1x32xf32>
    %266 = tpu.iota {dimensions = array<i32: 0>} : vector<8x1xi32>
    %267 = vector.broadcast %0 : i32 to vector<8x1xi32>
    %268 = arith.cmpi slt, %266, %267 : vector<8x1xi32>
    %c0_52 = arith.constant 0 : index
    %c0_53 = arith.constant 0 : index
    %269 = vector.load %arg16[%c0_52, %c0_53] : memref<8x32xf32, #tpu.memory_space<vmem>>, vector<8x32xf32>
    %cst_54 = arith.constant 0.000000e+00 : f32
    %270 = vector.shape_cast %268 : vector<8x1xi1> to vector<8x1xi1>
    %271 = vector.broadcast %270 : vector<8x1xi1> to vector<8x32xi1>
    %272 = vector.broadcast %cst_54 : f32 to vector<8x32xf32>
    %273 = arith.select %271, %269, %272 : vector<8x32xi1>, vector<8x32xf32>
    %c0_55 = arith.constant 0 : index
    %c0_56 = arith.constant 0 : index
    %274 = vector.load %arg16[%c0_55, %c0_56] : memref<8x32xf32, #tpu.memory_space<vmem>>, vector<8x32xf32>
    tpu.vector_store %arg16[%c0_55, %c0_56], %273 {strides = array<i32>} : memref<8x32xf32, #tpu.memory_space<vmem>>, vector<8x32xf32>,
    %c0_57 = arith.constant 0 : index
    %c0_58 = arith.constant 0 : index
    %275 = vector.load %arg6[%c0_57, %c0_58] : memref<64x128xf32, #tpu.memory_space<vmem>>, vector<64x128xf32>
    %c0_59 = arith.constant 0 : index
    %c0_60 = arith.constant 0 : index
    %276 = vector.load %arg7[%c0_59, %c0_60] : memref<32x128xf32, #tpu.memory_space<vmem>>, vector<32x128xf32>
    %c0_61 = arith.constant 0 : index
    %c0_62 = arith.constant 0 : index
    %277 = vector.load %arg8[%c0_61, %c0_62] : memref<1x128xf32, #tpu.memory_space<vmem>>, vector<1x128xf32>
    %c0_63 = arith.constant 0 : index
    %c0_64 = arith.constant 0 : index
    %278 = vector.load %arg9[%c0_63, %c0_64] : memref<32x32xf32, #tpu.memory_space<vmem>>, vector<32x32xf32>
    %c0_65 = arith.constant 0 : index
    %c0_66 = arith.constant 0 : index
    %279 = vector.load %arg10[%c0_65, %c0_66] : memref<32x32xf32, #tpu.memory_space<vmem>>, vector<32x32xf32>
    %c0_67 = arith.constant 0 : index
    %c0_68 = arith.constant 0 : index
    %280 = vector.load %arg11[%c0_67, %c0_68] : memref<1x32xf32, #tpu.memory_space<vmem>>, vector<1x32xf32>
    %c0_69 = arith.constant 0 : index
    %c0_70 = arith.constant 0 : index
    %281 = vector.load %arg12[%c0_69, %c0_70] : memref<32x128xf32, #tpu.memory_space<vmem>>, vector<32x128xf32>
    %c0_71 = arith.constant 0 : index
    %c0_72 = arith.constant 0 : index
    %282 = vector.load %arg13[%c0_71, %c0_72] : memref<1x128xf32, #tpu.memory_space<vmem>>, vector<1x128xf32>
    %283 = tpu.iota {dimensions = array<i32: 1>} : vector<1x8xi32>
    %284 = vector.broadcast %0 : i32 to vector<1x8xi32>
    %285 = arith.cmpi slt, %283, %284 : vector<1x8xi32>
    %286 = tpu.iota {dimensions = array<i32: 1>} : vector<1x64xi32>
    %287 = tpu.iota {dimensions = array<i32: 1>} : vector<1x128xi32>
    %c1_i32_73 = arith.constant 1 : i32
    %288 = vector.broadcast %c1_i32_73 : i32 to vector<1x1xi32>
    %289 = vector.broadcast %288 : vector<1x1xi32> to vector<1x64xi32>
    %290 = arith.cmpi eq, %286, %289 : vector<1x64xi32>
    %291 = arith.extui %290 : vector<1x64xi1> to vector<1x64xi32>
    %292 = arith.sitofp %291 : vector<1x64xi32> to vector<1x64xf32>
    %cst_74 = arith.constant dense<0.000000e+00> : vector<1x128xf32>
    %293 = tpu.matmul %292, %275, %cst_74 {dimension_numbers = #tpu.dot_dimension_numbers<[1], [0], [0], [1], [0, 0, 1, 1], [], []>} : vector<1x64xf32>, vector<64x128xf32>, vector<1x128xf32> -> vector<1x128xf32>
    %cst_75 = arith.constant dense<0.000000e+00> : vector<1x128xf32>
    %294 = tpu.matmul %265, %276, %cst_75 {dimension_numbers = #tpu.dot_dimension_numbers<[1], [0], [0], [1], [0, 0, 1, 1], [], []>} : vector<1x32xf32>, vector<32x128xf32>, vector<1x128xf32> -> vector<1x128xf32>
    %295 = arith.addf %293, %294 : vector<1x128xf32>
    %296 = arith.addf %295, %277 : vector<1x128xf32>
    %297 = vector.extract_strided_slice %296 {offsets = [0, 0], sizes = [1, 32], strides = [1, 1]} : vector<1x128xf32> to vector<1x32xf32>
    %298 = arith.negf %297 : vector<1x32xf32>
    %299 = math.exp %298 : vector<1x32xf32>
    %cst_76 = arith.constant 1.000000e+00 : f32
    %300 = vector.broadcast %cst_76 : f32 to vector<1x32xf32>
    %301 = arith.addf %300, %299 : vector<1x32xf32>
    %302 = arith.divf %300, %301 : vector<1x32xf32>
    %303 = vector.extract_strided_slice %296 {offsets = [0, 32], sizes = [1, 32], strides = [1, 1]} : vector<1x128xf32> to vector<1x32xf32>
    %304 = arith.negf %303 : vector<1x32xf32>
    %305 = math.exp %304 : vector<1x32xf32>
    %cst_77 = arith.constant 1.000000e+00 : f32
    %306 = vector.broadcast %cst_77 : f32 to vector<1x32xf32>
    %307 = arith.addf %306, %305 : vector<1x32xf32>
    %308 = arith.divf %306, %307 : vector<1x32xf32>
    %309 = vector.extract_strided_slice %296 {offsets = [0, 64], sizes = [1, 32], strides = [1, 1]} : vector<1x128xf32> to vector<1x32xf32>
    %310 = vector.extract_strided_slice %296 {offsets = [0, 96], sizes = [1, 32], strides = [1, 1]} : vector<1x128xf32> to vector<1x32xf32>
    %311 = arith.mulf %302, %310 : vector<1x32xf32>
    %312 = arith.addf %309, %311 : vector<1x32xf32>
    %313 = math.tanh %312 : vector<1x32xf32>
    %cst_78 = arith.constant 1.000000e+00 : f32
    %314 = vector.broadcast %cst_78 : f32 to vector<1x32xf32>
    %315 = arith.subf %314, %308 : vector<1x32xf32>
    %316 = arith.mulf %315, %313 : vector<1x32xf32>
    %317 = arith.mulf %308, %265 : vector<1x32xf32>
    %318 = arith.addf %316, %317 : vector<1x32xf32>
    %cst_79 = arith.constant dense<0.000000e+00> : vector<1x8xf32>
    %319 = tpu.matmul %318, %273, %cst_79 {dimension_numbers = #tpu.dot_dimension_numbers<[1], [1], [0], [0], [0, 0, 1, 0], [], []>} : vector<1x32xf32>, vector<8x32xf32>, vector<1x8xf32> -> vector<1x8xf32>
    %cst_80 = arith.constant -1.000000e+30 : f32
    %320 = vector.broadcast %cst_80 : f32 to vector<1x8xf32>
    %321 = arith.select %285, %319, %320 : vector<1x8xi1>, vector<1x8xf32>
    %cst_81 = arith.constant dense<0xFF800000> : vector<1xf32>
    %322 = vector.multi_reduction <maximumf>, %321, %cst_81 [1] : vector<1x8xf32> to vector<1xf32>
    %323 = vector.shape_cast %322 : vector<1xf32> to vector<1x1xf32>
    %324 = vector.broadcast %323 : vector<1x1xf32> to vector<1x8xf32>
    %325 = arith.subf %321, %324 : vector<1x8xf32>
    %326 = math.exp %325 : vector<1x8xf32>
    %cst_82 = arith.constant dense<0.000000e+00> : vector<1xf32>
    %327 = vector.multi_reduction <add>, %326, %cst_82 [1] : vector<1x8xf32> to vector<1xf32>
    %328 = vector.shape_cast %327 : vector<1xf32> to vector<1x1xf32>
    %329 = vector.broadcast %328 : vector<1x1xf32> to vector<1x8xf32>
    %330 = arith.divf %326, %329 : vector<1x8xf32>
    %cst_83 = arith.constant dense<0.000000e+00> : vector<1x32xf32>
    %331 = tpu.matmul %330, %273, %cst_83 {dimension_numbers = #tpu.dot_dimension_numbers<[1], [0], [0], [1], [0, 0, 1, 1], [], []>} : vector<1x8xf32>, vector<8x32xf32>, vector<1x32xf32> -> vector<1x32xf32>
    %cst_84 = arith.constant dense<0.000000e+00> : vector<1x32xf32>
    %332 = tpu.matmul %318, %278, %cst_84 {dimension_numbers = #tpu.dot_dimension_numbers<[1], [0], [0], [1], [0, 0, 1, 1], [], []>} : vector<1x32xf32>, vector<32x32xf32>, vector<1x32xf32> -> vector<1x32xf32>
    %cst_85 = arith.constant dense<0.000000e+00> : vector<1x32xf32>
    %333 = tpu.matmul %331, %279, %cst_85 {dimension_numbers = #tpu.dot_dimension_numbers<[1], [0], [0], [1], [0, 0, 1, 1], [], []>} : vector<1x32xf32>, vector<32x32xf32>, vector<1x32xf32> -> vector<1x32xf32>
    %334 = arith.addf %332, %333 : vector<1x32xf32>
    %335 = arith.addf %334, %280 : vector<1x32xf32>
    %336 = math.tanh %335 : vector<1x32xf32>
    %cst_86 = arith.constant dense<0.000000e+00> : vector<1x128xf32>
    %337 = tpu.matmul %336, %281, %cst_86 {dimension_numbers = #tpu.dot_dimension_numbers<[1], [0], [0], [1], [0, 0, 1, 1], [], []>} : vector<1x32xf32>, vector<32x128xf32>, vector<1x128xf32> -> vector<1x128xf32>
    %338 = arith.addf %337, %282 : vector<1x128xf32>
    %c0_87 = arith.constant 0 : index
    %c0_88 = arith.constant 0 : index
    %339 = vector.load %arg14[%c0_87, %c0_88] : memref<8x128xf32, #tpu.memory_space<vmem>>, vector<1x128xf32>
    %340 = arith.addf %338, %339 : vector<1x128xf32>
    %cst_89 = arith.constant dense<0xFF800000> : vector<1xf32>
    %341 = vector.multi_reduction <maximumf>, %340, %cst_89 [1] : vector<1x128xf32> to vector<1xf32>
    %342 = vector.shape_cast %341 : vector<1xf32> to vector<1x1xf32>
    %343 = vector.broadcast %342 : vector<1x1xf32> to vector<1x128xf32>
    %344 = arith.cmpf oge, %340, %343 : vector<1x128xf32>
    %c128_i32 = arith.constant 128 : i32
    %345 = vector.broadcast %c128_i32 : i32 to vector<1x128xi32>
    %346 = arith.select %344, %287, %345 : vector<1x128xi1>, vector<1x128xi32>
    %cst_90 = arith.constant dense<2147483647> : vector<1xi32>
    %347 = vector.multi_reduction <minsi>, %346, %cst_90 [1] : vector<1x128xi32> to vector<1xi32>
    %348 = vector.shape_cast %347 : vector<1xi32> to vector<1x1xi32>
    %c0_91 = arith.constant 0 : index
    %c0_92 = arith.constant 0 : index
    %349 = vector.load %arg15[%c0_91, %c0_92] : memref<8x1xi32, #tpu.memory_space<vmem>>, vector<1x1xi32>
    tpu.vector_store %arg15[%c0_91, %c0_92], %348 {strides = array<i32>} : memref<8x1xi32, #tpu.memory_space<vmem>>, vector<1x1xi32>,
    %350 = vector.broadcast %348 : vector<1x1xi32> to vector<1x64xi32>
    %351 = arith.cmpi eq, %286, %350 : vector<1x64xi32>
    %352 = arith.extui %351 : vector<1x64xi1> to vector<1x64xi32>
    %353 = arith.sitofp %352 : vector<1x64xi32> to vector<1x64xf32>
    %cst_93 = arith.constant dense<0.000000e+00> : vector<1x128xf32>
    %354 = tpu.matmul %353, %275, %cst_93 {dimension_numbers = #tpu.dot_dimension_numbers<[1], [0], [0], [1], [0, 0, 1, 1], [], []>} : vector<1x64xf32>, vector<64x128xf32>, vector<1x128xf32> -> vector<1x128xf32>
    %cst_94 = arith.constant dense<0.000000e+00> : vector<1x128xf32>
    %355 = tpu.matmul %318, %276, %cst_94 {dimension_numbers = #tpu.dot_dimension_numbers<[1], [0], [0], [1], [0, 0, 1, 1], [], []>} : vector<1x32xf32>, vector<32x128xf32>, vector<1x128xf32> -> vector<1x128xf32>
    %356 = arith.addf %354, %355 : vector<1x128xf32>
    %357 = arith.addf %356, %277 : vector<1x128xf32>
    %358 = vector.extract_strided_slice %357 {offsets = [0, 0], sizes = [1, 32], strides = [1, 1]} : vector<1x128xf32> to vector<1x32xf32>
    %359 = arith.negf %358 : vector<1x32xf32>
    %360 = math.exp %359 : vector<1x32xf32>
    %cst_95 = arith.constant 1.000000e+00 : f32
    %361 = vector.broadcast %cst_95 : f32 to vector<1x32xf32>
    %362 = arith.addf %361, %360 : vector<1x32xf32>
    %363 = arith.divf %361, %362 : vector<1x32xf32>
    %364 = vector.extract_strided_slice %357 {offsets = [0, 32], sizes = [1, 32], strides = [1, 1]} : vector<1x128xf32> to vector<1x32xf32>
    %365 = arith.negf %364 : vector<1x32xf32>
    %366 = math.exp %365 : vector<1x32xf32>
    %cst_96 = arith.constant 1.000000e+00 : f32
    %367 = vector.broadcast %cst_96 : f32 to vector<1x32xf32>
    %368 = arith.addf %367, %366 : vector<1x32xf32>
    %369 = arith.divf %367, %368 : vector<1x32xf32>
    %370 = vector.extract_strided_slice %357 {offsets = [0, 64], sizes = [1, 32], strides = [1, 1]} : vector<1x128xf32> to vector<1x32xf32>
    %371 = vector.extract_strided_slice %357 {offsets = [0, 96], sizes = [1, 32], strides = [1, 1]} : vector<1x128xf32> to vector<1x32xf32>
    %372 = arith.mulf %363, %371 : vector<1x32xf32>
    %373 = arith.addf %370, %372 : vector<1x32xf32>
    %374 = math.tanh %373 : vector<1x32xf32>
    %cst_97 = arith.constant 1.000000e+00 : f32
    %375 = vector.broadcast %cst_97 : f32 to vector<1x32xf32>
    %376 = arith.subf %375, %369 : vector<1x32xf32>
    %377 = arith.mulf %376, %374 : vector<1x32xf32>
    %378 = arith.mulf %369, %318 : vector<1x32xf32>
    %379 = arith.addf %377, %378 : vector<1x32xf32>
    %cst_98 = arith.constant dense<0.000000e+00> : vector<1x8xf32>
    %380 = tpu.matmul %379, %273, %cst_98 {dimension_numbers = #tpu.dot_dimension_numbers<[1], [1], [0], [0], [0, 0, 1, 0], [], []>} : vector<1x32xf32>, vector<8x32xf32>, vector<1x8xf32> -> vector<1x8xf32>
    %cst_99 = arith.constant -1.000000e+30 : f32
    %381 = vector.broadcast %cst_99 : f32 to vector<1x8xf32>
    %382 = arith.select %285, %380, %381 : vector<1x8xi1>, vector<1x8xf32>
    %cst_100 = arith.constant dense<0xFF800000> : vector<1xf32>
    %383 = vector.multi_reduction <maximumf>, %382, %cst_100 [1] : vector<1x8xf32> to vector<1xf32>
    %384 = vector.shape_cast %383 : vector<1xf32> to vector<1x1xf32>
    %385 = vector.broadcast %384 : vector<1x1xf32> to vector<1x8xf32>
    %386 = arith.subf %382, %385 : vector<1x8xf32>
    %387 = math.exp %386 : vector<1x8xf32>
    %cst_101 = arith.constant dense<0.000000e+00> : vector<1xf32>
    %388 = vector.multi_reduction <add>, %387, %cst_101 [1] : vector<1x8xf32> to vector<1xf32>
    %389 = vector.shape_cast %388 : vector<1xf32> to vector<1x1xf32>
    %390 = vector.broadcast %389 : vector<1x1xf32> to vector<1x8xf32>
    %391 = arith.divf %387, %390 : vector<1x8xf32>
    %cst_102 = arith.constant dense<0.000000e+00> : vector<1x32xf32>
    %392 = tpu.matmul %391, %273, %cst_102 {dimension_numbers = #tpu.dot_dimension_numbers<[1], [0], [0], [1], [0, 0, 1, 1], [], []>} : vector<1x8xf32>, vector<8x32xf32>, vector<1x32xf32> -> vector<1x32xf32>
    %cst_103 = arith.constant dense<0.000000e+00> : vector<1x32xf32>
    %393 = tpu.matmul %379, %278, %cst_103 {dimension_numbers = #tpu.dot_dimension_numbers<[1], [0], [0], [1], [0, 0, 1, 1], [], []>} : vector<1x32xf32>, vector<32x32xf32>, vector<1x32xf32> -> vector<1x32xf32>
    %cst_104 = arith.constant dense<0.000000e+00> : vector<1x32xf32>
    %394 = tpu.matmul %392, %279, %cst_104 {dimension_numbers = #tpu.dot_dimension_numbers<[1], [0], [0], [1], [0, 0, 1, 1], [], []>} : vector<1x32xf32>, vector<32x32xf32>, vector<1x32xf32> -> vector<1x32xf32>
    %395 = arith.addf %393, %394 : vector<1x32xf32>
    %396 = arith.addf %395, %280 : vector<1x32xf32>
    %397 = math.tanh %396 : vector<1x32xf32>
    %cst_105 = arith.constant dense<0.000000e+00> : vector<1x128xf32>
    %398 = tpu.matmul %397, %281, %cst_105 {dimension_numbers = #tpu.dot_dimension_numbers<[1], [0], [0], [1], [0, 0, 1, 1], [], []>} : vector<1x32xf32>, vector<32x128xf32>, vector<1x128xf32> -> vector<1x128xf32>
    %399 = arith.addf %398, %282 : vector<1x128xf32>
    %c1_106 = arith.constant 1 : index
    %c0_107 = arith.constant 0 : index
    %400 = vector.load %arg14[%c1_106, %c0_107] : memref<8x128xf32, #tpu.memory_space<vmem>>, vector<1x128xf32>
    %401 = arith.addf %399, %400 : vector<1x128xf32>
    %cst_108 = arith.constant dense<0xFF800000> : vector<1xf32>
    %402 = vector.multi_reduction <maximumf>, %401, %cst_108 [1] : vector<1x128xf32> to vector<1xf32>
    %403 = vector.shape_cast %402 : vector<1xf32> to vector<1x1xf32>
    %404 = vector.broadcast %403 : vector<1x1xf32> to vector<1x128xf32>
    %405 = arith.cmpf oge, %401, %404 : vector<1x128xf32>
    %c128_i32_109 = arith.constant 128 : i32
    %406 = vector.broadcast %c128_i32_109 : i32 to vector<1x128xi32>
    %407 = arith.select %405, %287, %406 : vector<1x128xi1>, vector<1x128xi32>
    %cst_110 = arith.constant dense<2147483647> : vector<1xi32>
    %408 = vector.multi_reduction <minsi>, %407, %cst_110 [1] : vector<1x128xi32> to vector<1xi32>
    %409 = vector.shape_cast %408 : vector<1xi32> to vector<1x1xi32>
    %c1_111 = arith.constant 1 : index
    %c0_112 = arith.constant 0 : index
    %410 = vector.load %arg15[%c1_111, %c0_112] : memref<8x1xi32, #tpu.memory_space<vmem>>, vector<1x1xi32>
    tpu.vector_store %arg15[%c1_111, %c0_112], %409 {strides = array<i32>} : memref<8x1xi32, #tpu.memory_space<vmem>>, vector<1x1xi32>,
    %411 = vector.broadcast %409 : vector<1x1xi32> to vector<1x64xi32>
    %412 = arith.cmpi eq, %286, %411 : vector<1x64xi32>
    %413 = arith.extui %412 : vector<1x64xi1> to vector<1x64xi32>
    %414 = arith.sitofp %413 : vector<1x64xi32> to vector<1x64xf32>
    %cst_113 = arith.constant dense<0.000000e+00> : vector<1x128xf32>
    %415 = tpu.matmul %414, %275, %cst_113 {dimension_numbers = #tpu.dot_dimension_numbers<[1], [0], [0], [1], [0, 0, 1, 1], [], []>} : vector<1x64xf32>, vector<64x128xf32>, vector<1x128xf32> -> vector<1x128xf32>
    %cst_114 = arith.constant dense<0.000000e+00> : vector<1x128xf32>
    %416 = tpu.matmul %379, %276, %cst_114 {dimension_numbers = #tpu.dot_dimension_numbers<[1], [0], [0], [1], [0, 0, 1, 1], [], []>} : vector<1x32xf32>, vector<32x128xf32>, vector<1x128xf32> -> vector<1x128xf32>
    %417 = arith.addf %415, %416 : vector<1x128xf32>
    %418 = arith.addf %417, %277 : vector<1x128xf32>
    %419 = vector.extract_strided_slice %418 {offsets = [0, 0], sizes = [1, 32], strides = [1, 1]} : vector<1x128xf32> to vector<1x32xf32>
    %420 = arith.negf %419 : vector<1x32xf32>
    %421 = math.exp %420 : vector<1x32xf32>
    %cst_115 = arith.constant 1.000000e+00 : f32
    %422 = vector.broadcast %cst_115 : f32 to vector<1x32xf32>
    %423 = arith.addf %422, %421 : vector<1x32xf32>
    %424 = arith.divf %422, %423 : vector<1x32xf32>
    %425 = vector.extract_strided_slice %418 {offsets = [0, 32], sizes = [1, 32], strides = [1, 1]} : vector<1x128xf32> to vector<1x32xf32>
    %426 = arith.negf %425 : vector<1x32xf32>
    %427 = math.exp %426 : vector<1x32xf32>
    %cst_116 = arith.constant 1.000000e+00 : f32
    %428 = vector.broadcast %cst_116 : f32 to vector<1x32xf32>
    %429 = arith.addf %428, %427 : vector<1x32xf32>
    %430 = arith.divf %428, %429 : vector<1x32xf32>
    %431 = vector.extract_strided_slice %418 {offsets = [0, 64], sizes = [1, 32], strides = [1, 1]} : vector<1x128xf32> to vector<1x32xf32>
    %432 = vector.extract_strided_slice %418 {offsets = [0, 96], sizes = [1, 32], strides = [1, 1]} : vector<1x128xf32> to vector<1x32xf32>
    %433 = arith.mulf %424, %432 : vector<1x32xf32>
    %434 = arith.addf %431, %433 : vector<1x32xf32>
    %435 = math.tanh %434 : vector<1x32xf32>
    %cst_117 = arith.constant 1.000000e+00 : f32
    %436 = vector.broadcast %cst_117 : f32 to vector<1x32xf32>
    %437 = arith.subf %436, %430 : vector<1x32xf32>
    %438 = arith.mulf %437, %435 : vector<1x32xf32>
    %439 = arith.mulf %430, %379 : vector<1x32xf32>
    %440 = arith.addf %438, %439 : vector<1x32xf32>
    %cst_118 = arith.constant dense<0.000000e+00> : vector<1x8xf32>
    %441 = tpu.matmul %440, %273, %cst_118 {dimension_numbers = #tpu.dot_dimension_numbers<[1], [1], [0], [0], [0, 0, 1, 0], [], []>} : vector<1x32xf32>, vector<8x32xf32>, vector<1x8xf32> -> vector<1x8xf32>
    %cst_119 = arith.constant -1.000000e+30 : f32
    %442 = vector.broadcast %cst_119 : f32 to vector<1x8xf32>
    %443 = arith.select %285, %441, %442 : vector<1x8xi1>, vector<1x8xf32>
    %cst_120 = arith.constant dense<0xFF800000> : vector<1xf32>
    %444 = vector.multi_reduction <maximumf>, %443, %cst_120 [1] : vector<1x8xf32> to vector<1xf32>
    %445 = vector.shape_cast %444 : vector<1xf32> to vector<1x1xf32>
    %446 = vector.broadcast %445 : vector<1x1xf32> to vector<1x8xf32>
    %447 = arith.subf %443, %446 : vector<1x8xf32>
    %448 = math.exp %447 : vector<1x8xf32>
    %cst_121 = arith.constant dense<0.000000e+00> : vector<1xf32>
    %449 = vector.multi_reduction <add>, %448, %cst_121 [1] : vector<1x8xf32> to vector<1xf32>
    %450 = vector.shape_cast %449 : vector<1xf32> to vector<1x1xf32>
    %451 = vector.broadcast %450 : vector<1x1xf32> to vector<1x8xf32>
    %452 = arith.divf %448, %451 : vector<1x8xf32>
    %cst_122 = arith.constant dense<0.000000e+00> : vector<1x32xf32>
    %453 = tpu.matmul %452, %273, %cst_122 {dimension_numbers = #tpu.dot_dimension_numbers<[1], [0], [0], [1], [0, 0, 1, 1], [], []>} : vector<1x8xf32>, vector<8x32xf32>, vector<1x32xf32> -> vector<1x32xf32>
    %cst_123 = arith.constant dense<0.000000e+00> : vector<1x32xf32>
    %454 = tpu.matmul %440, %278, %cst_123 {dimension_numbers = #tpu.dot_dimension_numbers<[1], [0], [0], [1], [0, 0, 1, 1], [], []>} : vector<1x32xf32>, vector<32x32xf32>, vector<1x32xf32> -> vector<1x32xf32>
    %cst_124 = arith.constant dense<0.000000e+00> : vector<1x32xf32>
    %455 = tpu.matmul %453, %279, %cst_124 {dimension_numbers = #tpu.dot_dimension_numbers<[1], [0], [0], [1], [0, 0, 1, 1], [], []>} : vector<1x32xf32>, vector<32x32xf32>, vector<1x32xf32> -> vector<1x32xf32>
    %456 = arith.addf %454, %455 : vector<1x32xf32>
    %457 = arith.addf %456, %280 : vector<1x32xf32>
    %458 = math.tanh %457 : vector<1x32xf32>
    %cst_125 = arith.constant dense<0.000000e+00> : vector<1x128xf32>
    %459 = tpu.matmul %458, %281, %cst_125 {dimension_numbers = #tpu.dot_dimension_numbers<[1], [0], [0], [1], [0, 0, 1, 1], [], []>} : vector<1x32xf32>, vector<32x128xf32>, vector<1x128xf32> -> vector<1x128xf32>
    %460 = arith.addf %459, %282 : vector<1x128xf32>
    %c2_126 = arith.constant 2 : index
    %c0_127 = arith.constant 0 : index
    %461 = vector.load %arg14[%c2_126, %c0_127] : memref<8x128xf32, #tpu.memory_space<vmem>>, vector<1x128xf32>
    %462 = arith.addf %460, %461 : vector<1x128xf32>
    %cst_128 = arith.constant dense<0xFF800000> : vector<1xf32>
    %463 = vector.multi_reduction <maximumf>, %462, %cst_128 [1] : vector<1x128xf32> to vector<1xf32>
    %464 = vector.shape_cast %463 : vector<1xf32> to vector<1x1xf32>
    %465 = vector.broadcast %464 : vector<1x1xf32> to vector<1x128xf32>
    %466 = arith.cmpf oge, %462, %465 : vector<1x128xf32>
    %c128_i32_129 = arith.constant 128 : i32
    %467 = vector.broadcast %c128_i32_129 : i32 to vector<1x128xi32>
    %468 = arith.select %466, %287, %467 : vector<1x128xi1>, vector<1x128xi32>
    %cst_130 = arith.constant dense<2147483647> : vector<1xi32>
    %469 = vector.multi_reduction <minsi>, %468, %cst_130 [1] : vector<1x128xi32> to vector<1xi32>
    %470 = vector.shape_cast %469 : vector<1xi32> to vector<1x1xi32>
    %c2_131 = arith.constant 2 : index
    %c0_132 = arith.constant 0 : index
    %471 = vector.load %arg15[%c2_131, %c0_132] : memref<8x1xi32, #tpu.memory_space<vmem>>, vector<1x1xi32>
    tpu.vector_store %arg15[%c2_131, %c0_132], %470 {strides = array<i32>} : memref<8x1xi32, #tpu.memory_space<vmem>>, vector<1x1xi32>,
    %472 = vector.broadcast %470 : vector<1x1xi32> to vector<1x64xi32>
    %473 = arith.cmpi eq, %286, %472 : vector<1x64xi32>
    %474 = arith.extui %473 : vector<1x64xi1> to vector<1x64xi32>
    %475 = arith.sitofp %474 : vector<1x64xi32> to vector<1x64xf32>
    %cst_133 = arith.constant dense<0.000000e+00> : vector<1x128xf32>
    %476 = tpu.matmul %475, %275, %cst_133 {dimension_numbers = #tpu.dot_dimension_numbers<[1], [0], [0], [1], [0, 0, 1, 1], [], []>} : vector<1x64xf32>, vector<64x128xf32>, vector<1x128xf32> -> vector<1x128xf32>
    %cst_134 = arith.constant dense<0.000000e+00> : vector<1x128xf32>
    %477 = tpu.matmul %440, %276, %cst_134 {dimension_numbers = #tpu.dot_dimension_numbers<[1], [0], [0], [1], [0, 0, 1, 1], [], []>} : vector<1x32xf32>, vector<32x128xf32>, vector<1x128xf32> -> vector<1x128xf32>
    %478 = arith.addf %476, %477 : vector<1x128xf32>
    %479 = arith.addf %478, %277 : vector<1x128xf32>
    %480 = vector.extract_strided_slice %479 {offsets = [0, 0], sizes = [1, 32], strides = [1, 1]} : vector<1x128xf32> to vector<1x32xf32>
    %481 = arith.negf %480 : vector<1x32xf32>
    %482 = math.exp %481 : vector<1x32xf32>
    %cst_135 = arith.constant 1.000000e+00 : f32
    %483 = vector.broadcast %cst_135 : f32 to vector<1x32xf32>
    %484 = arith.addf %483, %482 : vector<1x32xf32>
    %485 = arith.divf %483, %484 : vector<1x32xf32>
    %486 = vector.extract_strided_slice %479 {offsets = [0, 32], sizes = [1, 32], strides = [1, 1]} : vector<1x128xf32> to vector<1x32xf32>
    %487 = arith.negf %486 : vector<1x32xf32>
    %488 = math.exp %487 : vector<1x32xf32>
    %cst_136 = arith.constant 1.000000e+00 : f32
    %489 = vector.broadcast %cst_136 : f32 to vector<1x32xf32>
    %490 = arith.addf %489, %488 : vector<1x32xf32>
    %491 = arith.divf %489, %490 : vector<1x32xf32>
    %492 = vector.extract_strided_slice %479 {offsets = [0, 64], sizes = [1, 32], strides = [1, 1]} : vector<1x128xf32> to vector<1x32xf32>
    %493 = vector.extract_strided_slice %479 {offsets = [0, 96], sizes = [1, 32], strides = [1, 1]} : vector<1x128xf32> to vector<1x32xf32>
    %494 = arith.mulf %485, %493 : vector<1x32xf32>
    %495 = arith.addf %492, %494 : vector<1x32xf32>
    %496 = math.tanh %495 : vector<1x32xf32>
    %cst_137 = arith.constant 1.000000e+00 : f32
    %497 = vector.broadcast %cst_137 : f32 to vector<1x32xf32>
    %498 = arith.subf %497, %491 : vector<1x32xf32>
    %499 = arith.mulf %498, %496 : vector<1x32xf32>
    %500 = arith.mulf %491, %440 : vector<1x32xf32>
    %501 = arith.addf %499, %500 : vector<1x32xf32>
    %cst_138 = arith.constant dense<0.000000e+00> : vector<1x8xf32>
    %502 = tpu.matmul %501, %273, %cst_138 {dimension_numbers = #tpu.dot_dimension_numbers<[1], [1], [0], [0], [0, 0, 1, 0], [], []>} : vector<1x32xf32>, vector<8x32xf32>, vector<1x8xf32> -> vector<1x8xf32>
    %cst_139 = arith.constant -1.000000e+30 : f32
    %503 = vector.broadcast %cst_139 : f32 to vector<1x8xf32>
    %504 = arith.select %285, %502, %503 : vector<1x8xi1>, vector<1x8xf32>
    %cst_140 = arith.constant dense<0xFF800000> : vector<1xf32>
    %505 = vector.multi_reduction <maximumf>, %504, %cst_140 [1] : vector<1x8xf32> to vector<1xf32>
    %506 = vector.shape_cast %505 : vector<1xf32> to vector<1x1xf32>
    %507 = vector.broadcast %506 : vector<1x1xf32> to vector<1x8xf32>
    %508 = arith.subf %504, %507 : vector<1x8xf32>
    %509 = math.exp %508 : vector<1x8xf32>
    %cst_141 = arith.constant dense<0.000000e+00> : vector<1xf32>
    %510 = vector.multi_reduction <add>, %509, %cst_141 [1] : vector<1x8xf32> to vector<1xf32>
    %511 = vector.shape_cast %510 : vector<1xf32> to vector<1x1xf32>
    %512 = vector.broadcast %511 : vector<1x1xf32> to vector<1x8xf32>
    %513 = arith.divf %509, %512 : vector<1x8xf32>
    %cst_142 = arith.constant dense<0.000000e+00> : vector<1x32xf32>
    %514 = tpu.matmul %513, %273, %cst_142 {dimension_numbers = #tpu.dot_dimension_numbers<[1], [0], [0], [1], [0, 0, 1, 1], [], []>} : vector<1x8xf32>, vector<8x32xf32>, vector<1x32xf32> -> vector<1x32xf32>
    %cst_143 = arith.constant dense<0.000000e+00> : vector<1x32xf32>
    %515 = tpu.matmul %501, %278, %cst_143 {dimension_numbers = #tpu.dot_dimension_numbers<[1], [0], [0], [1], [0, 0, 1, 1], [], []>} : vector<1x32xf32>, vector<32x32xf32>, vector<1x32xf32> -> vector<1x32xf32>
    %cst_144 = arith.constant dense<0.000000e+00> : vector<1x32xf32>
    %516 = tpu.matmul %514, %279, %cst_144 {dimension_numbers = #tpu.dot_dimension_numbers<[1], [0], [0], [1], [0, 0, 1, 1], [], []>} : vector<1x32xf32>, vector<32x32xf32>, vector<1x32xf32> -> vector<1x32xf32>
    %517 = arith.addf %515, %516 : vector<1x32xf32>
    %518 = arith.addf %517, %280 : vector<1x32xf32>
    %519 = math.tanh %518 : vector<1x32xf32>
    %cst_145 = arith.constant dense<0.000000e+00> : vector<1x128xf32>
    %520 = tpu.matmul %519, %281, %cst_145 {dimension_numbers = #tpu.dot_dimension_numbers<[1], [0], [0], [1], [0, 0, 1, 1], [], []>} : vector<1x32xf32>, vector<32x128xf32>, vector<1x128xf32> -> vector<1x128xf32>
    %521 = arith.addf %520, %282 : vector<1x128xf32>
    %c3_146 = arith.constant 3 : index
    %c0_147 = arith.constant 0 : index
    %522 = vector.load %arg14[%c3_146, %c0_147] : memref<8x128xf32, #tpu.memory_space<vmem>>, vector<1x128xf32>
    %523 = arith.addf %521, %522 : vector<1x128xf32>
    %cst_148 = arith.constant dense<0xFF800000> : vector<1xf32>
    %524 = vector.multi_reduction <maximumf>, %523, %cst_148 [1] : vector<1x128xf32> to vector<1xf32>
    %525 = vector.shape_cast %524 : vector<1xf32> to vector<1x1xf32>
    %526 = vector.broadcast %525 : vector<1x1xf32> to vector<1x128xf32>
    %527 = arith.cmpf oge, %523, %526 : vector<1x128xf32>
    %c128_i32_149 = arith.constant 128 : i32
    %528 = vector.broadcast %c128_i32_149 : i32 to vector<1x128xi32>
    %529 = arith.select %527, %287, %528 : vector<1x128xi1>, vector<1x128xi32>
    %cst_150 = arith.constant dense<2147483647> : vector<1xi32>
    %530 = vector.multi_reduction <minsi>, %529, %cst_150 [1] : vector<1x128xi32> to vector<1xi32>
    %531 = vector.shape_cast %530 : vector<1xi32> to vector<1x1xi32>
    %c3_151 = arith.constant 3 : index
    %c0_152 = arith.constant 0 : index
    %532 = vector.load %arg15[%c3_151, %c0_152] : memref<8x1xi32, #tpu.memory_space<vmem>>, vector<1x1xi32>
    tpu.vector_store %arg15[%c3_151, %c0_152], %531 {strides = array<i32>} : memref<8x1xi32, #tpu.memory_space<vmem>>, vector<1x1xi32>,
    %533 = vector.broadcast %531 : vector<1x1xi32> to vector<1x64xi32>
    %534 = arith.cmpi eq, %286, %533 : vector<1x64xi32>
    %535 = arith.extui %534 : vector<1x64xi1> to vector<1x64xi32>
    %536 = arith.sitofp %535 : vector<1x64xi32> to vector<1x64xf32>
    %cst_153 = arith.constant dense<0.000000e+00> : vector<1x128xf32>
    %537 = tpu.matmul %536, %275, %cst_153 {dimension_numbers = #tpu.dot_dimension_numbers<[1], [0], [0], [1], [0, 0, 1, 1], [], []>} : vector<1x64xf32>, vector<64x128xf32>, vector<1x128xf32> -> vector<1x128xf32>
    %cst_154 = arith.constant dense<0.000000e+00> : vector<1x128xf32>
    %538 = tpu.matmul %501, %276, %cst_154 {dimension_numbers = #tpu.dot_dimension_numbers<[1], [0], [0], [1], [0, 0, 1, 1], [], []>} : vector<1x32xf32>, vector<32x128xf32>, vector<1x128xf32> -> vector<1x128xf32>
    %539 = arith.addf %537, %538 : vector<1x128xf32>
    %540 = arith.addf %539, %277 : vector<1x128xf32>
    %541 = vector.extract_strided_slice %540 {offsets = [0, 0], sizes = [1, 32], strides = [1, 1]} : vector<1x128xf32> to vector<1x32xf32>
    %542 = arith.negf %541 : vector<1x32xf32>
    %543 = math.exp %542 : vector<1x32xf32>
    %cst_155 = arith.constant 1.000000e+00 : f32
    %544 = vector.broadcast %cst_155 : f32 to vector<1x32xf32>
    %545 = arith.addf %544, %543 : vector<1x32xf32>
    %546 = arith.divf %544, %545 : vector<1x32xf32>
    %547 = vector.extract_strided_slice %540 {offsets = [0, 32], sizes = [1, 32], strides = [1, 1]} : vector<1x128xf32> to vector<1x32xf32>
    %548 = arith.negf %547 : vector<1x32xf32>
    %549 = math.exp %548 : vector<1x32xf32>
    %cst_156 = arith.constant 1.000000e+00 : f32
    %550 = vector.broadcast %cst_156 : f32 to vector<1x32xf32>
    %551 = arith.addf %550, %549 : vector<1x32xf32>
    %552 = arith.divf %550, %551 : vector<1x32xf32>
    %553 = vector.extract_strided_slice %540 {offsets = [0, 64], sizes = [1, 32], strides = [1, 1]} : vector<1x128xf32> to vector<1x32xf32>
    %554 = vector.extract_strided_slice %540 {offsets = [0, 96], sizes = [1, 32], strides = [1, 1]} : vector<1x128xf32> to vector<1x32xf32>
    %555 = arith.mulf %546, %554 : vector<1x32xf32>
    %556 = arith.addf %553, %555 : vector<1x32xf32>
    %557 = math.tanh %556 : vector<1x32xf32>
    %cst_157 = arith.constant 1.000000e+00 : f32
    %558 = vector.broadcast %cst_157 : f32 to vector<1x32xf32>
    %559 = arith.subf %558, %552 : vector<1x32xf32>
    %560 = arith.mulf %559, %557 : vector<1x32xf32>
    %561 = arith.mulf %552, %501 : vector<1x32xf32>
    %562 = arith.addf %560, %561 : vector<1x32xf32>
    %cst_158 = arith.constant dense<0.000000e+00> : vector<1x8xf32>
    %563 = tpu.matmul %562, %273, %cst_158 {dimension_numbers = #tpu.dot_dimension_numbers<[1], [1], [0], [0], [0, 0, 1, 0], [], []>} : vector<1x32xf32>, vector<8x32xf32>, vector<1x8xf32> -> vector<1x8xf32>
    %cst_159 = arith.constant -1.000000e+30 : f32
    %564 = vector.broadcast %cst_159 : f32 to vector<1x8xf32>
    %565 = arith.select %285, %563, %564 : vector<1x8xi1>, vector<1x8xf32>
    %cst_160 = arith.constant dense<0xFF800000> : vector<1xf32>
    %566 = vector.multi_reduction <maximumf>, %565, %cst_160 [1] : vector<1x8xf32> to vector<1xf32>
    %567 = vector.shape_cast %566 : vector<1xf32> to vector<1x1xf32>
    %568 = vector.broadcast %567 : vector<1x1xf32> to vector<1x8xf32>
    %569 = arith.subf %565, %568 : vector<1x8xf32>
    %570 = math.exp %569 : vector<1x8xf32>
    %cst_161 = arith.constant dense<0.000000e+00> : vector<1xf32>
    %571 = vector.multi_reduction <add>, %570, %cst_161 [1] : vector<1x8xf32> to vector<1xf32>
    %572 = vector.shape_cast %571 : vector<1xf32> to vector<1x1xf32>
    %573 = vector.broadcast %572 : vector<1x1xf32> to vector<1x8xf32>
    %574 = arith.divf %570, %573 : vector<1x8xf32>
    %cst_162 = arith.constant dense<0.000000e+00> : vector<1x32xf32>
    %575 = tpu.matmul %574, %273, %cst_162 {dimension_numbers = #tpu.dot_dimension_numbers<[1], [0], [0], [1], [0, 0, 1, 1], [], []>} : vector<1x8xf32>, vector<8x32xf32>, vector<1x32xf32> -> vector<1x32xf32>
    %cst_163 = arith.constant dense<0.000000e+00> : vector<1x32xf32>
    %576 = tpu.matmul %562, %278, %cst_163 {dimension_numbers = #tpu.dot_dimension_numbers<[1], [0], [0], [1], [0, 0, 1, 1], [], []>} : vector<1x32xf32>, vector<32x32xf32>, vector<1x32xf32> -> vector<1x32xf32>
    %cst_164 = arith.constant dense<0.000000e+00> : vector<1x32xf32>
    %577 = tpu.matmul %575, %279, %cst_164 {dimension_numbers = #tpu.dot_dimension_numbers<[1], [0], [0], [1], [0, 0, 1, 1], [], []>} : vector<1x32xf32>, vector<32x32xf32>, vector<1x32xf32> -> vector<1x32xf32>
    %578 = arith.addf %576, %577 : vector<1x32xf32>
    %579 = arith.addf %578, %280 : vector<1x32xf32>
    %580 = math.tanh %579 : vector<1x32xf32>
    %cst_165 = arith.constant dense<0.000000e+00> : vector<1x128xf32>
    %581 = tpu.matmul %580, %281, %cst_165 {dimension_numbers = #tpu.dot_dimension_numbers<[1], [0], [0], [1], [0, 0, 1, 1], [], []>} : vector<1x32xf32>, vector<32x128xf32>, vector<1x128xf32> -> vector<1x128xf32>
    %582 = arith.addf %581, %282 : vector<1x128xf32>
    %c4_166 = arith.constant 4 : index
    %c0_167 = arith.constant 0 : index
    %583 = vector.load %arg14[%c4_166, %c0_167] : memref<8x128xf32, #tpu.memory_space<vmem>>, vector<1x128xf32>
    %584 = arith.addf %582, %583 : vector<1x128xf32>
    %cst_168 = arith.constant dense<0xFF800000> : vector<1xf32>
    %585 = vector.multi_reduction <maximumf>, %584, %cst_168 [1] : vector<1x128xf32> to vector<1xf32>
    %586 = vector.shape_cast %585 : vector<1xf32> to vector<1x1xf32>
    %587 = vector.broadcast %586 : vector<1x1xf32> to vector<1x128xf32>
    %588 = arith.cmpf oge, %584, %587 : vector<1x128xf32>
    %c128_i32_169 = arith.constant 128 : i32
    %589 = vector.broadcast %c128_i32_169 : i32 to vector<1x128xi32>
    %590 = arith.select %588, %287, %589 : vector<1x128xi1>, vector<1x128xi32>
    %cst_170 = arith.constant dense<2147483647> : vector<1xi32>
    %591 = vector.multi_reduction <minsi>, %590, %cst_170 [1] : vector<1x128xi32> to vector<1xi32>
    %592 = vector.shape_cast %591 : vector<1xi32> to vector<1x1xi32>
    %c4_171 = arith.constant 4 : index
    %c0_172 = arith.constant 0 : index
    %593 = vector.load %arg15[%c4_171, %c0_172] : memref<8x1xi32, #tpu.memory_space<vmem>>, vector<1x1xi32>
    tpu.vector_store %arg15[%c4_171, %c0_172], %592 {strides = array<i32>} : memref<8x1xi32, #tpu.memory_space<vmem>>, vector<1x1xi32>,
    %594 = vector.broadcast %592 : vector<1x1xi32> to vector<1x64xi32>
    %595 = arith.cmpi eq, %286, %594 : vector<1x64xi32>
    %596 = arith.extui %595 : vector<1x64xi1> to vector<1x64xi32>
    %597 = arith.sitofp %596 : vector<1x64xi32> to vector<1x64xf32>
    %cst_173 = arith.constant dense<0.000000e+00> : vector<1x128xf32>
    %598 = tpu.matmul %597, %275, %cst_173 {dimension_numbers = #tpu.dot_dimension_numbers<[1], [0], [0], [1], [0, 0, 1, 1], [], []>} : vector<1x64xf32>, vector<64x128xf32>, vector<1x128xf32> -> vector<1x128xf32>
    %cst_174 = arith.constant dense<0.000000e+00> : vector<1x128xf32>
    %599 = tpu.matmul %562, %276, %cst_174 {dimension_numbers = #tpu.dot_dimension_numbers<[1], [0], [0], [1], [0, 0, 1, 1], [], []>} : vector<1x32xf32>, vector<32x128xf32>, vector<1x128xf32> -> vector<1x128xf32>
    %600 = arith.addf %598, %599 : vector<1x128xf32>
    %601 = arith.addf %600, %277 : vector<1x128xf32>
    %602 = vector.extract_strided_slice %601 {offsets = [0, 0], sizes = [1, 32], strides = [1, 1]} : vector<1x128xf32> to vector<1x32xf32>
    %603 = arith.negf %602 : vector<1x32xf32>
    %604 = math.exp %603 : vector<1x32xf32>
    %cst_175 = arith.constant 1.000000e+00 : f32
    %605 = vector.broadcast %cst_175 : f32 to vector<1x32xf32>
    %606 = arith.addf %605, %604 : vector<1x32xf32>
    %607 = arith.divf %605, %606 : vector<1x32xf32>
    %608 = vector.extract_strided_slice %601 {offsets = [0, 32], sizes = [1, 32], strides = [1, 1]} : vector<1x128xf32> to vector<1x32xf32>
    %609 = arith.negf %608 : vector<1x32xf32>
    %610 = math.exp %609 : vector<1x32xf32>
    %cst_176 = arith.constant 1.000000e+00 : f32
    %611 = vector.broadcast %cst_176 : f32 to vector<1x32xf32>
    %612 = arith.addf %611, %610 : vector<1x32xf32>
    %613 = arith.divf %611, %612 : vector<1x32xf32>
    %614 = vector.extract_strided_slice %601 {offsets = [0, 64], sizes = [1, 32], strides = [1, 1]} : vector<1x128xf32> to vector<1x32xf32>
    %615 = vector.extract_strided_slice %601 {offsets = [0, 96], sizes = [1, 32], strides = [1, 1]} : vector<1x128xf32> to vector<1x32xf32>
    %616 = arith.mulf %607, %615 : vector<1x32xf32>
    %617 = arith.addf %614, %616 : vector<1x32xf32>
    %618 = math.tanh %617 : vector<1x32xf32>
    %cst_177 = arith.constant 1.000000e+00 : f32
    %619 = vector.broadcast %cst_177 : f32 to vector<1x32xf32>
    %620 = arith.subf %619, %613 : vector<1x32xf32>
    %621 = arith.mulf %620, %618 : vector<1x32xf32>
    %622 = arith.mulf %613, %562 : vector<1x32xf32>
    %623 = arith.addf %621, %622 : vector<1x32xf32>
    %cst_178 = arith.constant dense<0.000000e+00> : vector<1x8xf32>
    %624 = tpu.matmul %623, %273, %cst_178 {dimension_numbers = #tpu.dot_dimension_numbers<[1], [1], [0], [0], [0, 0, 1, 0], [], []>} : vector<1x32xf32>, vector<8x32xf32>, vector<1x8xf32> -> vector<1x8xf32>
    %cst_179 = arith.constant -1.000000e+30 : f32
    %625 = vector.broadcast %cst_179 : f32 to vector<1x8xf32>
    %626 = arith.select %285, %624, %625 : vector<1x8xi1>, vector<1x8xf32>
    %cst_180 = arith.constant dense<0xFF800000> : vector<1xf32>
    %627 = vector.multi_reduction <maximumf>, %626, %cst_180 [1] : vector<1x8xf32> to vector<1xf32>
    %628 = vector.shape_cast %627 : vector<1xf32> to vector<1x1xf32>
    %629 = vector.broadcast %628 : vector<1x1xf32> to vector<1x8xf32>
    %630 = arith.subf %626, %629 : vector<1x8xf32>
    %631 = math.exp %630 : vector<1x8xf32>
    %cst_181 = arith.constant dense<0.000000e+00> : vector<1xf32>
    %632 = vector.multi_reduction <add>, %631, %cst_181 [1] : vector<1x8xf32> to vector<1xf32>
    %633 = vector.shape_cast %632 : vector<1xf32> to vector<1x1xf32>
    %634 = vector.broadcast %633 : vector<1x1xf32> to vector<1x8xf32>
    %635 = arith.divf %631, %634 : vector<1x8xf32>
    %cst_182 = arith.constant dense<0.000000e+00> : vector<1x32xf32>
    %636 = tpu.matmul %635, %273, %cst_182 {dimension_numbers = #tpu.dot_dimension_numbers<[1], [0], [0], [1], [0, 0, 1, 1], [], []>} : vector<1x8xf32>, vector<8x32xf32>, vector<1x32xf32> -> vector<1x32xf32>
    %cst_183 = arith.constant dense<0.000000e+00> : vector<1x32xf32>
    %637 = tpu.matmul %623, %278, %cst_183 {dimension_numbers = #tpu.dot_dimension_numbers<[1], [0], [0], [1], [0, 0, 1, 1], [], []>} : vector<1x32xf32>, vector<32x32xf32>, vector<1x32xf32> -> vector<1x32xf32>
    %cst_184 = arith.constant dense<0.000000e+00> : vector<1x32xf32>
    %638 = tpu.matmul %636, %279, %cst_184 {dimension_numbers = #tpu.dot_dimension_numbers<[1], [0], [0], [1], [0, 0, 1, 1], [], []>} : vector<1x32xf32>, vector<32x32xf32>, vector<1x32xf32> -> vector<1x32xf32>
    %639 = arith.addf %637, %638 : vector<1x32xf32>
    %640 = arith.addf %639, %280 : vector<1x32xf32>
    %641 = math.tanh %640 : vector<1x32xf32>
    %cst_185 = arith.constant dense<0.000000e+00> : vector<1x128xf32>
    %642 = tpu.matmul %641, %281, %cst_185 {dimension_numbers = #tpu.dot_dimension_numbers<[1], [0], [0], [1], [0, 0, 1, 1], [], []>} : vector<1x32xf32>, vector<32x128xf32>, vector<1x128xf32> -> vector<1x128xf32>
    %643 = arith.addf %642, %282 : vector<1x128xf32>
    %c5_186 = arith.constant 5 : index
    %c0_187 = arith.constant 0 : index
    %644 = vector.load %arg14[%c5_186, %c0_187] : memref<8x128xf32, #tpu.memory_space<vmem>>, vector<1x128xf32>
    %645 = arith.addf %643, %644 : vector<1x128xf32>
    %cst_188 = arith.constant dense<0xFF800000> : vector<1xf32>
    %646 = vector.multi_reduction <maximumf>, %645, %cst_188 [1] : vector<1x128xf32> to vector<1xf32>
    %647 = vector.shape_cast %646 : vector<1xf32> to vector<1x1xf32>
    %648 = vector.broadcast %647 : vector<1x1xf32> to vector<1x128xf32>
    %649 = arith.cmpf oge, %645, %648 : vector<1x128xf32>
    %c128_i32_189 = arith.constant 128 : i32
    %650 = vector.broadcast %c128_i32_189 : i32 to vector<1x128xi32>
    %651 = arith.select %649, %287, %650 : vector<1x128xi1>, vector<1x128xi32>
    %cst_190 = arith.constant dense<2147483647> : vector<1xi32>
    %652 = vector.multi_reduction <minsi>, %651, %cst_190 [1] : vector<1x128xi32> to vector<1xi32>
    %653 = vector.shape_cast %652 : vector<1xi32> to vector<1x1xi32>
    %c5_191 = arith.constant 5 : index
    %c0_192 = arith.constant 0 : index
    %654 = vector.load %arg15[%c5_191, %c0_192] : memref<8x1xi32, #tpu.memory_space<vmem>>, vector<1x1xi32>
    tpu.vector_store %arg15[%c5_191, %c0_192], %653 {strides = array<i32>} : memref<8x1xi32, #tpu.memory_space<vmem>>, vector<1x1xi32>,
    %655 = vector.broadcast %653 : vector<1x1xi32> to vector<1x64xi32>
    %656 = arith.cmpi eq, %286, %655 : vector<1x64xi32>
    %657 = arith.extui %656 : vector<1x64xi1> to vector<1x64xi32>
    %658 = arith.sitofp %657 : vector<1x64xi32> to vector<1x64xf32>
    %cst_193 = arith.constant dense<0.000000e+00> : vector<1x128xf32>
    %659 = tpu.matmul %658, %275, %cst_193 {dimension_numbers = #tpu.dot_dimension_numbers<[1], [0], [0], [1], [0, 0, 1, 1], [], []>} : vector<1x64xf32>, vector<64x128xf32>, vector<1x128xf32> -> vector<1x128xf32>
    %cst_194 = arith.constant dense<0.000000e+00> : vector<1x128xf32>
    %660 = tpu.matmul %623, %276, %cst_194 {dimension_numbers = #tpu.dot_dimension_numbers<[1], [0], [0], [1], [0, 0, 1, 1], [], []>} : vector<1x32xf32>, vector<32x128xf32>, vector<1x128xf32> -> vector<1x128xf32>
    %661 = arith.addf %659, %660 : vector<1x128xf32>
    %662 = arith.addf %661, %277 : vector<1x128xf32>
    %663 = vector.extract_strided_slice %662 {offsets = [0, 0], sizes = [1, 32], strides = [1, 1]} : vector<1x128xf32> to vector<1x32xf32>
    %664 = arith.negf %663 : vector<1x32xf32>
    %665 = math.exp %664 : vector<1x32xf32>
    %cst_195 = arith.constant 1.000000e+00 : f32
    %666 = vector.broadcast %cst_195 : f32 to vector<1x32xf32>
    %667 = arith.addf %666, %665 : vector<1x32xf32>
    %668 = arith.divf %666, %667 : vector<1x32xf32>
    %669 = vector.extract_strided_slice %662 {offsets = [0, 32], sizes = [1, 32], strides = [1, 1]} : vector<1x128xf32> to vector<1x32xf32>
    %670 = arith.negf %669 : vector<1x32xf32>
    %671 = math.exp %670 : vector<1x32xf32>
    %cst_196 = arith.constant 1.000000e+00 : f32
    %672 = vector.broadcast %cst_196 : f32 to vector<1x32xf32>
    %673 = arith.addf %672, %671 : vector<1x32xf32>
    %674 = arith.divf %672, %673 : vector<1x32xf32>
    %675 = vector.extract_strided_slice %662 {offsets = [0, 64], sizes = [1, 32], strides = [1, 1]} : vector<1x128xf32> to vector<1x32xf32>
    %676 = vector.extract_strided_slice %662 {offsets = [0, 96], sizes = [1, 32], strides = [1, 1]} : vector<1x128xf32> to vector<1x32xf32>
    %677 = arith.mulf %668, %676 : vector<1x32xf32>
    %678 = arith.addf %675, %677 : vector<1x32xf32>
    %679 = math.tanh %678 : vector<1x32xf32>
    %cst_197 = arith.constant 1.000000e+00 : f32
    %680 = vector.broadcast %cst_197 : f32 to vector<1x32xf32>
    %681 = arith.subf %680, %674 : vector<1x32xf32>
    %682 = arith.mulf %681, %679 : vector<1x32xf32>
    %683 = arith.mulf %674, %623 : vector<1x32xf32>
    %684 = arith.addf %682, %683 : vector<1x32xf32>
    %cst_198 = arith.constant dense<0.000000e+00> : vector<1x8xf32>
    %685 = tpu.matmul %684, %273, %cst_198 {dimension_numbers = #tpu.dot_dimension_numbers<[1], [1], [0], [0], [0, 0, 1, 0], [], []>} : vector<1x32xf32>, vector<8x32xf32>, vector<1x8xf32> -> vector<1x8xf32>
    %cst_199 = arith.constant -1.000000e+30 : f32
    %686 = vector.broadcast %cst_199 : f32 to vector<1x8xf32>
    %687 = arith.select %285, %685, %686 : vector<1x8xi1>, vector<1x8xf32>
    %cst_200 = arith.constant dense<0xFF800000> : vector<1xf32>
    %688 = vector.multi_reduction <maximumf>, %687, %cst_200 [1] : vector<1x8xf32> to vector<1xf32>
    %689 = vector.shape_cast %688 : vector<1xf32> to vector<1x1xf32>
    %690 = vector.broadcast %689 : vector<1x1xf32> to vector<1x8xf32>
    %691 = arith.subf %687, %690 : vector<1x8xf32>
    %692 = math.exp %691 : vector<1x8xf32>
    %cst_201 = arith.constant dense<0.000000e+00> : vector<1xf32>
    %693 = vector.multi_reduction <add>, %692, %cst_201 [1] : vector<1x8xf32> to vector<1xf32>
    %694 = vector.shape_cast %693 : vector<1xf32> to vector<1x1xf32>
    %695 = vector.broadcast %694 : vector<1x1xf32> to vector<1x8xf32>
    %696 = arith.divf %692, %695 : vector<1x8xf32>
    %cst_202 = arith.constant dense<0.000000e+00> : vector<1x32xf32>
    %697 = tpu.matmul %696, %273, %cst_202 {dimension_numbers = #tpu.dot_dimension_numbers<[1], [0], [0], [1], [0, 0, 1, 1], [], []>} : vector<1x8xf32>, vector<8x32xf32>, vector<1x32xf32> -> vector<1x32xf32>
    %cst_203 = arith.constant dense<0.000000e+00> : vector<1x32xf32>
    %698 = tpu.matmul %684, %278, %cst_203 {dimension_numbers = #tpu.dot_dimension_numbers<[1], [0], [0], [1], [0, 0, 1, 1], [], []>} : vector<1x32xf32>, vector<32x32xf32>, vector<1x32xf32> -> vector<1x32xf32>
    %cst_204 = arith.constant dense<0.000000e+00> : vector<1x32xf32>
    %699 = tpu.matmul %697, %279, %cst_204 {dimension_numbers = #tpu.dot_dimension_numbers<[1], [0], [0], [1], [0, 0, 1, 1], [], []>} : vector<1x32xf32>, vector<32x32xf32>, vector<1x32xf32> -> vector<1x32xf32>
    %700 = arith.addf %698, %699 : vector<1x32xf32>
    %701 = arith.addf %700, %280 : vector<1x32xf32>
    %702 = math.tanh %701 : vector<1x32xf32>
    %cst_205 = arith.constant dense<0.000000e+00> : vector<1x128xf32>
    %703 = tpu.matmul %702, %281, %cst_205 {dimension_numbers = #tpu.dot_dimension_numbers<[1], [0], [0], [1], [0, 0, 1, 1], [], []>} : vector<1x32xf32>, vector<32x128xf32>, vector<1x128xf32> -> vector<1x128xf32>
    %704 = arith.addf %703, %282 : vector<1x128xf32>
    %c6_206 = arith.constant 6 : index
    %c0_207 = arith.constant 0 : index
    %705 = vector.load %arg14[%c6_206, %c0_207] : memref<8x128xf32, #tpu.memory_space<vmem>>, vector<1x128xf32>
    %706 = arith.addf %704, %705 : vector<1x128xf32>
    %cst_208 = arith.constant dense<0xFF800000> : vector<1xf32>
    %707 = vector.multi_reduction <maximumf>, %706, %cst_208 [1] : vector<1x128xf32> to vector<1xf32>
    %708 = vector.shape_cast %707 : vector<1xf32> to vector<1x1xf32>
    %709 = vector.broadcast %708 : vector<1x1xf32> to vector<1x128xf32>
    %710 = arith.cmpf oge, %706, %709 : vector<1x128xf32>
    %c128_i32_209 = arith.constant 128 : i32
    %711 = vector.broadcast %c128_i32_209 : i32 to vector<1x128xi32>
    %712 = arith.select %710, %287, %711 : vector<1x128xi1>, vector<1x128xi32>
    %cst_210 = arith.constant dense<2147483647> : vector<1xi32>
    %713 = vector.multi_reduction <minsi>, %712, %cst_210 [1] : vector<1x128xi32> to vector<1xi32>
    %714 = vector.shape_cast %713 : vector<1xi32> to vector<1x1xi32>
    %c6_211 = arith.constant 6 : index
    %c0_212 = arith.constant 0 : index
    %715 = vector.load %arg15[%c6_211, %c0_212] : memref<8x1xi32, #tpu.memory_space<vmem>>, vector<1x1xi32>
    tpu.vector_store %arg15[%c6_211, %c0_212], %714 {strides = array<i32>} : memref<8x1xi32, #tpu.memory_space<vmem>>, vector<1x1xi32>,
    %716 = vector.broadcast %714 : vector<1x1xi32> to vector<1x64xi32>
    %717 = arith.cmpi eq, %286, %716 : vector<1x64xi32>
    %718 = arith.extui %717 : vector<1x64xi1> to vector<1x64xi32>
    %719 = arith.sitofp %718 : vector<1x64xi32> to vector<1x64xf32>
    %cst_213 = arith.constant dense<0.000000e+00> : vector<1x128xf32>
    %720 = tpu.matmul %719, %275, %cst_213 {dimension_numbers = #tpu.dot_dimension_numbers<[1], [0], [0], [1], [0, 0, 1, 1], [], []>} : vector<1x64xf32>, vector<64x128xf32>, vector<1x128xf32> -> vector<1x128xf32>
    %cst_214 = arith.constant dense<0.000000e+00> : vector<1x128xf32>
    %721 = tpu.matmul %684, %276, %cst_214 {dimension_numbers = #tpu.dot_dimension_numbers<[1], [0], [0], [1], [0, 0, 1, 1], [], []>} : vector<1x32xf32>, vector<32x128xf32>, vector<1x128xf32> -> vector<1x128xf32>
    %722 = arith.addf %720, %721 : vector<1x128xf32>
    %723 = arith.addf %722, %277 : vector<1x128xf32>
    %724 = vector.extract_strided_slice %723 {offsets = [0, 0], sizes = [1, 32], strides = [1, 1]} : vector<1x128xf32> to vector<1x32xf32>
    %725 = arith.negf %724 : vector<1x32xf32>
    %726 = math.exp %725 : vector<1x32xf32>
    %cst_215 = arith.constant 1.000000e+00 : f32
    %727 = vector.broadcast %cst_215 : f32 to vector<1x32xf32>
    %728 = arith.addf %727, %726 : vector<1x32xf32>
    %729 = arith.divf %727, %728 : vector<1x32xf32>
    %730 = vector.extract_strided_slice %723 {offsets = [0, 32], sizes = [1, 32], strides = [1, 1]} : vector<1x128xf32> to vector<1x32xf32>
    %731 = arith.negf %730 : vector<1x32xf32>
    %732 = math.exp %731 : vector<1x32xf32>
    %cst_216 = arith.constant 1.000000e+00 : f32
    %733 = vector.broadcast %cst_216 : f32 to vector<1x32xf32>
    %734 = arith.addf %733, %732 : vector<1x32xf32>
    %735 = arith.divf %733, %734 : vector<1x32xf32>
    %736 = vector.extract_strided_slice %723 {offsets = [0, 64], sizes = [1, 32], strides = [1, 1]} : vector<1x128xf32> to vector<1x32xf32>
    %737 = vector.extract_strided_slice %723 {offsets = [0, 96], sizes = [1, 32], strides = [1, 1]} : vector<1x128xf32> to vector<1x32xf32>
    %738 = arith.mulf %729, %737 : vector<1x32xf32>
    %739 = arith.addf %736, %738 : vector<1x32xf32>
    %740 = math.tanh %739 : vector<1x32xf32>
    %cst_217 = arith.constant 1.000000e+00 : f32
    %741 = vector.broadcast %cst_217 : f32 to vector<1x32xf32>
    %742 = arith.subf %741, %735 : vector<1x32xf32>
    %743 = arith.mulf %742, %740 : vector<1x32xf32>
    %744 = arith.mulf %735, %684 : vector<1x32xf32>
    %745 = arith.addf %743, %744 : vector<1x32xf32>
    %cst_218 = arith.constant dense<0.000000e+00> : vector<1x8xf32>
    %746 = tpu.matmul %745, %273, %cst_218 {dimension_numbers = #tpu.dot_dimension_numbers<[1], [1], [0], [0], [0, 0, 1, 0], [], []>} : vector<1x32xf32>, vector<8x32xf32>, vector<1x8xf32> -> vector<1x8xf32>
    %cst_219 = arith.constant -1.000000e+30 : f32
    %747 = vector.broadcast %cst_219 : f32 to vector<1x8xf32>
    %748 = arith.select %285, %746, %747 : vector<1x8xi1>, vector<1x8xf32>
    %cst_220 = arith.constant dense<0xFF800000> : vector<1xf32>
    %749 = vector.multi_reduction <maximumf>, %748, %cst_220 [1] : vector<1x8xf32> to vector<1xf32>
    %750 = vector.shape_cast %749 : vector<1xf32> to vector<1x1xf32>
    %751 = vector.broadcast %750 : vector<1x1xf32> to vector<1x8xf32>
    %752 = arith.subf %748, %751 : vector<1x8xf32>
    %753 = math.exp %752 : vector<1x8xf32>
    %cst_221 = arith.constant dense<0.000000e+00> : vector<1xf32>
    %754 = vector.multi_reduction <add>, %753, %cst_221 [1] : vector<1x8xf32> to vector<1xf32>
    %755 = vector.shape_cast %754 : vector<1xf32> to vector<1x1xf32>
    %756 = vector.broadcast %755 : vector<1x1xf32> to vector<1x8xf32>
    %757 = arith.divf %753, %756 : vector<1x8xf32>
    %cst_222 = arith.constant dense<0.000000e+00> : vector<1x32xf32>
    %758 = tpu.matmul %757, %273, %cst_222 {dimension_numbers = #tpu.dot_dimension_numbers<[1], [0], [0], [1], [0, 0, 1, 1], [], []>} : vector<1x8xf32>, vector<8x32xf32>, vector<1x32xf32> -> vector<1x32xf32>
    %cst_223 = arith.constant dense<0.000000e+00> : vector<1x32xf32>
    %759 = tpu.matmul %745, %278, %cst_223 {dimension_numbers = #tpu.dot_dimension_numbers<[1], [0], [0], [1], [0, 0, 1, 1], [], []>} : vector<1x32xf32>, vector<32x32xf32>, vector<1x32xf32> -> vector<1x32xf32>
    %cst_224 = arith.constant dense<0.000000e+00> : vector<1x32xf32>
    %760 = tpu.matmul %758, %279, %cst_224 {dimension_numbers = #tpu.dot_dimension_numbers<[1], [0], [0], [1], [0, 0, 1, 1], [], []>} : vector<1x32xf32>, vector<32x32xf32>, vector<1x32xf32> -> vector<1x32xf32>
    %761 = arith.addf %759, %760 : vector<1x32xf32>
    %762 = arith.addf %761, %280 : vector<1x32xf32>
    %763 = math.tanh %762 : vector<1x32xf32>
    %cst_225 = arith.constant dense<0.000000e+00> : vector<1x128xf32>
    %764 = tpu.matmul %763, %281, %cst_225 {dimension_numbers = #tpu.dot_dimension_numbers<[1], [0], [0], [1], [0, 0, 1, 1], [], []>} : vector<1x32xf32>, vector<32x128xf32>, vector<1x128xf32> -> vector<1x128xf32>
    %765 = arith.addf %764, %282 : vector<1x128xf32>
    %c7_226 = arith.constant 7 : index
    %c0_227 = arith.constant 0 : index
    %766 = vector.load %arg14[%c7_226, %c0_227] : memref<8x128xf32, #tpu.memory_space<vmem>>, vector<1x128xf32>
    %767 = arith.addf %765, %766 : vector<1x128xf32>
    %cst_228 = arith.constant dense<0xFF800000> : vector<1xf32>
    %768 = vector.multi_reduction <maximumf>, %767, %cst_228 [1] : vector<1x128xf32> to vector<1xf32>
    %769 = vector.shape_cast %768 : vector<1xf32> to vector<1x1xf32>
    %770 = vector.broadcast %769 : vector<1x1xf32> to vector<1x128xf32>
    %771 = arith.cmpf oge, %767, %770 : vector<1x128xf32>
    %c128_i32_229 = arith.constant 128 : i32
    %772 = vector.broadcast %c128_i32_229 : i32 to vector<1x128xi32>
    %773 = arith.select %771, %287, %772 : vector<1x128xi1>, vector<1x128xi32>
    %cst_230 = arith.constant dense<2147483647> : vector<1xi32>
    %774 = vector.multi_reduction <minsi>, %773, %cst_230 [1] : vector<1x128xi32> to vector<1xi32>
    %775 = vector.shape_cast %774 : vector<1xi32> to vector<1x1xi32>
    %c7_231 = arith.constant 7 : index
    %c0_232 = arith.constant 0 : index
    %776 = vector.load %arg15[%c7_231, %c0_232] : memref<8x1xi32, #tpu.memory_space<vmem>>, vector<1x1xi32>
    tpu.vector_store %arg15[%c7_231, %c0_232], %775 {strides = array<i32>} : memref<8x1xi32, #tpu.memory_space<vmem>>, vector<1x1xi32>,
    return
  }
}

</mosaic_0001>

<bundles_post_ra>
// kernel: _device_forward.1
= control target key start
LH: loop header
LB: loop body
LE: loop exit
PB: predicated region body
PF: predicated region fallthrough
CT: control target
= control target key end

     0   :  { %s8556_s0 = inlined_call_operand.<no memory space> [shape: s32[1], index: 0, kind: input, shape index: {}]   ;;  %s8557_s1 = inlined_call_operand.vmem [shape: f32[8,32], index: 1, kind: input, shape index: {}]   ;;  %s8558_s2 = inlined_call_operand.vmem [shape: f32[32,96], index: 2, kind: input, shape index: {}]   ;;  %s8559_s3 = inlined_call_operand.vmem [shape: f32[32,96], index: 3, kind: input, shape index: {}]   ;;  %s8560_s4 = inlined_call_operand.vmem [shape: f32[1,96], index: 4, kind: input, shape index: {}]   ;;  %s8561_s5 = inlined_call_operand.vmem [shape: f32[1,96], index: 5, kind: input, shape index: {}]   ;;  %s8562_s6 = inlined_call_operand.vmem [shape: f32[64,128], index: 6, kind: input, shape index: {}]   ;;  %s8563_s7 = inlined_call_operand.vmem [shape: f32[32,128], index: 7, kind: input, shape index: {}]   ;;  %s8564_s8 = inlined_call_operand.vmem [shape: f32[1,128], index: 8, kind: input, shape index: {}]   ;;  %s8565_s9 = inlined_call_operand.vmem [shape: f32[32,32], index: 9, kind: input, shape index: {}]   ;;  %s8566_s10 = inlined_call_operand.vmem [shape: f32[32,32], index: 10, kind: input, shape index: {}]   ;;  %s8567_s11 = inlined_call_operand.vmem [shape: f32[1,32], index: 11, kind: input, shape index: {}]   ;;  %s8568_s12 = inlined_call_operand.hbm [shape: f32[32,128], index: 12, kind: input, shape index: {}]   ;;  %s8569_s13 = inlined_call_operand.vmem [shape: f32[1,128], index: 13, kind: input, shape index: {}]   ;;  %s8570_s14 = inlined_call_operand.vmem [shape: f32[8,128], index: 14, kind: input, shape index: {}]   ;;  %s8571_s15 = inlined_call_operand.vmem [shape: s32[8,1], index: 15, kind: output, shape index: {0}]   ;;  %s8572_s16 = inlined_call_operand.hbm [shape: f32[8,32], index: 16, kind: output, shape index: {1}]  }
   0x1   :  { %8574 = sst [smem:[#allocation9_spill]] %s8556_s0 }
   0x2   :  { %23 = vsyncpa [#allocation4], 0 }
   0x3   :  { %24 = vsyncpa [#allocation5], 0  ;;  %s7071_s21 = smov [#allocation3]  }
   0x4   :  { %s54_s22 = sshll.u32 %s7071_s21, 4  ;;  %s55_s22 = int_to_ptr.vmem [resolvable:$true] %s54_s22 }
   0x5   :  { %s7035_s23 = scalar_lea.vmem %s55_s22, 512  ;;  %p7040_p1 = scmp.lt.s32.totalorder %s55_s22, %s55_s22 }
   0x6   :  { %p7036_p0 = scmp.ne.s32.totalorder %s55_s22, %s7035_s23  ;;  %p7041_p2 = scmp.lt.s32.totalorder %s7035_s23, %s7035_s23 }
   0x8   :  { %p7042_p3 = por %p7041_p2, %p7040_p1 }
   0xa   :  { %p7043_p4 = pnand %p7042_p3, %p7036_p0 }
   0xc   :  { %7046 = shalt.err (!%p7043_p4)
}
   0xd   :  { %s7072_s24 = smov 128   ;;  %s7073_s25 = smov 8  }
   0xe   :  { %60 = dma.hbm_to_vmem [thread:$0]  %s8568_s12, 512, %s55_s22, [#allocation4], %s7072_s24, %s7072_s24, %s7073_s25  }
   0xf   :  { %7067 = dma.done.wait [#allocation4], 512  }
  0x10   :  { %7068 = vsyncadd [#allocation4], 4294966784  ;;  %v7074_v0 = vmov 0.0   ;;  %vm7075_vm0 = vmmov 0   ;;  %v73_v1 = vld [vmem:[%s8558_s2 + $0x18] sm:$0xff]  ;;  %v72_v3 = vld [vmem:[%s8558_s2 + $0x10] sm:$0xff] }
  0x11   :  { %6159 = vmatprep.subr.mxu0 %v7074_v0  ;;  %6170 = vmatprep.subr.mxu1 %v7074_v0  ;;  %v7180_v2 = vld [vmem:[%s8559_s3 + $0x18] sm:$0xff]  ;;  %v7189_v4 = vld [vmem:[%s8559_s3 + $0x10] sm:$0xff]  ;;  %v71_v5 = vld [vmem:[%s8558_s2 + $0x8] sm:$0xff]  ;;  %vm81_vm1 = vcmask 261120   ;;  %s8575_s17 = sld [smem:[#allocation9_spill]]  ;;  %vm1206_vm10 = vcmask 523264  }
  0x12   :  { %6167 = vmatprep.mubr.msk.f32.mxu0 %vm7075_vm0, %v7074_v0  ;;  %6178 = vmatprep.mubr.msk.f32.mxu1 %vm7075_vm0, %v7074_v0  ;;  %v7199_v6 = vld [vmem:[%s8559_s3 + $0x8] sm:$0xff]  ;;  %v70_v7 = vld [vmem:[%s8558_s2] sm:$0xff]  ;;  %vm263_vm12 = vcmask 253952   ;;  %vm496_vm13 = vcmask 256002   ;;  %vm730_vm14 = vcmask 258052   ;;  %vm964_vm15 = vcmask 260102  }
  0x13   :  { %6160 = vmatpush3.msra.mxu0 %v73_v1  ;;  %6171 = vmatpush3.msra.mxu1 %v7180_v2  ;;  %v7210_v8 = vld [vmem:[%s8559_s3] sm:$0xff]  ;;  %s7076_s3 = smov 64  }
  0x14   :  { %6161 = vmatprep.subr.mxu0 %v7074_v0  ;;  %6172 = vmatprep.subr.mxu1 %v7074_v0  ;;  %v69_v9 = vld [vmem:[%s8557_s1] sm:$0xff] }
  0x15   :  { %6162 = vmatpush3.msra.mxu0 %v72_v3  ;;  %6173 = vmatpush3.msra.mxu1 %v7189_v4  ;;  %v7246_v10 = vld [vmem:[%s8561_s5] sm:$0x1] }
  0x16   :  { %6163 = vmatprep.subr.mxu0 %v7074_v0  ;;  %6174 = vmatprep.subr.mxu1 %v7074_v0  ;;  %v5745_v16 = vld [vmem:[%s8560_s4] ss:$0 sm:$0xff]  ;;  %s7077_s4 = smov 96  }
  0x17   :  { %6164 = vmatpush3.msra.mxu0 %v71_v5  ;;  %6175 = vmatpush3.msra.mxu1 %v7199_v6  ;;  %p265_p5 = scmp.gt.s32.totalorder %s8575_s17, 0  ;;  %p381_p6 = scmp.gt.s32.totalorder %s8575_s17, 1 }
  0x18   :  { %6165 = vmatprep.subr.mxu0 %v7074_v0  ;;  %6176 = vmatprep.subr.mxu1 %v7074_v0  ;;  %p498_p7 = scmp.gt.s32.totalorder %s8575_s17, 2  ;;  %p615_p8 = scmp.gt.s32.totalorder %s8575_s17, 3 }
  0x19   :  { %6166 = vmatpush3.msra.mxu0 %v70_v7  ;;  %6177 = vmatpush3.msra.mxu1 %v7210_v8  ;;  %s266_s18 = scalar_select %p265_p5, 1, 0 }
  0x1a   :  { %6168 = vmatmul.mubr.msk.f32.vlgmr.msra.gmra.mxu0 %vm81_vm1, %v69_v9  ;;  %6179 = vmatmul.mubr.f32.vlgmr.msra.gmra.mxu1 %v7074_v0  ;;  %s382_s21 = scalar_select %p381_p6, 1, 0 }
  0x1b   :  { %6181 = vmatprep.subr.mxu0 %v7074_v0  ;;  %6189 = vmatprep.mubr.msk.f32.mxu0 %vm7075_vm0, %v7074_v0  ;;  %v267_v29 = vstv %s266_s18  ;;  %s499_s24 = scalar_select %p498_p7, 1, 0 }
  0x1c   :  { %6182 = vmatpush3.msra.mxu0 %v7180_v2  ;;  %6192 = vmatprep.subr.mxu1 %v7074_v0  ;;  %vm268_vm2 = vcmp.eq.s32.totalorder %v267_v29, 1  ;;  %v383_v52 = vstv %s382_s21  ;;  %s616_s27 = scalar_select %p615_p8, 1, 0 }
  0x1d   :  { %6183 = vmatprep.subr.mxu0 %v7074_v0  ;;  %6193 = vmatpush3.msra.mxu1 %v7180_v2  ;;  %vm384_vm3 = vcmp.eq.s32.totalorder %v383_v52, 1  ;;  %p732_p9 = scmp.gt.s32.totalorder %s8575_s17, 4  ;;  %p849_p10 = scmp.gt.s32.totalorder %s8575_s17, 5 }
  0x1e   :  { %6184 = vmatpush3.msra.mxu0 %v7189_v4  ;;  %6194 = vmatprep.subr.mxu1 %v7074_v0  ;;  %p966_p11 = scmp.gt.s32.totalorder %s8575_s17, 6  ;;  %p1083_p12 = scmp.gt.s32.totalorder %s8575_s17, 7 }
  0x1f   :  { %6185 = vmatprep.subr.mxu0 %v7074_v0  ;;  %6195 = vmatpush3.msra.mxu1 %v7189_v4  ;;  %s733_s1 = scalar_select %p732_p9, 1, 0 }
  0x20   :  { %6186 = vmatpush3.msra.mxu0 %v7199_v6  ;;  %6196 = vmatprep.subr.mxu1 %v7074_v0  ;;  %s850_s12 = scalar_select %p849_p10, 1, 0 }
  0x21   :  { %6187 = vmatprep.subr.mxu0 %v7074_v0  ;;  %6197 = vmatpush3.msra.mxu1 %v7199_v6  ;;  %s967_s18 = scalar_select %p966_p11, 1, 0 }
  0x22   :  { %6188 = vmatpush3.msra.mxu0 %v7210_v8  ;;  %6198 = vmatprep.subr.mxu1 %v7074_v0 }
  0x23   :  { %6199 = vmatpush3.msra.mxu1 %v7210_v8  ;;  %6200 = vmatprep.mubr.msk.f32.mxu1 %vm7075_vm0, %v7074_v0 }
  0x24   :  { %6203 = vmatprep.subr.mxu0 %v7074_v0  ;;  %6214 = vmatprep.subr.mxu1 %v7074_v0 }
  0xda   :  { %v151_v11 = vpop.f32.mrf.mxu0  ;;  %v229_v12 = vpop.f32.mrf.mxu1 }
  0xdb   :  { %v230_v13 = vadd.f32 %v229_v12, %v7246_v10  ;;  %v7253_v17 = vadd.f32 %v5745_v16, %v151_v11 }
  0xdc   :  { %v6180_v14 = vpop.f32.mrf.mxu1  ;;  %v6169_v15 = vpop.f32.mrf.mxu0 }
  0xdd   :  { %241 = vrot.lane.b32.xlu0 %v230_v13, %s7076_s3  ;;  %v233_v18 = vadd.f32 %v230_v13, %v7253_v17 }
  0xdf   :  { %v5747_v19 = vmul.f32 -1.442695, %v233_v18 }
  0xe1   :  { %6851 = vpow2.f32 %v5747_v19  ;;  %v500_v19 = vstv %s499_s24 }
  0xe2   :  { %vm501_vm4 = vcmp.eq.s32.totalorder %v500_v19, 1 }
  0xee   :  { %v6852_v20 = vpop.eup %6851 }
  0xef   :  { %v237_v21 = vadd.f32 1.0, %v6852_v20 }
  0xf1   :  { %6853 = vrcp.f32 %v237_v21 }
  0xfe   :  { %v6854_v22 = vpop.eup %6853 }
  0xff   :  { %v251_v28 = vsub.f32 1.0, %v6854_v22  ;;  %v257_v32 = vmul.f32 0.0, %v6854_v22 }
 0x14f   :  { %v242_v23 = vpop.permute.xlu0 %241 }
 0x150   :  { %v244_v24 = vmul.f32 %v6854_v22, %v242_v23 }
 0x152   :  { %246 = vrot.lane.b32.xlu0 %v244_v24, %s7076_s3 }
 0x1c4   :  { %v247_v25 = vpop.permute.xlu0 %246 }
 0x1c5   :  { %v249_v26 = vadd.f32 %v247_v25, %v7253_v17 }
 0x1c7   :  { %6855 = vtanh.f32 %v249_v26 }
 0x1d4   :  { %v6856_v27 = vpop.eup %6855 }
 0x1d5   :  { %253 = vrot.lane.b32.xlu1 %v6856_v27, %s7077_s4 }
 0x247   :  { %v254_v30 = vpop.permute.xlu1 %253 }
 0x248   :  { %v256_v31 = vmul.f32 %v254_v30, %v251_v28 }
 0x24a   :  { %v7262_v33 = vadd.f32 %v257_v32, %v256_v31 }
 0x24c   :  { %v269_v34 = vsel %vm268_vm2, %v7262_v33, 0.0  ;;  %vm379_vm2 = vcmask 254977  }
 0x24d   :  { %271 = vrot.lane.b32.xlu1 %v269_v34, %s7077_s4  ;;  %v371_v50 = vrot.slane %v269_v34, 7 }
 0x2bf   :  { %v272_v35 = vpop.permute.xlu1 %271 }
 0x2c0   :  { %6190 = vmatmul.mubr.msk.f32.vlgmr.msra.gmra.mxu0 %vm81_vm1, %v272_v35 }
 0x2c1   :  { %6204 = vmatpush3.msra.mxu0 %v7180_v2  ;;  %6211 = vmatprep.mubr.msk.f32.mxu0 %vm7075_vm0, %v7074_v0 }
 0x2c2   :  { %6205 = vmatprep.subr.mxu0 %v7074_v0 }
 0x2c3   :  { %6206 = vmatpush3.msra.mxu0 %v7189_v4 }
 0x2c4   :  { %6207 = vmatprep.subr.mxu0 %v7074_v0 }
 0x2c5   :  { %6208 = vmatpush3.msra.mxu0 %v7199_v6 }
 0x2c6   :  { %6209 = vmatprep.subr.mxu0 %v7074_v0 }
 0x2c7   :  { %6210 = vmatpush3.msra.mxu0 %v7210_v8 }
 0x2c8   :  { %6225 = vmatprep.subr.mxu0 %v7074_v0 }
 0x380   :  { %v341_v36 = vpop.f32.mrf.mxu0 }
 0x381   :  { %v342_v37 = vadd.f32 %v341_v36, %v7246_v10 }
 0x382   :  { %v6191_v38 = vpop.f32.mrf.mxu0 }
 0x383   :  { %v346_v39 = vrot.slane %v342_v37, 7 }
 0x385   :  { %355 = vrot.lane.b32.xlu0 %v346_v39, %s7076_s3  ;;  %v348_v40 = vadd.f32 %v346_v39, %v7253_v17 }
 0x387   :  { %v5749_v41 = vmul.f32 -1.442695, %v348_v40 }
 0x389   :  { %6857 = vpow2.f32 %v5749_v41 }
 0x396   :  { %v6858_v42 = vpop.eup %6857 }
 0x397   :  { %v352_v43 = vadd.f32 1.0, %v6858_v42 }
 0x399   :  { %6859 = vrcp.f32 %v352_v43 }
 0x3a6   :  { %v6860_v44 = vpop.eup %6859 }
 0x3a7   :  { %v365_v51 = vsub.f32 1.0, %v6860_v44  ;;  %v373_v54 = vmul.f32 %v6860_v44, %v371_v50 }
 0x3f7   :  { %v356_v45 = vpop.permute.xlu0 %355 }
 0x3f8   :  { %v358_v46 = vmul.f32 %v6860_v44, %v356_v45  ;;  %v617_v44 = vstv %s616_s27  ;;  %s1084_s27 = scalar_select %p1083_p12, 1, 0 }
 0x3f9   :  { %vm618_vm5 = vcmp.eq.s32.totalorder %v617_v44, 1 }
 0x3fa   :  { %360 = vrot.lane.b32.xlu1 %v358_v46, %s7076_s3 }
 0x46c   :  { %v361_v47 = vpop.permute.xlu1 %360 }
 0x46d   :  { %v363_v48 = vadd.f32 %v361_v47, %v7253_v17 }
 0x46f   :  { %6861 = vtanh.f32 %v363_v48 }
 0x47c   :  { %v6862_v49 = vpop.eup %6861 }
 0x47d   :  { %367 = vrot.lane.b32.xlu0 %v6862_v49, %s7077_s4 }
 0x4ef   :  { %v368_v53 = vpop.permute.xlu0 %367 }
 0x4f0   :  { %v370_v55 = vmul.f32 %v368_v53, %v365_v51 }
 0x4f2   :  { %v7286_v56 = vadd.f32 %v373_v54, %v370_v55 }
 0x4f4   :  { %v385_v57 = vsel %vm384_vm3, %v7286_v56, %v371_v50  ;;  %vm613_vm3 = vcmask 257027  }
 0x4f5   :  { %v387_v58 = vrot.slane %v385_v57, 1  ;;  %v488_v16 = vrot.slane %v385_v57, 7 }
 0x4f7   :  { %388 = vrot.lane.b32.xlu1 %v387_v58, %s7077_s4 }
 0x569   :  { %v389_v59 = vpop.permute.xlu1 %388 }
 0x56a   :  { %6201 = vmatmul.mubr.msk.f32.vlgmr.msra.gmra.mxu1 %vm81_vm1, %v389_v59 }
 0x56b   :  { %6215 = vmatpush3.msra.mxu1 %v7180_v2  ;;  %6222 = vmatprep.mubr.msk.f32.mxu1 %vm7075_vm0, %v7074_v0 }
 0x56c   :  { %6216 = vmatprep.subr.mxu1 %v7074_v0 }
 0x56d   :  { %6217 = vmatpush3.msra.mxu1 %v7189_v4 }
 0x56e   :  { %6218 = vmatprep.subr.mxu1 %v7074_v0 }
 0x56f   :  { %6219 = vmatpush3.msra.mxu1 %v7199_v6 }
 0x570   :  { %6220 = vmatprep.subr.mxu1 %v7074_v0 }
 0x571   :  { %6221 = vmatpush3.msra.mxu1 %v7210_v8 }
 0x572   :  { %6236 = vmatprep.subr.mxu1 %v7074_v0 }
 0x62a   :  { %v458_v60 = vpop.f32.mrf.mxu1 }
 0x62b   :  { %v459_v61 = vadd.f32 %v458_v60, %v7246_v10 }
 0x62c   :  { %v6202_v62 = vpop.f32.mrf.mxu1 }
 0x62d   :  { %v463_v63 = vrot.slane %v459_v61, 6 }
 0x62f   :  { %472 = vrot.lane.b32.xlu0 %v463_v63, %s7076_s3  ;;  %v465_v1 = vadd.f32 %v463_v63, %v7253_v17 }
 0x631   :  { %v5751_v3 = vmul.f32 -1.442695, %v465_v1 }
 0x633   :  { %6863 = vpow2.f32 %v5751_v3 }
 0x640   :  { %v6864_v5 = vpop.eup %6863 }
 0x641   :  { %v469_v7 = vadd.f32 1.0, %v6864_v5 }
 0x643   :  { %6865 = vrcp.f32 %v469_v7 }
 0x650   :  { %v6866_v9 = vpop.eup %6865 }
 0x651   :  { %v482_v18 = vsub.f32 1.0, %v6866_v9  ;;  %v490_v21 = vmul.f32 %v6866_v9, %v488_v16 }
 0x6a1   :  { %v473_v11 = vpop.permute.xlu0 %472 }
 0x6a2   :  { %v475_v12 = vmul.f32 %v6866_v9, %v473_v11  ;;  %v734_v11 = vstv %s733_s1  ;;  %s7078_s1 = smov 32  }
 0x6a3   :  { %vm735_vm6 = vcmp.eq.s32.totalorder %v734_v11, 1 }
 0x6a4   :  { %477 = vrot.lane.b32.xlu1 %v475_v12, %s7076_s3 }
 0x716   :  { %v478_v13 = vpop.permute.xlu1 %477 }
 0x717   :  { %v480_v14 = vadd.f32 %v478_v13, %v7253_v17 }
 0x719   :  { %6867 = vtanh.f32 %v480_v14 }
 0x726   :  { %v6868_v15 = vpop.eup %6867 }
 0x727   :  { %484 = vrot.lane.b32.xlu0 %v6868_v15, %s7077_s4 }
 0x799   :  { %v485_v20 = vpop.permute.xlu0 %484 }
 0x79a   :  { %v487_v22 = vmul.f32 %v485_v20, %v482_v18 }
 0x79c   :  { %v7310_v23 = vadd.f32 %v490_v21, %v487_v22 }
 0x79e   :  { %v502_v24 = vsel %vm501_vm4, %v7310_v23, %v488_v16  ;;  %vm847_vm4 = vcmask 259077  }
 0x79f   :  { %v504_v25 = vrot.slane %v502_v24, 2  ;;  %v605_v42 = vrot.slane %v502_v24, 7 }
 0x7a1   :  { %505 = vrot.lane.b32.xlu1 %v504_v25, %s7077_s4 }
 0x813   :  { %v506_v26 = vpop.permute.xlu1 %505 }
 0x814   :  { %6212 = vmatmul.mubr.msk.f32.vlgmr.msra.gmra.mxu0 %vm81_vm1, %v506_v26 }
 0x815   :  { %6226 = vmatpush3.msra.mxu0 %v7180_v2  ;;  %6233 = vmatprep.mubr.msk.f32.mxu0 %vm7075_vm0, %v7074_v0 }
 0x816   :  { %6227 = vmatprep.subr.mxu0 %v7074_v0 }
 0x817   :  { %6228 = vmatpush3.msra.mxu0 %v7189_v4 }
 0x818   :  { %6229 = vmatprep.subr.mxu0 %v7074_v0 }
 0x819   :  { %6230 = vmatpush3.msra.mxu0 %v7199_v6 }
 0x81a   :  { %6231 = vmatprep.subr.mxu0 %v7074_v0 }
 0x81b   :  { %6232 = vmatpush3.msra.mxu0 %v7210_v8 }
 0x81c   :  { %6247 = vmatprep.subr.mxu0 %v7074_v0 }
 0x8d4   :  { %v575_v27 = vpop.f32.mrf.mxu0 }
 0x8d5   :  { %v576_v28 = vadd.f32 %v575_v27, %v7246_v10 }
 0x8d6   :  { %v6213_v29 = vpop.f32.mrf.mxu0 }
 0x8d7   :  { %v580_v30 = vrot.slane %v576_v28, 5 }
 0x8d9   :  { %589 = vrot.lane.b32.xlu0 %v580_v30, %s7076_s3  ;;  %v582_v31 = vadd.f32 %v580_v30, %v7253_v17 }
 0x8db   :  { %v5753_v32 = vmul.f32 -1.442695, %v582_v31 }
 0x8dd   :  { %6869 = vpow2.f32 %v5753_v32 }
 0x8ea   :  { %v6870_v34 = vpop.eup %6869 }
 0x8eb   :  { %v586_v35 = vadd.f32 1.0, %v6870_v34  ;;  %v851_v34 = vstv %s850_s12 }
 0x8ec   :  { %vm852_vm7 = vcmp.eq.s32.totalorder %v851_v34, 1  ;;  %v7487_v34 = vld [vmem:[%s8562_s6 + $0x8] sm:$0xff] }
 0x8ed   :  { %6871 = vrcp.f32 %v586_v35 }
 0x8fa   :  { %v6872_v36 = vpop.eup %6871 }
 0x8fb   :  { %v599_v43 = vsub.f32 1.0, %v6872_v36  ;;  %v607_v46 = vmul.f32 %v6872_v36, %v605_v42 }
 0x94b   :  { %v590_v37 = vpop.permute.xlu0 %589 }
 0x94c   :  { %v592_v38 = vmul.f32 %v6872_v36, %v590_v37 }
 0x94e   :  { %594 = vrot.lane.b32.xlu1 %v592_v38, %s7076_s3 }
 0x9c0   :  { %v595_v39 = vpop.permute.xlu1 %594 }
 0x9c1   :  { %v597_v40 = vadd.f32 %v595_v39, %v7253_v17 }
 0x9c3   :  { %6873 = vtanh.f32 %v597_v40 }
 0x9d0   :  { %v6874_v41 = vpop.eup %6873 }
 0x9d1   :  { %601 = vrot.lane.b32.xlu0 %v6874_v41, %s7077_s4 }
 0xa43   :  { %v602_v45 = vpop.permute.xlu0 %601 }
 0xa44   :  { %v604_v47 = vmul.f32 %v602_v45, %v599_v43 }
 0xa46   :  { %v7334_v48 = vadd.f32 %v607_v46, %v604_v47 }
 0xa48   :  { %v619_v49 = vsel %vm618_vm5, %v7334_v48, %v605_v42  ;;  %vm1081_vm5 = vcmask 261127  }
 0xa49   :  { %v621_v50 = vrot.slane %v619_v49, 3  ;;  %v722_v7 = vrot.slane %v619_v49, 7 }
 0xa4b   :  { %622 = vrot.lane.b32.xlu1 %v621_v50, %s7077_s4 }
 0xabd   :  { %v623_v51 = vpop.permute.xlu1 %622 }
 0xabe   :  { %6223 = vmatmul.mubr.msk.f32.vlgmr.msra.gmra.mxu1 %vm81_vm1, %v623_v51 }
 0xabf   :  { %6237 = vmatpush3.msra.mxu1 %v7180_v2  ;;  %6244 = vmatprep.mubr.msk.f32.mxu1 %vm7075_vm0, %v7074_v0 }
 0xac0   :  { %6238 = vmatprep.subr.mxu1 %v7074_v0 }
 0xac1   :  { %6239 = vmatpush3.msra.mxu1 %v7189_v4 }
 0xac2   :  { %6240 = vmatprep.subr.mxu1 %v7074_v0 }
 0xac3   :  { %6241 = vmatpush3.msra.mxu1 %v7199_v6 }
 0xac4   :  { %6242 = vmatprep.subr.mxu1 %v7074_v0 }
 0xac5   :  { %6243 = vmatpush3.msra.mxu1 %v7210_v8 }
 0xac6   :  { %6258 = vmatprep.subr.mxu1 %v7074_v0 }
 0xb7e   :  { %v692_v52 = vpop.f32.mrf.mxu1 }
 0xb7f   :  { %v693_v53 = vadd.f32 %v692_v52, %v7246_v10 }
 0xb80   :  { %v6224_v54 = vpop.f32.mrf.mxu1 }
 0xb81   :  { %v697_v55 = vrot.slane %v693_v53, 4 }
 0xb83   :  { %706 = vrot.lane.b32.xlu0 %v697_v55, %s7076_s3  ;;  %v699_v57 = vadd.f32 %v697_v55, %v7253_v17 }
 0xb85   :  { %v5755_v58 = vmul.f32 -1.442695, %v699_v57 }
 0xb87   :  { %6875 = vpow2.f32 %v5755_v58 }
 0xb94   :  { %v6876_v59 = vpop.eup %6875 }
 0xb95   :  { %v703_v60 = vadd.f32 1.0, %v6876_v59 }
 0xb97   :  { %6877 = vrcp.f32 %v703_v60  ;;  %v968_v60 = vstv %s967_s18 }
 0xb98   :  { %vm969_vm8 = vcmp.eq.s32.totalorder %v968_v60, 1 }
 0xba4   :  { %v6878_v61 = vpop.eup %6877 }
 0xba5   :  { %v716_v9 = vsub.f32 1.0, %v6878_v61  ;;  %v724_v13 = vmul.f32 %v6878_v61, %v722_v7 }
 0xbf5   :  { %v707_v62 = vpop.permute.xlu0 %706 }
 0xbf6   :  { %v709_v63 = vmul.f32 %v6878_v61, %v707_v62 }
 0xbf8   :  { %711 = vrot.lane.b32.xlu1 %v709_v63, %s7076_s3 }
 0xc6a   :  { %v712_v1 = vpop.permute.xlu1 %711 }
 0xc6b   :  { %v714_v3 = vadd.f32 %v712_v1, %v7253_v17 }
 0xc6d   :  { %6879 = vtanh.f32 %v714_v3 }
 0xc7a   :  { %v6880_v5 = vpop.eup %6879 }
 0xc7b   :  { %718 = vrot.lane.b32.xlu0 %v6880_v5, %s7077_s4 }
 0xced   :  { %v719_v12 = vpop.permute.xlu0 %718 }
 0xcee   :  { %v721_v14 = vmul.f32 %v719_v12, %v716_v9 }
 0xcf0   :  { %v7358_v15 = vadd.f32 %v724_v13, %v721_v14 }
 0xcf2   :  { %v736_v16 = vsel %vm735_vm6, %v7358_v15, %v722_v7 }
 0xcf3   :  { %v738_v18 = vrot.slane %v736_v16, 4  ;;  %v839_v31 = vrot.slane %v736_v16, 7 }
 0xcf5   :  { %739 = vrot.lane.b32.xlu1 %v738_v18, %s7077_s4 }
 0xd67   :  { %v740_v19 = vpop.permute.xlu1 %739 }
 0xd68   :  { %6234 = vmatmul.mubr.msk.f32.vlgmr.msra.gmra.mxu0 %vm81_vm1, %v740_v19 }
 0xd69   :  { %6248 = vmatpush3.msra.mxu0 %v7180_v2  ;;  %6255 = vmatprep.mubr.msk.f32.mxu0 %vm7075_vm0, %v7074_v0 }
 0xd6a   :  { %6249 = vmatprep.subr.mxu0 %v7074_v0 }
 0xd6b   :  { %6250 = vmatpush3.msra.mxu0 %v7189_v4 }
 0xd6c   :  { %6251 = vmatprep.subr.mxu0 %v7074_v0 }
 0xd6d   :  { %6252 = vmatpush3.msra.mxu0 %v7199_v6 }
 0xd6e   :  { %6253 = vmatprep.subr.mxu0 %v7074_v0 }
 0xd6f   :  { %6254 = vmatpush3.msra.mxu0 %v7210_v8 }
 0xd70   :  { %6269 = vmatprep.subr.mxu0 %v7074_v0 }
 0xe28   :  { %v809_v20 = vpop.f32.mrf.mxu0 }
 0xe29   :  { %v810_v2 = vadd.f32 %v809_v20, %v7246_v10 }
 0xe2a   :  { %v6235_v21 = vpop.f32.mrf.mxu0 }
 0xe2b   :  { %v814_v22 = vrot.slane %v810_v2, 3 }
 0xe2d   :  { %823 = vrot.lane.b32.xlu0 %v814_v22, %s7076_s3  ;;  %v816_v24 = vadd.f32 %v814_v22, %v7253_v17 }
 0xe2f   :  { %v5757_v4 = vmul.f32 -1.442695, %v816_v24 }
 0xe31   :  { %6881 = vpow2.f32 %v5757_v4  ;;  %v7421_v4 = vld [vmem:[%s8562_s6 + $0x30] sm:$0xff] }
 0xe3e   :  { %v6882_v25 = vpop.eup %6881 }
 0xe3f   :  { %v820_v26 = vadd.f32 1.0, %v6882_v25  ;;  %v7427_v25 = vld [vmem:[%s8563_s7 + $0x18] sm:$0xff] }
 0xe41   :  { %6883 = vrcp.f32 %v820_v26  ;;  %v7439_v26 = vld [vmem:[%s8563_s7 + $0x10] sm:$0xff] }
 0xe4e   :  { %v6884_v6 = vpop.eup %6883 }
 0xe4f   :  { %v833_v32 = vsub.f32 1.0, %v6884_v6  ;;  %v841_v36 = vmul.f32 %v6884_v6, %v839_v31 }
 0xe9f   :  { %v824_v27 = vpop.permute.xlu0 %823 }
 0xea0   :  { %v826_v28 = vmul.f32 %v6884_v6, %v824_v27  ;;  %v1088_v6 = vlaneseq  ;;  %v7447_v27 = vld [vmem:[%s8562_s6 + $0x20] sm:$0xff] }
 0xea2   :  { %828 = vrot.lane.b32.xlu1 %v826_v28, %s7076_s3  ;;  %v7453_v28 = vld [vmem:[%s8563_s7 + $0x8] sm:$0xff] }
 0xf14   :  { %v829_v8 = vpop.permute.xlu1 %828 }
 0xf15   :  { %v831_v29 = vadd.f32 %v829_v8, %v7253_v17 }
 0xf17   :  { %6885 = vtanh.f32 %v831_v29  ;;  %v7462_v29 = vld [vmem:[%s8562_s6 + $0x18] sm:$0xff] }
 0xf24   :  { %v6886_v30 = vpop.eup %6885 }
 0xf25   :  { %835 = vrot.lane.b32.xlu0 %v6886_v30, %s7077_s4  ;;  %v7465_v30 = vand.u32 127, %v1088_v6 }
 0xf27   :  { %vm1127_vm9 = vcmp.eq.s32.totalorder %v7465_v30, 1 }
 0xf97   :  { %v836_v35 = vpop.permute.xlu0 %835 }
 0xf98   :  { %v838_v37 = vmul.f32 %v836_v35, %v833_v32  ;;  %v7478_v32 = vld [vmem:[%s8562_s6 + $0x10] sm:$0xff]  ;;  %v7496_v35 = vld [vmem:[%s8562_s6] sm:$0xff] }
 0xf9a   :  { %v7382_v38 = vadd.f32 %v841_v36, %v838_v37  ;;  %v5762_v36 = vsel %vm1127_vm9, 1.0, %v7074_v0  ;;  %vm1398_vm9 = vcmask 64512  }
 0xf9c   :  { %v853_v39 = vsel %vm852_vm7, %v7382_v38, %v839_v31  ;;  %v7470_v31 = vld [vmem:[%s8563_s7] sm:$0xff] }
 0xf9d   :  { %v855_v40 = vrot.slane %v853_v39, 5  ;;  %v956_v58 = vrot.slane %v853_v39, 7 }
 0xf9f   :  { %856 = vrot.lane.b32.xlu1 %v855_v40, %s7077_s4  ;;  %v1085_v40 = vstv %s1084_s27 }
 0xfa0   :  { %vm1086_vm11 = vcmp.eq.s32.totalorder %v1085_v40, 1 }
0x1011   :  { %v857_v41 = vpop.permute.xlu1 %856 }
0x1012   :  { %6245 = vmatmul.mubr.msk.f32.vlgmr.msra.gmra.mxu1 %vm81_vm1, %v857_v41 }
0x1013   :  { %6266 = vmatprep.mubr.msk.f32.mxu1 %vm7075_vm0, %v7074_v0  ;;  %6259 = vmatpush3.msra.mxu1 %v7427_v25 }
0x1014   :  { %6260 = vmatprep.subr.mxu1 %v7074_v0 }
0x1015   :  { %6261 = vmatpush3.msra.mxu1 %v7439_v26 }
0x1016   :  { %6262 = vmatprep.subr.mxu1 %v7074_v0 }
0x1017   :  { %6263 = vmatpush3.msra.mxu1 %v7453_v28 }
0x1018   :  { %6264 = vmatprep.subr.mxu1 %v7074_v0 }
0x1019   :  { %6265 = vmatpush3.msra.mxu1 %v7470_v31 }
0x101a   :  { %6288 = vmatprep.subr.mxu1 %v7074_v0 }
0x10d2   :  { %v926_v42 = vpop.f32.mrf.mxu1 }
0x10d3   :  { %v927_v43 = vadd.f32 %v926_v42, %v7246_v10 }
0x10d4   :  { %v6246_v44 = vpop.f32.mrf.mxu1 }
0x10d5   :  { %v931_v45 = vrot.slane %v927_v43, 2 }
0x10d7   :  { %940 = vrot.lane.b32.xlu0 %v931_v45, %s7076_s3  ;;  %v933_v46 = vadd.f32 %v931_v45, %v7253_v17 }
0x10d9   :  { %v5759_v47 = vmul.f32 -1.442695, %v933_v46 }
0x10db   :  { %6887 = vpow2.f32 %v5759_v47 }
0x10e8   :  { %v6888_v49 = vpop.eup %6887 }
0x10e9   :  { %v937_v50 = vadd.f32 1.0, %v6888_v49 }
0x10eb   :  { %6889 = vrcp.f32 %v937_v50 }
0x10f8   :  { %v6890_v51 = vpop.eup %6889 }
0x10f9   :  { %v950_v59 = vsub.f32 1.0, %v6890_v51  ;;  %v958_v62 = vmul.f32 %v6890_v51, %v956_v58 }
0x1149   :  { %v941_v52 = vpop.permute.xlu0 %940 }
0x114a   :  { %v943_v53 = vmul.f32 %v6890_v51, %v941_v52  ;;  %v7520_v51 = vld [vmem:[%s8564_s8] sm:$0x1] }
0x114c   :  { %945 = vrot.lane.b32.xlu1 %v943_v53, %s7076_s3 }
0x11be   :  { %v946_v54 = vpop.permute.xlu1 %945 }
0x11bf   :  { %v948_v55 = vadd.f32 %v946_v54, %v7253_v17 }
0x11c1   :  { %6891 = vtanh.f32 %v948_v55 }
0x11ce   :  { %v6892_v57 = vpop.eup %6891 }
0x11cf   :  { %952 = vrot.lane.b32.xlu0 %v6892_v57, %s7077_s4 }
0x1241   :  { %v953_v61 = vpop.permute.xlu0 %952 }
0x1242   :  { %v955_v63 = vmul.f32 %v953_v61, %v950_v59 }
0x1244   :  { %v7398_v1 = vadd.f32 %v958_v62, %v955_v63 }
0x1246   :  { %v7401_v3 = vsel %vm969_vm8, %v7398_v1, %v956_v58  ;;  %vm1386_vm8 = vcmask 57344  }
0x1247   :  { %v972_v5 = vrot.slane %v7401_v3, 6  ;;  %v1073_v37 = vrot.slane %v7401_v3, 7 }
0x1249   :  { %973 = vrot.lane.b32.xlu1 %v972_v5, %s7077_s4 }
0x12bb   :  { %v974_v7 = vpop.permute.xlu1 %973 }
0x12bc   :  { %6256 = vmatmul.mubr.msk.f32.vlgmr.msra.gmra.mxu0 %vm81_vm1, %v974_v7 }
0x12bd   :  { %6285 = vmatprep.mubr.msk.f32.mxu0 %vm7075_vm0, %v7074_v0 }
0x137c   :  { %v1043_v9 = vpop.f32.mrf.mxu0 }
0x137d   :  { %v1044_v11 = vadd.f32 %v1043_v9, %v7246_v10  ;;  %v7416_v10 = vld [vmem:[%s8562_s6 + $0x38] sm:$0xff] }
0x137e   :  { %v6257_v12 = vpop.f32.mrf.mxu0  ;;  %6270 = vmatpush3.msra.mxu0 %v7416_v10 }
0x137f   :  { %v1048_v13 = vrot.slane %v1044_v11, 1  ;;  %6271 = vmatprep.subr.mxu0 %v7074_v0 }
0x1380   :  { %6272 = vmatpush3.msra.mxu0 %v7421_v4 }
0x1381   :  { %1057 = vrot.lane.b32.xlu0 %v1048_v13, %s7076_s3  ;;  %v1050_v14 = vadd.f32 %v1048_v13, %v7253_v17  ;;  %6273 = vmatprep.subr.mxu0 %v7074_v0 }
0x1383   :  { %v5761_v16 = vmul.f32 -1.442695, %v1050_v14 }
0x1385   :  { %6893 = vpow2.f32 %v5761_v16 }
0x1392   :  { %v6894_v18 = vpop.eup %6893 }
0x1393   :  { %v1054_v19 = vadd.f32 1.0, %v6894_v18 }
0x1395   :  { %6895 = vrcp.f32 %v1054_v19 }
0x13a2   :  { %v6896_v20 = vpop.eup %6895 }
0x13a3   :  { %v1067_v39 = vsub.f32 1.0, %v6896_v20  ;;  %v1075_v42 = vmul.f32 %v6896_v20, %v1073_v37 }
0x13f3   :  { %v1058_v2 = vpop.permute.xlu0 %1057 }
0x13f4   :  { %v1060_v21 = vmul.f32 %v6896_v20, %v1058_v2  ;;  %v1089_v2 = vshrl.u32 %v1088_v6, 7 }
0x13f6   :  { %1062 = vrot.lane.b32.xlu1 %v1060_v21, %s7076_s3  ;;  %v1090_v21 = vstv %s8575_s17 }
0x13f7   :  { %vm7577_vm6 = vcmp.lt.s32.totalorder %v1089_v2, %v1090_v21  ;;  %vm7619_vm7 = vcmp.lt.s32.totalorder %v7465_v30, %v1090_v21 }
0x1468   :  { %v1063_v22 = vpop.permute.xlu1 %1062 }
0x1469   :  { %v1065_v24 = vadd.f32 %v1063_v22, %v7253_v17  ;;  %v7433_v17 = vld [vmem:[%s8562_s6 + $0x28] sm:$0xff] }
0x146a   :  { %6274 = vmatpush3.msra.mxu0 %v7433_v17 }
0x146b   :  { %6897 = vtanh.f32 %v1065_v24  ;;  %6275 = vmatprep.subr.mxu0 %v7074_v0 }
0x146c   :  { %6276 = vmatpush3.msra.mxu0 %v7447_v27 }
0x146d   :  { %6277 = vmatprep.subr.mxu0 %v7074_v0 }
0x146e   :  { %6278 = vmatpush3.msra.mxu0 %v7462_v29 }
0x146f   :  { %6279 = vmatprep.subr.mxu0 %v7074_v0 }
0x1470   :  { %6280 = vmatpush3.msra.mxu0 %v7478_v32 }
0x1471   :  { %6281 = vmatprep.subr.mxu0 %v7074_v0 }
0x1472   :  { %6282 = vmatpush3.msra.mxu0 %v7487_v34 }
0x1473   :  { %6283 = vmatprep.subr.mxu0 %v7074_v0 }
0x1474   :  { %6284 = vmatpush3.msra.mxu0 %v7496_v35 }
0x1475   :  { %6286 = vmatmul.mubr.msk.f32.vlgmr.msra.gmra.mxu0 %vm1206_vm10, %v5762_v36  ;;  %6309 = vmatprep.subr.mxu0 %v7074_v0 }
0x1476   :  { %6317 = vmatprep.mubr.msk.f32.mxu0 %vm7075_vm0, %v7074_v0 }
0x1478   :  { %v6898_v8 = vpop.eup %6897 }
0x1479   :  { %1069 = vrot.lane.b32.xlu0 %v6898_v8, %s7077_s4 }
0x14eb   :  { %v1070_v41 = vpop.permute.xlu0 %1069 }
0x14ec   :  { %v1072_v43 = vmul.f32 %v1070_v41, %v1067_v39 }
0x14ee   :  { %v1076_v44 = vadd.f32 %v1075_v42, %v1072_v43 }
0x14f0   :  { %v7510_v45 = vsel %vm1086_vm11, %v1076_v44, %v1073_v37  ;;  %vm1692_vm11 = vcmask 1040384  }
0x14f1   :  { %v1131_v46 = vrot.slane %v7510_v45, 7 }
0x14f3   :  { %1132 = vrot.lane.b32.xlu1 %v1131_v46, %s7077_s4 }
0x1535   :  { %v1276_v47 = vpop.f32.mrf.mxu0 }
0x1537   :  { %v6287_v49 = vpop.f32.mrf.mxu0 }
0x1565   :  { %v1133_v50 = vpop.permute.xlu1 %1132 }
0x1566   :  { %6267 = vmatmul.mubr.msk.f32.vlgmr.msra.gmra.mxu1 %vm81_vm1, %v1133_v50 }
0x1567   :  { %6290 = vmatprep.mubr.msk.f32.mxu1 %vm7075_vm0, %v7074_v0 }
0x1626   :  { %v1202_v52 = vpop.f32.mrf.mxu1 }
0x1627   :  { %v1277_v53 = vadd.f32 %v1276_v47, %v1202_v52 }
0x1628   :  { %v6268_v54 = vpop.f32.mrf.mxu1 }
0x1629   :  { %v1280_v55 = vadd.f32 %v1277_v53, %v7520_v51 }
0x162b   :  { %1288 = vrot.lane.b32.xlu0 %v1280_v55, %s7078_s1  ;;  %v5765_v57 = vmul.f32 -1.442695, %v1280_v55 }
0x162d   :  { %6899 = vpow2.f32 %v5765_v57  ;;  %v7632_v57 = vld [vmem:[%s8566_s10 + $0x18] sm:$0xff] }
0x163a   :  { %v6900_v58 = vpop.eup %6899 }
0x163b   :  { %v1284_v59 = vadd.f32 1.0, %v6900_v58  ;;  %v7638_v58 = vld [vmem:[%s8566_s10 + $0x10] sm:$0xff] }
0x163d   :  { %6901 = vrcp.f32 %v1284_v59  ;;  %v7647_v59 = vld [vmem:[%s8566_s10 + $0x8] sm:$0xff] }
0x164a   :  { %v6902_v60 = vpop.eup %6901 }
0x164b   :  { %v1305_v12 = vmul.f32 %v6902_v60, %v1131_v46 }
0x169d   :  { %v1289_v61 = vpop.permute.xlu0 %1288 }
0x169e   :  { %v1291_v62 = vmul.f32 %v6902_v60, %v1289_v61 }
0x16a0   :  { %1293 = vrot.lane.b32.xlu1 %v1291_v62, %s7076_s3 }
0x16a4   :  { %260 = vrot.lane.b32.xlu1 %v7262_v33, %s7077_s4 }
0x16a8   :  { %493 = vrot.lane.b32.xlu1 %v7310_v23, %s7077_s4 }
0x16ac   :  { %727 = vrot.lane.b32.xlu1 %v7358_v15, %s7077_s4  ;;  %v7543_v15 = vld [vmem:[%s8565_s9 + $0x18] sm:$0xff] }
0x16ad   :  { %6310 = vmatpush3.msra.mxu0 %v7543_v15 }
0x16ae   :  { %6311 = vmatprep.subr.mxu0 %v7074_v0 }
0x16b0   :  { %961 = vrot.lane.b32.xlu1 %v7398_v1, %s7077_s4  ;;  %v7548_v1 = vld [vmem:[%s8565_s9 + $0x10] sm:$0xff] }
0x16b1   :  { %6312 = vmatpush3.msra.mxu0 %v7548_v1 }
0x16b2   :  { %6313 = vmatprep.subr.mxu0 %v7074_v0 }
0x1712   :  { %v1294_v63 = vpop.permute.xlu1 %1293 }
0x1713   :  { %v1296_v3 = vadd.f32 %v1294_v63, %v1280_v55  ;;  %v7663_v63 = vld [vmem:[#allocation3 + $0x18] sm:$0xff] }
0x1715   :  { %6903 = vtanh.f32 %v1296_v3  ;;  %v7665_v3 = vld [vmem:[#allocation3 + $0x10] sm:$0xff] }
0x1716   :  { %v261_v5 = vpop.permute.xlu1 %260 }
0x1717   :  { %264 = vst.msk [vmem:[#allocation6] sm:$0x1] %vm263_vm12, %v261_v5  ;;  %v7669_v5 = vld [vmem:[#allocation3 + $0x8] sm:$0xff] }
0x171a   :  { %v494_v7 = vpop.permute.xlu1 %493 }
0x171b   :  { %497 = vst.msk [vmem:[#allocation6] sm:$0x4] %vm496_vm13, %v494_v7  ;;  %v7673_v7 = vld [vmem:[#allocation3] sm:$0xff] }
0x171e   :  { %v728_v33 = vpop.permute.xlu1 %727 }
0x171f   :  { %731 = vst.msk [vmem:[#allocation6] sm:$0x10] %vm730_vm14, %v728_v33  ;;  %v7682_v33 = vld [vmem:[%s8567_s11] sm:$0x1]  ;;  %vm1713_vm14 = vcmask 0  }
0x1722   :  { %v6904_v23 = vpop.eup %6903  ;;  %v962_v9 = vpop.permute.xlu1 %961 }
0x1723   :  { %965 = vst.msk [vmem:[#allocation6] sm:$0x40] %vm964_vm15, %v962_v9  ;;  %1300 = vrot.lane.b32.xlu0 %v6904_v23, %s7077_s4 }
0x1727   :  { %376 = vrot.lane.b32.xlu0 %v7286_v56, %s7077_s4  ;;  %v7555_v56 = vld [vmem:[%s8565_s9 + $0x8] sm:$0xff] }
0x1728   :  { %6314 = vmatpush3.msra.mxu0 %v7555_v56 }
0x1729   :  { %6315 = vmatprep.subr.mxu0 %v7074_v0 }
0x172b   :  { %610 = vrot.lane.b32.xlu0 %v7334_v48, %s7077_s4  ;;  %v7563_v48 = vld [vmem:[%s8565_s9] sm:$0xff] }
0x172c   :  { %6316 = vmatpush3.msra.mxu0 %v7563_v48 }
0x172d   :  { %6331 = vmatprep.subr.mxu0 %v7074_v0 }
0x172f   :  { %844 = vrot.lane.b32.xlu0 %v7382_v38, %s7077_s4  ;;  %v1298_v38 = vsub.f32 1.0, %v6902_v60  ;;  %v7656_v60 = vld [vmem:[%s8566_s10] sm:$0xff] }
0x1733   :  { %1078 = vrot.lane.b32.xlu0 %v1076_v44, %s7077_s4 }
0x1795   :  { %v1301_v11 = vpop.permute.xlu0 %1300 }
0x1796   :  { %v1303_v13 = vmul.f32 %v1301_v11, %v1298_v38 }
0x1798   :  { %v7569_v14 = vadd.f32 %v1305_v12, %v1303_v13  ;;  %v7707_v13 = vld [vmem:[%s8569_s13] sm:$0x1] }
0x1799   :  { %v377_v16 = vpop.permute.xlu0 %376 }
0x179a   :  { %380 = vst.msk [vmem:[#allocation6] sm:$0x2] %vm379_vm2, %v377_v16  ;;  %1308 = vrot.lane.b32.xlu1 %v7569_v14, %s7077_s4 }
0x179d   :  { %v611_v18 = vpop.permute.xlu0 %610 }
0x179e   :  { %614 = vst.msk [vmem:[#allocation6] sm:$0x8] %vm613_vm3, %v611_v18  ;;  %v1690_v18 = vld [vmem:[%s8570_s14] sm:$0x1] }
0x17a1   :  { %v845_v19 = vpop.permute.xlu0 %844 }
0x17a2   :  { %848 = vst.msk [vmem:[#allocation6] sm:$0x20] %vm847_vm4, %v845_v19 }
0x17a5   :  { %v1079_v20 = vpop.permute.xlu0 %1078 }
0x17a6   :  { %1082 = vst.msk [vmem:[#allocation6] sm:$0x80] %vm1081_vm5, %v1079_v20 }
0x17ad   :  { %v7581_v24 = vld [vmem:[#allocation6] sm:$0xff] }
0x17ae   :  { %v7586_v8 = vsel %vm7577_vm6, %v7581_v24, 0.0 }
0x17af   :  { %6289 = vmatpush3.xpose.msk.msra.mxu1 %vm81_vm1, %v7586_v8  ;;  %1096 = vst.msk [vmem:[#allocation6] sm:$0xff] %vm81_vm1, %v7586_v8 }
0x17b0   :  { %6293 = vmatprep.subr.mxu1 %v7074_v0 }
0x180c   :  { %v1309_v6 = vpop.permute.xlu1 %1308 }
0x180d   :  { %6291 = vmatmul.mubr.msk.f32.vlgmr.msra.gmra.mxu1 %vm81_vm1, %v1309_v6  ;;  %6318 = vmatmul.mubr.msk.f32.vlgmr.msra.gmra.mxu0 %vm81_vm1, %v1309_v6 }
0x180e   :  { %6294 = vmatpush3.msk.msra.mxu1 %vm7577_vm6, %v7581_v24  ;;  %6332 = vmatpush3.msra.mxu0 %v7427_v25 }
0x180f   :  { %6333 = vmatprep.subr.mxu0 %v7074_v0  ;;  %6339 = vmatprep.mubr.msk.f32.mxu0 %vm7075_vm0, %v7074_v0 }
0x1810   :  { %6334 = vmatpush3.msra.mxu0 %v7439_v26  ;;  %6295 = vmatprep.mubr.msk.f32.mxu1 %vm7075_vm0, %v7074_v0 }
0x1811   :  { %6335 = vmatprep.subr.mxu0 %v7074_v0  ;;  %6298 = vmatprep.subr.mxu1 %v7074_v0 }
0x1812   :  { %6336 = vmatpush3.msra.mxu0 %v7453_v28 }
0x1813   :  { %6337 = vmatprep.subr.mxu0 %v7074_v0 }
0x1814   :  { %6338 = vmatpush3.msra.mxu0 %v7470_v31 }
0x1815   :  { %6340 = vmatmul.mubr.msk.f32.vlgmr.msra.gmra.mxu0 %vm81_vm1, %v1309_v6  ;;  %6366 = vmatprep.subr.mxu0 %v7074_v0 }
0x1816   :  { %6367 = vmatpush3.msk.msra.mxu0 %vm7577_vm6, %v7581_v24  ;;  %6368 = vmatprep.mubr.msk.f32.mxu0 %vm7075_vm0, %v7074_v0 }
0x1817   :  { %6371 = vmatprep.subr.mxu0 %v7074_v0 }
0x18cd   :  { %v1381_v37 = vpop.f32.mrf.mxu1  ;;  %v1611_v39 = vpop.f32.mrf.mxu0 }
0x18ce   :  { %v1385_v40 = vsel %vm7619_vm7, %v1381_v37, -1e+30 }
0x18cf   :  { %v6292_v41 = vpop.f32.mrf.mxu1  ;;  %v6319_v42 = vpop.f32.mrf.mxu0  ;;  %v1387_v43 = vsel %vm1386_vm8, %v1385_v40, -inf }
0x18d0   :  { %1388 = vmax.xlane.f32.xlu0 %v1387_v43 }
0x18d5   :  { %v7626_v44 = vpop.f32.mrf.mxu0 }
0x18d7   :  { %v6341_v45 = vpop.f32.mrf.mxu0 }
0x1959   :  { %v1389_v46 = vpop.xlane.xlu0 %1388 }
0x195a   :  { %v1390_v47 = vsub.f32 %v1385_v40, %v1389_v46 }
0x195c   :  { %v1391_v49 = vmul.f32 1.442695, %v1390_v47 }
0x195e   :  { %6905 = vpow2.f32 %v1391_v49 }
0x196b   :  { %v6906_v50 = vpop.eup %6905 }
0x196c   :  { %v1393_v52 = vsel %vm1386_vm8, %v6906_v50, 0.0 }
0x196d   :  { %1394 = vadd.xlane.f32.xlu1 %v1393_v52 }
0x19f6   :  { %v1395_v53 = vpop.xlane.xlu1 %1394 }
0x19f7   :  { %6907 = vrcp.f32 %v1395_v53 }
0x1a04   :  { %v6908_v54 = vpop.eup %6907 }
0x1a05   :  { %v1397_v55 = vmul.f32 %v6908_v54, %v6906_v50 }
0x1a07   :  { %6296 = vmatmul.mubr.msk.f32.vlgmr.msra.gmra.mxu1 %vm1398_vm9, %v1397_v55 }
0x1a08   :  { %6299 = vmatpush3.msra.mxu1 %v7632_v57  ;;  %6306 = vmatprep.mubr.msk.f32.mxu1 %vm7075_vm0, %v7074_v0 }
0x1a09   :  { %6300 = vmatprep.subr.mxu1 %v7074_v0 }
0x1a0a   :  { %6301 = vmatpush3.msra.mxu1 %v7638_v58 }
0x1a0b   :  { %6302 = vmatprep.subr.mxu1 %v7074_v0 }
0x1a0c   :  { %6303 = vmatpush3.msra.mxu1 %v7647_v59 }
0x1a0d   :  { %6304 = vmatprep.subr.mxu1 %v7074_v0 }
0x1a0e   :  { %6305 = vmatpush3.msra.mxu1 %v7656_v60 }
0x1a0f   :  { %6320 = vmatprep.subr.mxu1 %v7074_v0 }
0x1ac7   :  { %v1468_v61 = vpop.f32.mrf.mxu1 }
0x1ac8   :  { %6307 = vmatmul.mubr.msk.f32.vlgmr.msra.gmra.mxu1 %vm81_vm1, %v1468_v61 }
0x1ac9   :  { %v6297_v62 = vpop.f32.mrf.mxu1  ;;  %6328 = vmatprep.mubr.msk.f32.mxu1 %vm7075_vm0, %v7074_v0  ;;  %6321 = vmatpush3.msra.mxu1 %v7663_v63 }
0x1aca   :  { %6322 = vmatprep.subr.mxu1 %v7074_v0 }
0x1acb   :  { %6323 = vmatpush3.msra.mxu1 %v7665_v3 }
0x1acc   :  { %6324 = vmatprep.subr.mxu1 %v7074_v0 }
0x1acd   :  { %6325 = vmatpush3.msra.mxu1 %v7669_v5 }
0x1ace   :  { %6326 = vmatprep.subr.mxu1 %v7074_v0 }
0x1acf   :  { %6327 = vmatpush3.msra.mxu1 %v7673_v7 }
0x1ad0   :  { %6342 = vmatprep.subr.mxu1 %v7074_v0 }
0x1b88   :  { %v1541_v23 = vpop.f32.mrf.mxu1 }
0x1b89   :  { %v1612_v9 = vadd.f32 %v1611_v39, %v1541_v23 }
0x1b8a   :  { %v6308_v38 = vpop.f32.mrf.mxu1 }
0x1b8b   :  { %v1615_v11 = vadd.f32 %v1612_v9, %v7682_v33 }
0x1b8d   :  { %6909 = vtanh.f32 %v1615_v11 }
0x1b9a   :  { %v6910_v12 = vpop.eup %6909 }
0x1b9b   :  { %6329 = vmatmul.mubr.msk.f32.vlgmr.msra.gmra.mxu1 %vm81_vm1, %v6910_v12 }
0x1b9c   :  { %6343 = vmatpush3.msra.mxu1 %v7416_v10  ;;  %6358 = vmatprep.mubr.msk.f32.mxu1 %vm7075_vm0, %v7074_v0 }
0x1b9d   :  { %6344 = vmatprep.subr.mxu1 %v7074_v0 }
0x1b9e   :  { %6345 = vmatpush3.msra.mxu1 %v7421_v4 }
0x1b9f   :  { %6346 = vmatprep.subr.mxu1 %v7074_v0 }
0x1ba0   :  { %6347 = vmatpush3.msra.mxu1 %v7433_v17 }
0x1ba1   :  { %6348 = vmatprep.subr.mxu1 %v7074_v0 }
0x1ba2   :  { %6349 = vmatpush3.msra.mxu1 %v7447_v27 }
0x1ba3   :  { %6350 = vmatprep.subr.mxu1 %v7074_v0 }
0x1ba4   :  { %6351 = vmatpush3.msra.mxu1 %v7462_v29 }
0x1ba5   :  { %6352 = vmatprep.subr.mxu1 %v7074_v0 }
0x1ba6   :  { %6353 = vmatpush3.msra.mxu1 %v7478_v32 }
0x1ba7   :  { %6354 = vmatprep.subr.mxu1 %v7074_v0 }
0x1ba8   :  { %6355 = vmatpush3.msra.mxu1 %v7487_v34 }
0x1ba9   :  { %6356 = vmatprep.subr.mxu1 %v7074_v0 }
0x1baa   :  { %6357 = vmatpush3.msra.mxu1 %v7496_v35 }
0x1bab   :  { %6361 = vmatprep.subr.mxu1 %v7074_v0 }
0x1c5b   :  { %v1686_v16 = vpop.f32.mrf.mxu1 }
0x1c5c   :  { %v1687_v19 = vadd.f32 %v1686_v16, %v7707_v13 }
0x1c5d   :  { %v6330_v20 = vpop.f32.mrf.mxu1 }
0x1c5e   :  { %v1691_v2 = vadd.f32 %v1690_v18, %v1687_v19 }
0x1c60   :  { %v1693_v21 = vsel %vm1692_vm11, %v1691_v2, -inf }
0x1c61   :  { %1694 = vmax.xlane.f32.xlu0 %v1693_v21 }
0x1cea   :  { %v1695_v6 = vpop.xlane.xlu0 %1694 }
0x1ceb   :  { %vm1696_vm12 = vcmp.ge.f32.partialorder %v1691_v2, %v1695_v6 }
0x1cec   :  { %v1697_v37 = vsel %vm1696_vm12, %v7465_v30, 128 }
0x1ced   :  { %v1698_v39 = vsel %vm1692_vm11, %v1697_v37, 2147483647 }
0x1cee   :  { %v1700_v40 = vshra.s32 %v1698_v39, 16  ;;  %v1699_v42 = vand.u32 65535, %v1698_v39 }
0x1cf0   :  { %v1702_v41 = vcvt.s32.f32 %v1700_v40  ;;  %v1701_v45 = vcvt.s32.f32 %v1699_v42 }
0x1cf2   :  { %1703 = vmin.xlane.f32.xlu0 %v1702_v41 }
0x1d7b   :  { %v1704_v43 = vpop.xlane.xlu0 %1703 }
0x1d7c   :  { %vm1705_vm13 = vcmp.eq.f32.partialorder %v1702_v41, %v1704_v43  ;;  %v1710_v47 = vcvt.f32.s32 %v1704_v43 }
0x1d7d   :  { %v1706_v46 = vsel %vm1705_vm13, %v1701_v45, inf }
0x1d7e   :  { %1707 = vmin.xlane.f32.xlu1 %v1706_v46  ;;  %v1711_v50 = vshll.u32 %v1710_v47, 16 }
0x1e07   :  { %v1708_v49 = vpop.xlane.xlu1 %1707 }
0x1e08   :  { %v1709_v52 = vcvt.f32.s32 %v1708_v49 }
0x1e0a   :  { %v1712_v53 = vadd.s32 %v1711_v50, %v1709_v52 }
0x1e0c   :  { %1714 = vst.msk [vmem:[%s8571_s15] sm:$0x1] %vm1713_vm14, %v1712_v53  ;;  %vm1715_vm15 = vcmp.eq.s32.totalorder %v7465_v30, %v1712_v53 }
0x1e0d   :  { %v5773_v54 = vsel %vm1715_vm15, 1.0, %v7074_v0 }
0x1e0e   :  { %6359 = vmatmul.mubr.msk.f32.vlgmr.msra.gmra.mxu1 %vm1206_vm10, %v5773_v54 }
0x1e0f   :  { %6362 = vmatpush3.xpose.msk.msra.mxu1 %vm81_vm1, %v7586_v8  ;;  %6363 = vmatprep.mubr.msk.f32.mxu1 %vm7075_vm0, %v7074_v0 }
0x1e10   :  { %6382 = vmatprep.subr.mxu1 %v7074_v0 }
0x1ece   :  { %v1857_v55 = vpop.f32.mrf.mxu1 }
0x1ecf   :  { %v1858_v61 = vadd.f32 %v1857_v55, %v7626_v44 }
0x1ed0   :  { %v6360_v62 = vpop.f32.mrf.mxu1 }
0x1ed1   :  { %v1861_v23 = vadd.f32 %v1858_v61, %v7520_v51 }
0x1ed3   :  { %1869 = vrot.lane.b32.xlu0 %v1861_v23, %s7078_s1  ;;  %v5776_v9 = vmul.f32 -1.442695, %v1861_v23 }
0x1ed5   :  { %6911 = vpow2.f32 %v5776_v9 }
0x1ee2   :  { %v6912_v38 = vpop.eup %6911 }
0x1ee3   :  { %v1865_v11 = vadd.f32 1.0, %v6912_v38 }
0x1ee5   :  { %6913 = vrcp.f32 %v1865_v11 }
0x1ef2   :  { %v6914_v12 = vpop.eup %6913 }
0x1ef3   :  { %v1879_v44 = vsub.f32 1.0, %v6914_v12  ;;  %v1885_v6 = vmul.f32 %v6914_v12, %v7569_v14 }
0x1f45   :  { %v1870_v16 = vpop.permute.xlu0 %1869 }
0x1f46   :  { %v1872_v18 = vmul.f32 %v6914_v12, %v1870_v16 }
0x1f48   :  { %1874 = vrot.lane.b32.xlu1 %v1872_v18, %s7076_s3 }
0x1fba   :  { %v1875_v19 = vpop.permute.xlu1 %1874 }
0x1fbb   :  { %v1877_v20 = vadd.f32 %v1875_v19, %v1861_v23 }
0x1fbd   :  { %6915 = vtanh.f32 %v1877_v20 }
0x1fca   :  { %v6916_v2 = vpop.eup %6915 }
0x1fcb   :  { %1881 = vrot.lane.b32.xlu1 %v6916_v2, %s7077_s4 }
0x203d   :  { %v1882_v21 = vpop.permute.xlu1 %1881 }
0x203e   :  { %v1884_v37 = vmul.f32 %v1882_v21, %v1879_v44 }
0x2040   :  { %v7734_v39 = vadd.f32 %v1885_v6, %v1884_v37 }
0x2042   :  { %1888 = vrot.lane.b32.xlu0 %v7734_v39, %s7077_s4 }
0x20b4   :  { %v1889_v40 = vpop.permute.xlu0 %1888 }
0x20b5   :  { %6364 = vmatmul.mubr.msk.f32.vlgmr.msra.gmra.mxu1 %vm81_vm1, %v1889_v40 }
0x20b6   :  { %6383 = vmatpush3.msra.mxu1 %v7543_v15  ;;  %6390 = vmatprep.mubr.msk.f32.mxu1 %vm7075_vm0, %v7074_v0 }
0x20b7   :  { %6384 = vmatprep.subr.mxu1 %v7074_v0 }
0x20b8   :  { %6385 = vmatpush3.msra.mxu1 %v7548_v1 }
0x20b9   :  { %6386 = vmatprep.subr.mxu1 %v7074_v0 }
0x20ba   :  { %6387 = vmatpush3.msra.mxu1 %v7555_v56 }
0x20bb   :  { %6388 = vmatprep.subr.mxu1 %v7074_v0 }
0x20bc   :  { %6389 = vmatpush3.msra.mxu1 %v7563_v48 }
0x20bd   :  { %6391 = vmatmul.mubr.msk.f32.vlgmr.msra.gmra.mxu1 %vm81_vm1, %v1889_v40  ;;  %6404 = vmatprep.subr.mxu1 %v7074_v0 }
0x20be   :  { %6405 = vmatpush3.msra.mxu1 %v7427_v25  ;;  %6412 = vmatprep.mubr.msk.f32.mxu1 %vm7075_vm0, %v7074_v0 }
0x20bf   :  { %6406 = vmatprep.subr.mxu1 %v7074_v0 }
0x20c0   :  { %6407 = vmatpush3.msra.mxu1 %v7439_v26 }
0x20c1   :  { %6408 = vmatprep.subr.mxu1 %v7074_v0 }
0x20c2   :  { %6409 = vmatpush3.msra.mxu1 %v7453_v28 }
0x20c3   :  { %6410 = vmatprep.subr.mxu1 %v7074_v0 }
0x20c4   :  { %6411 = vmatpush3.msra.mxu1 %v7470_v31 }
0x20c5   :  { %6413 = vmatmul.mubr.msk.f32.vlgmr.msra.gmra.mxu1 %vm81_vm1, %v1889_v40  ;;  %6434 = vmatprep.subr.mxu1 %v7074_v0 }
0x20c6   :  { %6435 = vmatpush3.xpose.msk.msra.mxu1 %vm81_vm1, %v7586_v8  ;;  %6436 = vmatprep.mubr.msk.f32.mxu1 %vm7075_vm0, %v7074_v0 }
0x20c7   :  { %6439 = vmatprep.subr.mxu1 %v7074_v0 }
0x2175   :  { %v1958_v14 = vpop.f32.mrf.mxu1 }
0x2176   :  { %v1962_v41 = vsel %vm7619_vm7, %v1958_v14, -1e+30 }
0x2177   :  { %v6365_v42 = vpop.f32.mrf.mxu1  ;;  %v1963_v43 = vsel %vm1386_vm8, %v1962_v41, -inf }
0x2178   :  { %1964 = vmax.xlane.f32.xlu1 %v1963_v43 }
0x217d   :  { %v2186_v45 = vpop.f32.mrf.mxu1 }
0x217f   :  { %v6392_v46 = vpop.f32.mrf.mxu1 }
0x2185   :  { %v7769_v47 = vpop.f32.mrf.mxu1 }
0x2187   :  { %v6414_v49 = vpop.f32.mrf.mxu1 }
0x2201   :  { %v1965_v50 = vpop.xlane.xlu1 %1964 }
0x2202   :  { %v1966_v52 = vsub.f32 %v1962_v41, %v1965_v50 }
0x2204   :  { %v1967_v53 = vmul.f32 1.442695, %v1966_v52 }
0x2206   :  { %6917 = vpow2.f32 %v1967_v53 }
0x2213   :  { %v6918_v54 = vpop.eup %6917 }
0x2214   :  { %v1969_v55 = vsel %vm1386_vm8, %v6918_v54, 0.0 }
0x2215   :  { %1970 = vadd.xlane.f32.xlu0 %v1969_v55 }
0x229e   :  { %v1971_v61 = vpop.xlane.xlu0 %1970 }
0x229f   :  { %6919 = vrcp.f32 %v1971_v61 }
0x22ac   :  { %v6920_v62 = vpop.eup %6919 }
0x22ad   :  { %v1973_v23 = vmul.f32 %v6920_v62, %v6918_v54 }
0x22af   :  { %6369 = vmatmul.mubr.msk.f32.vlgmr.msra.gmra.mxu0 %vm1398_vm9, %v1973_v23 }
0x22b0   :  { %6372 = vmatpush3.msra.mxu0 %v7632_v57  ;;  %6379 = vmatprep.mubr.msk.f32.mxu0 %vm7075_vm0, %v7074_v0 }
0x22b1   :  { %6373 = vmatprep.subr.mxu0 %v7074_v0 }
0x22b2   :  { %6374 = vmatpush3.msra.mxu0 %v7638_v58 }
0x22b3   :  { %6375 = vmatprep.subr.mxu0 %v7074_v0 }
0x22b4   :  { %6376 = vmatpush3.msra.mxu0 %v7647_v59 }
0x22b5   :  { %6377 = vmatprep.subr.mxu0 %v7074_v0 }
0x22b6   :  { %6378 = vmatpush3.msra.mxu0 %v7656_v60 }
0x22b7   :  { %6393 = vmatprep.subr.mxu0 %v7074_v0 }
0x236f   :  { %v2043_v9 = vpop.f32.mrf.mxu0 }
0x2370   :  { %6380 = vmatmul.mubr.msk.f32.vlgmr.msra.gmra.mxu0 %vm81_vm1, %v2043_v9 }
0x2371   :  { %v6370_v38 = vpop.f32.mrf.mxu0  ;;  %6394 = vmatpush3.msra.mxu0 %v7663_v63  ;;  %6401 = vmatprep.mubr.msk.f32.mxu0 %vm7075_vm0, %v7074_v0 }
0x2372   :  { %6395 = vmatprep.subr.mxu0 %v7074_v0 }
0x2373   :  { %6396 = vmatpush3.msra.mxu0 %v7665_v3 }
0x2374   :  { %6397 = vmatprep.subr.mxu0 %v7074_v0 }
0x2375   :  { %6398 = vmatpush3.msra.mxu0 %v7669_v5 }
0x2376   :  { %6399 = vmatprep.subr.mxu0 %v7074_v0 }
0x2377   :  { %6400 = vmatpush3.msra.mxu0 %v7673_v7 }
0x2378   :  { %6415 = vmatprep.subr.mxu0 %v7074_v0 }
0x2430   :  { %v2116_v11 = vpop.f32.mrf.mxu0 }
0x2431   :  { %v2187_v12 = vadd.f32 %v2186_v45, %v2116_v11 }
0x2432   :  { %v6381_v16 = vpop.f32.mrf.mxu0 }
0x2433   :  { %v2190_v18 = vadd.f32 %v2187_v12, %v7682_v33 }
0x2435   :  { %6921 = vtanh.f32 %v2190_v18 }
0x2442   :  { %v6922_v19 = vpop.eup %6921 }
0x2443   :  { %6402 = vmatmul.mubr.msk.f32.vlgmr.msra.gmra.mxu0 %vm81_vm1, %v6922_v19 }
0x2444   :  { %6416 = vmatpush3.msra.mxu0 %v7416_v10  ;;  %6431 = vmatprep.mubr.msk.f32.mxu0 %vm7075_vm0, %v7074_v0 }
0x2445   :  { %6417 = vmatprep.subr.mxu0 %v7074_v0 }
0x2446   :  { %6418 = vmatpush3.msra.mxu0 %v7421_v4  ;;  %v2265_v4 = vld [vmem:[%s8570_s14 + $0x1] sm:$0x1] }
0x2447   :  { %6419 = vmatprep.subr.mxu0 %v7074_v0 }
0x2448   :  { %6420 = vmatpush3.msra.mxu0 %v7433_v17 }
0x2449   :  { %6421 = vmatprep.subr.mxu0 %v7074_v0 }
0x244a   :  { %6422 = vmatpush3.msra.mxu0 %v7447_v27 }
0x244b   :  { %6423 = vmatprep.subr.mxu0 %v7074_v0 }
0x244c   :  { %6424 = vmatpush3.msra.mxu0 %v7462_v29 }
0x244d   :  { %6425 = vmatprep.subr.mxu0 %v7074_v0 }
0x244e   :  { %6426 = vmatpush3.msra.mxu0 %v7478_v32 }
0x244f   :  { %6427 = vmatprep.subr.mxu0 %v7074_v0 }
0x2450   :  { %6428 = vmatpush3.msra.mxu0 %v7487_v34 }
0x2451   :  { %6429 = vmatprep.subr.mxu0 %v7074_v0 }
0x2452   :  { %6430 = vmatpush3.msra.mxu0 %v7496_v35 }
0x2453   :  { %6455 = vmatprep.subr.mxu0 %v7074_v0 }
0x2503   :  { %v2261_v10 = vpop.f32.mrf.mxu0 }
0x2504   :  { %v2262_v17 = vadd.f32 %v2261_v10, %v7707_v13 }
0x2505   :  { %v6403_v27 = vpop.f32.mrf.mxu0 }
0x2506   :  { %v2266_v20 = vadd.f32 %v2265_v4, %v2262_v17 }
0x2508   :  { %v2267_v2 = vsel %vm1692_vm11, %v2266_v20, -inf }
0x2509   :  { %2268 = vmax.xlane.f32.xlu0 %v2267_v2 }
0x2592   :  { %v2269_v44 = vpop.xlane.xlu0 %2268 }
0x2593   :  { %vm2270_vm2 = vcmp.ge.f32.partialorder %v2266_v20, %v2269_v44 }
0x2594   :  { %v2271_v21 = vsel %vm2270_vm2, %v7465_v30, 128 }
0x2595   :  { %v2272_v6 = vsel %vm1692_vm11, %v2271_v21, 2147483647 }
0x2596   :  { %v2274_v37 = vshra.s32 %v2272_v6, 16  ;;  %v2273_v14 = vand.u32 65535, %v2272_v6 }
0x2598   :  { %v2276_v40 = vcvt.s32.f32 %v2274_v37  ;;  %v2275_v42 = vcvt.s32.f32 %v2273_v14 }
0x259a   :  { %2277 = vmin.xlane.f32.xlu1 %v2276_v40 }
0x2623   :  { %v2278_v41 = vpop.xlane.xlu1 %2277 }
0x2624   :  { %vm2279_vm3 = vcmp.eq.f32.partialorder %v2276_v40, %v2278_v41  ;;  %v2284_v45 = vcvt.f32.s32 %v2278_v41 }
0x2625   :  { %v2280_v43 = vsel %vm2279_vm3, %v2275_v42, inf }
0x2626   :  { %2281 = vmin.xlane.f32.xlu0 %v2280_v43  ;;  %v2285_v49 = vshll.u32 %v2284_v45, 16 }
0x26af   :  { %v2282_v46 = vpop.xlane.xlu0 %2281 }
0x26b0   :  { %v2283_v50 = vcvt.f32.s32 %v2282_v46 }
0x26b2   :  { %v2286_v52 = vadd.s32 %v2285_v49, %v2283_v50 }
0x26b4   :  { %2287 = vst.msk [vmem:[%s8571_s15 + $0x1] sm:$0x1] %vm1713_vm14, %v2286_v52  ;;  %vm2288_vm4 = vcmp.eq.s32.totalorder %v7465_v30, %v2286_v52 }
0x26b5   :  { %v5784_v53 = vsel %vm2288_vm4, 1.0, %v7074_v0 }
0x26b6   :  { %6432 = vmatmul.mubr.msk.f32.vlgmr.msra.gmra.mxu0 %vm1206_vm10, %v5784_v53 }
0x26b7   :  { %6456 = vmatpush3.msra.mxu0 %v7543_v15  ;;  %6463 = vmatprep.mubr.msk.f32.mxu0 %vm7075_vm0, %v7074_v0 }
0x26b8   :  { %6457 = vmatprep.subr.mxu0 %v7074_v0 }
0x26b9   :  { %6458 = vmatpush3.msra.mxu0 %v7548_v1 }
0x26ba   :  { %6459 = vmatprep.subr.mxu0 %v7074_v0 }
0x26bb   :  { %6460 = vmatpush3.msra.mxu0 %v7555_v56 }
0x26bc   :  { %6461 = vmatprep.subr.mxu0 %v7074_v0 }
0x26bd   :  { %6462 = vmatpush3.msra.mxu0 %v7563_v48 }
0x26be   :  { %6477 = vmatprep.subr.mxu0 %v7074_v0 }
0x2776   :  { %v2430_v54 = vpop.f32.mrf.mxu0 }
0x2777   :  { %v2431_v55 = vadd.f32 %v2430_v54, %v7769_v47 }
0x2778   :  { %v6433_v61 = vpop.f32.mrf.mxu0 }
0x2779   :  { %v2434_v62 = vadd.f32 %v2431_v55, %v7520_v51  ;;  %v7905_v61 = vld [vmem:[%s8562_s6 + $0x38] sm:$0xff] }
0x277b   :  { %2442 = vrot.lane.b32.xlu1 %v2434_v62, %s7078_s1  ;;  %v5787_v23 = vmul.f32 -1.442695, %v2434_v62 }
0x277d   :  { %6923 = vpow2.f32 %v5787_v23  ;;  %v7921_v23 = vld [vmem:[%s8562_s6 + $0x28] sm:$0xff] }
0x278a   :  { %v6924_v9 = vpop.eup %6923 }
0x278b   :  { %v2438_v38 = vadd.f32 1.0, %v6924_v9  ;;  %v7928_v9 = vld [vmem:[%s8562_s6 + $0x20] sm:$0xff] }
0x278d   :  { %6925 = vrcp.f32 %v2438_v38 }
0x279a   :  { %v6926_v11 = vpop.eup %6925 }
0x279b   :  { %v2452_v47 = vsub.f32 1.0, %v6926_v11  ;;  %v2458_v4 = vmul.f32 %v6926_v11, %v7734_v39 }
0x27ed   :  { %v2443_v12 = vpop.permute.xlu1 %2442 }
0x27ee   :  { %v2445_v16 = vmul.f32 %v6926_v11, %v2443_v12  ;;  %v2838_v11 = vld [vmem:[%s8570_s14 + $0x2] sm:$0x1] }
0x27f0   :  { %2447 = vrot.lane.b32.xlu0 %v2445_v16, %s7076_s3 }
0x2862   :  { %v2448_v18 = vpop.permute.xlu0 %2447 }
0x2863   :  { %v2450_v19 = vadd.f32 %v2448_v18, %v2434_v62  ;;  %v7914_v62 = vld [vmem:[%s8562_s6 + $0x30] sm:$0xff] }
0x2865   :  { %6927 = vtanh.f32 %v2450_v19 }
0x2872   :  { %v6928_v10 = vpop.eup %6927 }
0x2873   :  { %2454 = vrot.lane.b32.xlu1 %v6928_v10, %s7077_s4 }
0x28e5   :  { %v2455_v51 = vpop.permute.xlu1 %2454 }
0x28e6   :  { %v2457_v17 = vmul.f32 %v2455_v51, %v2452_v47 }
0x28e8   :  { %v7844_v27 = vadd.f32 %v2458_v4, %v2457_v17 }
0x28ea   :  { %2461 = vrot.lane.b32.xlu1 %v7844_v27, %s7077_s4 }
0x295c   :  { %v2462_v20 = vpop.permute.xlu1 %2461 }
0x295d   :  { %6437 = vmatmul.mubr.msk.f32.vlgmr.msra.gmra.mxu1 %vm81_vm1, %v2462_v20  ;;  %6464 = vmatmul.mubr.msk.f32.vlgmr.msra.gmra.mxu0 %vm81_vm1, %v2462_v20 }
0x295e   :  { %6440 = vmatpush3.msk.msra.mxu1 %vm7577_vm6, %v7581_v24  ;;  %6478 = vmatpush3.msra.mxu0 %v7427_v25 }
0x295f   :  { %6479 = vmatprep.subr.mxu0 %v7074_v0  ;;  %6485 = vmatprep.mubr.msk.f32.mxu0 %vm7075_vm0, %v7074_v0 }
0x2960   :  { %6480 = vmatpush3.msra.mxu0 %v7439_v26  ;;  %6441 = vmatprep.mubr.msk.f32.mxu1 %vm7075_vm0, %v7074_v0 }
0x2961   :  { %6481 = vmatprep.subr.mxu0 %v7074_v0  ;;  %6444 = vmatprep.subr.mxu1 %v7074_v0 }
0x2962   :  { %6482 = vmatpush3.msra.mxu0 %v7453_v28 }
0x2963   :  { %6483 = vmatprep.subr.mxu0 %v7074_v0 }
0x2964   :  { %6484 = vmatpush3.msra.mxu0 %v7470_v31 }
0x2965   :  { %6486 = vmatmul.mubr.msk.f32.vlgmr.msra.gmra.mxu0 %vm81_vm1, %v2462_v20  ;;  %6507 = vmatprep.subr.mxu0 %v7074_v0 }
0x2966   :  { %6508 = vmatpush3.xpose.msk.msra.mxu0 %vm81_vm1, %v7586_v8  ;;  %6509 = vmatprep.mubr.msk.f32.mxu0 %vm7075_vm0, %v7074_v0 }
0x2967   :  { %6512 = vmatprep.subr.mxu0 %v7074_v0 }
0x2a1d   :  { %v2531_v25 = vpop.f32.mrf.mxu1  ;;  %v2759_v26 = vpop.f32.mrf.mxu0 }
0x2a1e   :  { %v2535_v28 = vsel %vm7619_vm7, %v2531_v25, -1e+30 }
0x2a1f   :  { %v6438_v39 = vpop.f32.mrf.mxu1  ;;  %v6465_v2 = vpop.f32.mrf.mxu0  ;;  %v2536_v31 = vsel %vm1386_vm8, %v2535_v28, -inf }
0x2a20   :  { %2537 = vmax.xlane.f32.xlu0 %v2536_v31 }
0x2a25   :  { %v7875_v44 = vpop.f32.mrf.mxu0 }
0x2a27   :  { %v6487_v21 = vpop.f32.mrf.mxu0 }
0x2aa9   :  { %v2538_v6 = vpop.xlane.xlu0 %2537 }
0x2aaa   :  { %v2539_v37 = vsub.f32 %v2535_v28, %v2538_v6  ;;  %v7968_v6 = vld [vmem:[%s8564_s8] sm:$0x1] }
0x2aac   :  { %v2540_v40 = vmul.f32 1.442695, %v2539_v37 }
0x2aae   :  { %6929 = vpow2.f32 %v2540_v40 }
0x2abb   :  { %v6930_v14 = vpop.eup %6929 }
0x2abc   :  { %v2542_v41 = vsel %vm1386_vm8, %v6930_v14, 0.0 }
0x2abd   :  { %2543 = vadd.xlane.f32.xlu1 %v2542_v41 }
0x2b46   :  { %v2544_v42 = vpop.xlane.xlu1 %2543 }
0x2b47   :  { %6931 = vrcp.f32 %v2544_v42 }
0x2b54   :  { %v6932_v43 = vpop.eup %6931 }
0x2b55   :  { %v2546_v45 = vmul.f32 %v6932_v43, %v6930_v14 }
0x2b57   :  { %6442 = vmatmul.mubr.msk.f32.vlgmr.msra.gmra.mxu1 %vm1398_vm9, %v2546_v45 }
0x2b58   :  { %6445 = vmatpush3.msra.mxu1 %v7632_v57  ;;  %6452 = vmatprep.mubr.msk.f32.mxu1 %vm7075_vm0, %v7074_v0 }
0x2b59   :  { %6446 = vmatprep.subr.mxu1 %v7074_v0 }
0x2b5a   :  { %6447 = vmatpush3.msra.mxu1 %v7638_v58 }
0x2b5b   :  { %6448 = vmatprep.subr.mxu1 %v7074_v0 }
0x2b5c   :  { %6449 = vmatpush3.msra.mxu1 %v7647_v59 }
0x2b5d   :  { %6450 = vmatprep.subr.mxu1 %v7074_v0 }
0x2b5e   :  { %6451 = vmatpush3.msra.mxu1 %v7656_v60 }
0x2b5f   :  { %6466 = vmatprep.subr.mxu1 %v7074_v0 }
0x2c17   :  { %v2616_v46 = vpop.f32.mrf.mxu1 }
0x2c18   :  { %6453 = vmatmul.mubr.msk.f32.vlgmr.msra.gmra.mxu1 %vm81_vm1, %v2616_v46 }
0x2c19   :  { %v6443_v49 = vpop.f32.mrf.mxu1  ;;  %6467 = vmatpush3.msra.mxu1 %v7663_v63  ;;  %6474 = vmatprep.mubr.msk.f32.mxu1 %vm7075_vm0, %v7074_v0 }
0x2c1a   :  { %6468 = vmatprep.subr.mxu1 %v7074_v0 }
0x2c1b   :  { %6469 = vmatpush3.msra.mxu1 %v7665_v3 }
0x2c1c   :  { %6470 = vmatprep.subr.mxu1 %v7074_v0 }
0x2c1d   :  { %6471 = vmatpush3.msra.mxu1 %v7669_v5 }
0x2c1e   :  { %6472 = vmatprep.subr.mxu1 %v7074_v0 }
0x2c1f   :  { %6473 = vmatpush3.msra.mxu1 %v7673_v7 }
0x2c20   :  { %6488 = vmatprep.subr.mxu1 %v7074_v0 }
0x2cd8   :  { %v2689_v50 = vpop.f32.mrf.mxu1 }
0x2cd9   :  { %v2760_v52 = vadd.f32 %v2759_v26, %v2689_v50 }
0x2cda   :  { %v6454_v53 = vpop.f32.mrf.mxu1 }
0x2cdb   :  { %v2763_v54 = vadd.f32 %v2760_v52, %v7682_v33 }
0x2cdd   :  { %6933 = vtanh.f32 %v2763_v54  ;;  %v7987_v54 = vld [vmem:[%s8563_s7 + $0x18] sm:$0xff] }
0x2cea   :  { %v6934_v55 = vpop.eup %6933 }
0x2ceb   :  { %6475 = vmatmul.mubr.msk.f32.vlgmr.msra.gmra.mxu1 %vm81_vm1, %v6934_v55  ;;  %v8006_v55 = vld [vmem:[%s8563_s7 + $0x8] sm:$0xff] }
0x2cec   :  { %6489 = vmatpush3.msra.mxu1 %v7905_v61  ;;  %6504 = vmatprep.mubr.msk.f32.mxu1 %vm7075_vm0, %v7074_v0 }
0x2ced   :  { %6490 = vmatprep.subr.mxu1 %v7074_v0 }
0x2cee   :  { %6491 = vmatpush3.msra.mxu1 %v7914_v62 }
0x2cef   :  { %6492 = vmatprep.subr.mxu1 %v7074_v0 }
0x2cf0   :  { %6493 = vmatpush3.msra.mxu1 %v7921_v23 }
0x2cf1   :  { %6494 = vmatprep.subr.mxu1 %v7074_v0 }
0x2cf2   :  { %6495 = vmatpush3.msra.mxu1 %v7928_v9 }
0x2cf3   :  { %6496 = vmatprep.subr.mxu1 %v7074_v0 }
0x2cf4   :  { %6497 = vmatpush3.msra.mxu1 %v7462_v29 }
0x2cf5   :  { %6498 = vmatprep.subr.mxu1 %v7074_v0 }
0x2cf6   :  { %6499 = vmatpush3.msra.mxu1 %v7478_v32 }
0x2cf7   :  { %6500 = vmatprep.subr.mxu1 %v7074_v0 }
0x2cf8   :  { %6501 = vmatpush3.msra.mxu1 %v7487_v34 }
0x2cf9   :  { %6502 = vmatprep.subr.mxu1 %v7074_v0 }
0x2cfa   :  { %6503 = vmatpush3.msra.mxu1 %v7496_v35 }
0x2cfb   :  { %6528 = vmatprep.subr.mxu1 %v7074_v0 }
0x2dab   :  { %v2834_v38 = vpop.f32.mrf.mxu1 }
0x2dac   :  { %v2835_v29 = vadd.f32 %v2834_v38, %v7707_v13  ;;  %v8013_v38 = vld [vmem:[%s8563_s7] sm:$0xff] }
0x2dad   :  { %v6476_v12 = vpop.f32.mrf.mxu1 }
0x2dae   :  { %v2839_v16 = vadd.f32 %v2838_v11, %v2835_v29 }
0x2db0   :  { %v2840_v32 = vsel %vm1692_vm11, %v2839_v16, -inf }
0x2db1   :  { %2841 = vmax.xlane.f32.xlu0 %v2840_v32 }
0x2e3a   :  { %v2842_v18 = vpop.xlane.xlu0 %2841 }
0x2e3b   :  { %vm2843_vm5 = vcmp.ge.f32.partialorder %v2839_v16, %v2842_v18 }
0x2e3c   :  { %v2844_v34 = vsel %vm2843_vm5, %v7465_v30, 128 }
0x2e3d   :  { %v2845_v35 = vsel %vm1692_vm11, %v2844_v34, 2147483647 }
0x2e3e   :  { %v2847_v19 = vshra.s32 %v2845_v35, 16  ;;  %v2846_v47 = vand.u32 65535, %v2845_v35 }
0x2e40   :  { %v2849_v10 = vcvt.s32.f32 %v2847_v19  ;;  %v2848_v4 = vcvt.s32.f32 %v2846_v47 }
0x2e42   :  { %2850 = vmin.xlane.f32.xlu0 %v2849_v10 }
0x2ecb   :  { %v2851_v51 = vpop.xlane.xlu0 %2850 }
0x2ecc   :  { %vm2852_vm12 = vcmp.eq.f32.partialorder %v2849_v10, %v2851_v51  ;;  %v2857_v20 = vcvt.f32.s32 %v2851_v51 }
0x2ecd   :  { %v2853_v17 = vsel %vm2852_vm12, %v2848_v4, inf }
0x2ece   :  { %2854 = vmin.xlane.f32.xlu1 %v2853_v17  ;;  %v2858_v26 = vshll.u32 %v2857_v20, 16 }
0x2f57   :  { %v2855_v25 = vpop.xlane.xlu1 %2854 }
0x2f58   :  { %v2856_v28 = vcvt.f32.s32 %v2855_v25 }
0x2f5a   :  { %v2859_v39 = vadd.s32 %v2858_v26, %v2856_v28 }
0x2f5c   :  { %2860 = vst.msk [vmem:[%s8571_s15 + $0x2] sm:$0x1] %vm1713_vm14, %v2859_v39  ;;  %vm2861_vm13 = vcmp.eq.s32.totalorder %v7465_v30, %v2859_v39 }
0x2f5d   :  { %v5795_v2 = vsel %vm2861_vm13, 1.0, %v7074_v0 }
0x2f5e   :  { %6505 = vmatmul.mubr.msk.f32.vlgmr.msra.gmra.mxu1 %vm1206_vm10, %v5795_v2  ;;  %v3411_v2 = vld [vmem:[%s8570_s14 + $0x3] sm:$0x1] }
0x2f5f   :  { %6529 = vmatpush3.msra.mxu1 %v7543_v15  ;;  %6536 = vmatprep.mubr.msk.f32.mxu1 %vm7075_vm0, %v7074_v0 }
0x2f60   :  { %6530 = vmatprep.subr.mxu1 %v7074_v0 }
0x2f61   :  { %6531 = vmatpush3.msra.mxu1 %v7548_v1 }
0x2f62   :  { %6532 = vmatprep.subr.mxu1 %v7074_v0 }
0x2f63   :  { %6533 = vmatpush3.msra.mxu1 %v7555_v56 }
0x2f64   :  { %6534 = vmatprep.subr.mxu1 %v7074_v0 }
0x2f65   :  { %6535 = vmatpush3.msra.mxu1 %v7563_v48 }
0x2f66   :  { %6550 = vmatprep.subr.mxu1 %v7074_v0 }
0x301e   :  { %v3003_v31 = vpop.f32.mrf.mxu1 }
0x301f   :  { %v3004_v15 = vadd.f32 %v3003_v31, %v7875_v44 }
0x3020   :  { %v6506_v21 = vpop.f32.mrf.mxu1 }
0x3021   :  { %v3007_v1 = vadd.f32 %v7968_v6, %v3004_v15 }
0x3023   :  { %3015 = vrot.lane.b32.xlu0 %v3007_v1, %s7078_s1  ;;  %v5798_v56 = vmul.f32 -1.442695, %v3007_v1 }
0x3025   :  { %6935 = vpow2.f32 %v5798_v56 }
0x3032   :  { %v6936_v37 = vpop.eup %6935 }
0x3033   :  { %v3011_v40 = vadd.f32 1.0, %v6936_v37 }
0x3035   :  { %6937 = vrcp.f32 %v3011_v40 }
0x3042   :  { %v6938_v48 = vpop.eup %6937 }
0x3043   :  { %v3025_v45 = vsub.f32 1.0, %v6938_v48  ;;  %v3031_v49 = vmul.f32 %v6938_v48, %v7844_v27  ;;  %v7996_v27 = vld [vmem:[%s8563_s7 + $0x10] sm:$0xff] }
0x3095   :  { %v3016_v14 = vpop.permute.xlu0 %3015 }
0x3096   :  { %v3018_v41 = vmul.f32 %v6938_v48, %v3016_v14 }
0x3098   :  { %3020 = vrot.lane.b32.xlu1 %v3018_v41, %s7076_s3 }
0x310a   :  { %v3021_v44 = vpop.permute.xlu1 %3020 }
0x310b   :  { %v3023_v42 = vadd.f32 %v3021_v44, %v3007_v1 }
0x310d   :  { %6939 = vtanh.f32 %v3023_v42 }
0x311a   :  { %v6940_v43 = vpop.eup %6939 }
0x311b   :  { %3027 = vrot.lane.b32.xlu1 %v6940_v43, %s7077_s4 }
0x318d   :  { %v3028_v46 = vpop.permute.xlu1 %3027 }
0x318e   :  { %v3030_v50 = vmul.f32 %v3028_v46, %v3025_v45 }
0x3190   :  { %v7975_v52 = vadd.f32 %v3031_v49, %v3030_v50 }
0x3192   :  { %3034 = vrot.lane.b32.xlu0 %v7975_v52, %s7077_s4 }
0x3204   :  { %v3035_v53 = vpop.permute.xlu0 %3034 }
0x3205   :  { %6510 = vmatmul.mubr.msk.f32.vlgmr.msra.gmra.mxu0 %vm81_vm1, %v3035_v53  ;;  %6537 = vmatmul.mubr.msk.f32.vlgmr.msra.gmra.mxu1 %vm81_vm1, %v3035_v53 }
0x3206   :  { %6513 = vmatpush3.msk.msra.mxu0 %vm7577_vm6, %v7581_v24  ;;  %6551 = vmatpush3.msra.mxu1 %v7987_v54 }
0x3207   :  { %6552 = vmatprep.subr.mxu1 %v7074_v0  ;;  %6558 = vmatprep.mubr.msk.f32.mxu1 %vm7075_vm0, %v7074_v0 }
0x3208   :  { %6553 = vmatpush3.msra.mxu1 %v7996_v27  ;;  %6514 = vmatprep.mubr.msk.f32.mxu0 %vm7075_vm0, %v7074_v0 }
0x3209   :  { %6554 = vmatprep.subr.mxu1 %v7074_v0  ;;  %6517 = vmatprep.subr.mxu0 %v7074_v0 }
0x320a   :  { %6555 = vmatpush3.msra.mxu1 %v8006_v55 }
0x320b   :  { %6556 = vmatprep.subr.mxu1 %v7074_v0 }
0x320c   :  { %6557 = vmatpush3.msra.mxu1 %v8013_v38 }
0x320d   :  { %6559 = vmatmul.mubr.msk.f32.vlgmr.msra.gmra.mxu1 %vm81_vm1, %v3035_v53  ;;  %6580 = vmatprep.subr.mxu1 %v7074_v0 }
0x320e   :  { %6581 = vmatpush3.xpose.msk.msra.mxu1 %vm81_vm1, %v7586_v8  ;;  %6582 = vmatprep.mubr.msk.f32.mxu1 %vm7075_vm0, %v7074_v0 }
0x320f   :  { %6585 = vmatprep.subr.mxu1 %v7074_v0 }
0x32c5   :  { %v3104_v11 = vpop.f32.mrf.mxu0  ;;  %v3332_v29 = vpop.f32.mrf.mxu1 }
0x32c6   :  { %v3108_v12 = vsel %vm7619_vm7, %v3104_v11, -1e+30  ;;  %v8108_v11 = vld [vmem:[%s8565_s9 + $0x18] sm:$0xff] }
0x32c7   :  { %v6511_v16 = vpop.f32.mrf.mxu0  ;;  %v6538_v32 = vpop.f32.mrf.mxu1  ;;  %v3109_v18 = vsel %vm1386_vm8, %v3108_v12, -inf }
0x32c8   :  { %3110 = vmax.xlane.f32.xlu1 %v3109_v18  ;;  %v8131_v16 = vld [vmem:[%s8565_s9] sm:$0xff] }
0x32cd   :  { %v8026_v34 = vpop.f32.mrf.mxu1 }
0x32cf   :  { %v6560_v35 = vpop.f32.mrf.mxu1 }
0x3351   :  { %v3111_v19 = vpop.xlane.xlu1 %3110 }
0x3352   :  { %v3112_v10 = vsub.f32 %v3108_v12, %v3111_v19  ;;  %v8124_v12 = vld [vmem:[%s8565_s9 + $0x8] sm:$0xff] }
0x3354   :  { %v3113_v47 = vmul.f32 1.442695, %v3112_v10 }
0x3356   :  { %6941 = vpow2.f32 %v3113_v47 }
0x3363   :  { %v6942_v51 = vpop.eup %6941 }
0x3364   :  { %v3115_v4 = vsel %vm1386_vm8, %v6942_v51, 0.0 }
0x3365   :  { %3116 = vadd.xlane.f32.xlu0 %v3115_v4 }
0x33ee   :  { %v3117_v17 = vpop.xlane.xlu0 %3116 }
0x33ef   :  { %6943 = vrcp.f32 %v3117_v17 }
0x33fc   :  { %v6944_v20 = vpop.eup %6943 }
0x33fd   :  { %v3119_v25 = vmul.f32 %v6944_v20, %v6942_v51 }
0x33ff   :  { %6515 = vmatmul.mubr.msk.f32.vlgmr.msra.gmra.mxu0 %vm1398_vm9, %v3119_v25 }
0x3400   :  { %6518 = vmatpush3.msra.mxu0 %v7632_v57  ;;  %6525 = vmatprep.mubr.msk.f32.mxu0 %vm7075_vm0, %v7074_v0 }
0x3401   :  { %6519 = vmatprep.subr.mxu0 %v7074_v0 }
0x3402   :  { %6520 = vmatpush3.msra.mxu0 %v7638_v58 }
0x3403   :  { %6521 = vmatprep.subr.mxu0 %v7074_v0 }
0x3404   :  { %6522 = vmatpush3.msra.mxu0 %v7647_v59 }
0x3405   :  { %6523 = vmatprep.subr.mxu0 %v7074_v0 }
0x3406   :  { %6524 = vmatpush3.msra.mxu0 %v7656_v60 }
0x3407   :  { %6539 = vmatprep.subr.mxu0 %v7074_v0 }
0x34bf   :  { %v3189_v26 = vpop.f32.mrf.mxu0 }
0x34c0   :  { %6526 = vmatmul.mubr.msk.f32.vlgmr.msra.gmra.mxu0 %vm81_vm1, %v3189_v26 }
0x34c1   :  { %v6516_v57 = vpop.f32.mrf.mxu0  ;;  %6540 = vmatpush3.msra.mxu0 %v7663_v63  ;;  %6547 = vmatprep.mubr.msk.f32.mxu0 %vm7075_vm0, %v7074_v0 }
0x34c2   :  { %6541 = vmatprep.subr.mxu0 %v7074_v0 }
0x34c3   :  { %6542 = vmatpush3.msra.mxu0 %v7665_v3  ;;  %v8066_v3 = vld [vmem:[%s8562_s6 + $0x18] sm:$0xff] }
0x34c4   :  { %6543 = vmatprep.subr.mxu0 %v7074_v0 }
0x34c5   :  { %6544 = vmatpush3.msra.mxu0 %v7669_v5  ;;  %v8073_v5 = vld [vmem:[%s8562_s6 + $0x10] sm:$0xff] }
0x34c6   :  { %6545 = vmatprep.subr.mxu0 %v7074_v0 }
0x34c7   :  { %6546 = vmatpush3.msra.mxu0 %v7673_v7  ;;  %v8080_v7 = vld [vmem:[%s8562_s6 + $0x8] sm:$0xff] }
0x34c8   :  { %6561 = vmatprep.subr.mxu0 %v7074_v0 }
0x3580   :  { %v3262_v58 = vpop.f32.mrf.mxu0 }
0x3581   :  { %v3333_v59 = vadd.f32 %v3332_v29, %v3262_v58  ;;  %v8117_v29 = vld [vmem:[%s8565_s9 + $0x10] sm:$0xff] }
0x3582   :  { %v6527_v60 = vpop.f32.mrf.mxu0 }
0x3583   :  { %v3336_v63 = vadd.f32 %v3333_v59, %v7682_v33  ;;  %v8087_v33 = vld [vmem:[%s8562_s6] sm:$0xff] }
0x3585   :  { %6945 = vtanh.f32 %v3336_v63 }
0x3592   :  { %v6946_v28 = vpop.eup %6945 }
0x3593   :  { %6548 = vmatmul.mubr.msk.f32.vlgmr.msra.gmra.mxu0 %vm81_vm1, %v6946_v28 }
0x3594   :  { %6562 = vmatpush3.msra.mxu0 %v7905_v61  ;;  %6577 = vmatprep.mubr.msk.f32.mxu0 %vm7075_vm0, %v7074_v0 }
0x3595   :  { %6563 = vmatprep.subr.mxu0 %v7074_v0 }
0x3596   :  { %6564 = vmatpush3.msra.mxu0 %v7914_v62 }
0x3597   :  { %6565 = vmatprep.subr.mxu0 %v7074_v0 }
0x3598   :  { %6566 = vmatpush3.msra.mxu0 %v7921_v23 }
0x3599   :  { %6567 = vmatprep.subr.mxu0 %v7074_v0 }
0x359a   :  { %6568 = vmatpush3.msra.mxu0 %v7928_v9 }
0x359b   :  { %6569 = vmatprep.subr.mxu0 %v7074_v0 }
0x359c   :  { %6570 = vmatpush3.msra.mxu0 %v8066_v3 }
0x359d   :  { %6571 = vmatprep.subr.mxu0 %v7074_v0 }
0x359e   :  { %6572 = vmatpush3.msra.mxu0 %v8073_v5 }
0x359f   :  { %6573 = vmatprep.subr.mxu0 %v7074_v0 }
0x35a0   :  { %6574 = vmatpush3.msra.mxu0 %v8080_v7 }
0x35a1   :  { %6575 = vmatprep.subr.mxu0 %v7074_v0 }
0x35a2   :  { %6576 = vmatpush3.msra.mxu0 %v8087_v33 }
0x35a3   :  { %6601 = vmatprep.subr.mxu0 %v7074_v0 }
0x3653   :  { %v3407_v39 = vpop.f32.mrf.mxu0 }
0x3654   :  { %v3408_v31 = vadd.f32 %v3407_v39, %v7707_v13 }
0x3655   :  { %v6549_v15 = vpop.f32.mrf.mxu0 }
0x3656   :  { %v3412_v21 = vadd.f32 %v3411_v2, %v3408_v31 }
0x3658   :  { %v3413_v1 = vsel %vm1692_vm11, %v3412_v21, -inf }
0x3659   :  { %3414 = vmax.xlane.f32.xlu0 %v3413_v1 }
0x36e2   :  { %v3415_v56 = vpop.xlane.xlu0 %3414 }
0x36e3   :  { %vm3416_vm15 = vcmp.ge.f32.partialorder %v3412_v21, %v3415_v56 }
0x36e4   :  { %v3417_v37 = vsel %vm3416_vm15, %v7465_v30, 128 }
0x36e5   :  { %v3418_v40 = vsel %vm1692_vm11, %v3417_v37, 2147483647 }
0x36e6   :  { %v3420_v48 = vshra.s32 %v3418_v40, 16  ;;  %v3419_v41 = vand.u32 65535, %v3418_v40 }
0x36e8   :  { %v3422_v14 = vcvt.s32.f32 %v3420_v48  ;;  %v3421_v42 = vcvt.s32.f32 %v3419_v41 }
0x36ea   :  { %3423 = vmin.xlane.f32.xlu1 %v3422_v14 }
0x3773   :  { %v3424_v44 = vpop.xlane.xlu1 %3423 }
0x3774   :  { %vm3425_vm2 = vcmp.eq.f32.partialorder %v3422_v14, %v3424_v44  ;;  %v3430_v13 = vcvt.f32.s32 %v3424_v44 }
0x3775   :  { %v3426_v43 = vsel %vm3425_vm2, %v3421_v42, inf }
0x3776   :  { %3427 = vmin.xlane.f32.xlu0 %v3426_v43  ;;  %v3431_v46 = vshll.u32 %v3430_v13, 16  ;;  %v8179_v13 = vld [vmem:[%s8566_s10 + $0x18] sm:$0xff] }
0x37ff   :  { %v3428_v45 = vpop.xlane.xlu0 %3427 }
0x3800   :  { %v3429_v49 = vcvt.f32.s32 %v3428_v45  ;;  %v8188_v45 = vld [vmem:[%s8566_s10 + $0x10] sm:$0xff] }
0x3802   :  { %v3432_v50 = vadd.s32 %v3431_v46, %v3429_v49  ;;  %v8195_v46 = vld [vmem:[%s8566_s10 + $0x8] sm:$0xff]  ;;  %v8202_v49 = vld [vmem:[%s8566_s10] sm:$0xff] }
0x3804   :  { %3433 = vst.msk [vmem:[%s8571_s15 + $0x3] sm:$0x1] %vm1713_vm14, %v3432_v50  ;;  %vm3434_vm3 = vcmp.eq.s32.totalorder %v7465_v30, %v3432_v50 }
0x3805   :  { %v5806_v53 = vsel %vm3434_vm3, 1.0, %v7074_v0 }
0x3806   :  { %6578 = vmatmul.mubr.msk.f32.vlgmr.msra.gmra.mxu0 %vm1206_vm10, %v5806_v53 }
0x3807   :  { %6602 = vmatpush3.msra.mxu0 %v8108_v11  ;;  %6609 = vmatprep.mubr.msk.f32.mxu0 %vm7075_vm0, %v7074_v0 }
0x3808   :  { %6603 = vmatprep.subr.mxu0 %v7074_v0 }
0x3809   :  { %6604 = vmatpush3.msra.mxu0 %v8117_v29 }
0x380a   :  { %6605 = vmatprep.subr.mxu0 %v7074_v0 }
0x380b   :  { %6606 = vmatpush3.msra.mxu0 %v8124_v12 }
0x380c   :  { %6607 = vmatprep.subr.mxu0 %v7074_v0 }
0x380d   :  { %6608 = vmatpush3.msra.mxu0 %v8131_v16 }
0x380e   :  { %6623 = vmatprep.subr.mxu0 %v7074_v0 }
0x38c6   :  { %v3576_v32 = vpop.f32.mrf.mxu0 }
0x38c7   :  { %v3577_v18 = vadd.f32 %v3576_v32, %v8026_v34  ;;  %v8207_v32 = vld [vmem:[#allocation3 + $0x18] sm:$0xff] }
0x38c8   :  { %v6579_v35 = vpop.f32.mrf.mxu0 }
0x38c9   :  { %v3580_v19 = vadd.f32 %v7968_v6, %v3577_v18  ;;  %v8213_v18 = vld [vmem:[#allocation3 + $0x10] sm:$0xff]  ;;  %v8217_v35 = vld [vmem:[#allocation3 + $0x8] sm:$0xff] }
0x38cb   :  { %3588 = vrot.lane.b32.xlu1 %v3580_v19, %s7078_s1  ;;  %v5809_v10 = vmul.f32 -1.442695, %v3580_v19 }
0x38cd   :  { %6947 = vpow2.f32 %v5809_v10 }
0x38da   :  { %v6948_v47 = vpop.eup %6947 }
0x38db   :  { %v3584_v51 = vadd.f32 1.0, %v6948_v47 }
0x38dd   :  { %6949 = vrcp.f32 %v3584_v51 }
0x38ea   :  { %v6950_v4 = vpop.eup %6949 }
0x38eb   :  { %v3598_v34 = vsub.f32 1.0, %v6950_v4  ;;  %v3604_v59 = vmul.f32 %v6950_v4, %v7975_v52 }
0x393d   :  { %v3589_v17 = vpop.permute.xlu1 %3588 }
0x393e   :  { %v3591_v20 = vmul.f32 %v6950_v4, %v3589_v17  ;;  %v8228_v4 = vld [vmem:[%s8567_s11] sm:$0x1] }
0x3940   :  { %3593 = vrot.lane.b32.xlu0 %v3591_v20, %s7076_s3 }
0x39b2   :  { %v3594_v25 = vpop.permute.xlu0 %3593 }
0x39b3   :  { %v3596_v26 = vadd.f32 %v3594_v25, %v3580_v19  ;;  %v8221_v19 = vld [vmem:[#allocation3] sm:$0xff] }
0x39b5   :  { %6951 = vtanh.f32 %v3596_v26  ;;  %v3984_v26 = vld [vmem:[%s8570_s14 + $0x4] sm:$0x1] }
0x39c2   :  { %v6952_v57 = vpop.eup %6951 }
0x39c3   :  { %3600 = vrot.lane.b32.xlu1 %v6952_v57, %s7077_s4  ;;  %v8256_v57 = vld [vmem:[%s8569_s13] sm:$0x1] }
0x3a35   :  { %v3601_v58 = vpop.permute.xlu1 %3600 }
0x3a36   :  { %v3603_v60 = vmul.f32 %v3601_v58, %v3598_v34 }
0x3a38   :  { %v8141_v63 = vadd.f32 %v3604_v59, %v3603_v60 }
0x3a3a   :  { %3607 = vrot.lane.b32.xlu1 %v8141_v63, %s7077_s4 }
0x3aac   :  { %v3608_v28 = vpop.permute.xlu1 %3607 }
0x3aad   :  { %6583 = vmatmul.mubr.msk.f32.vlgmr.msra.gmra.mxu1 %vm81_vm1, %v3608_v28  ;;  %6610 = vmatmul.mubr.msk.f32.vlgmr.msra.gmra.mxu0 %vm81_vm1, %v3608_v28 }
0x3aae   :  { %6586 = vmatpush3.msk.msra.mxu1 %vm7577_vm6, %v7581_v24  ;;  %6624 = vmatpush3.msra.mxu0 %v7987_v54 }
0x3aaf   :  { %6625 = vmatprep.subr.mxu0 %v7074_v0  ;;  %6631 = vmatprep.mubr.msk.f32.mxu0 %vm7075_vm0, %v7074_v0 }
0x3ab0   :  { %6626 = vmatpush3.msra.mxu0 %v7996_v27  ;;  %6587 = vmatprep.mubr.msk.f32.mxu1 %vm7075_vm0, %v7074_v0 }
0x3ab1   :  { %6627 = vmatprep.subr.mxu0 %v7074_v0  ;;  %6590 = vmatprep.subr.mxu1 %v7074_v0 }
0x3ab2   :  { %6628 = vmatpush3.msra.mxu0 %v8006_v55 }
0x3ab3   :  { %6629 = vmatprep.subr.mxu0 %v7074_v0 }
0x3ab4   :  { %6630 = vmatpush3.msra.mxu0 %v8013_v38 }
0x3ab5   :  { %6632 = vmatmul.mubr.msk.f32.vlgmr.msra.gmra.mxu0 %vm81_vm1, %v3608_v28  ;;  %6653 = vmatprep.subr.mxu0 %v7074_v0 }
0x3ab6   :  { %6654 = vmatpush3.xpose.msk.msra.mxu0 %vm81_vm1, %v7586_v8  ;;  %6655 = vmatprep.mubr.msk.f32.mxu0 %vm7075_vm0, %v7074_v0 }
0x3ab7   :  { %6658 = vmatprep.subr.mxu0 %v7074_v0 }
0x3b6d   :  { %v3677_v52 = vpop.f32.mrf.mxu1  ;;  %v3905_v39 = vpop.f32.mrf.mxu0 }
0x3b6e   :  { %v3681_v2 = vsel %vm7619_vm7, %v3677_v52, -1e+30 }
0x3b6f   :  { %v6584_v31 = vpop.f32.mrf.mxu1  ;;  %v6611_v15 = vpop.f32.mrf.mxu0  ;;  %v3682_v21 = vsel %vm1386_vm8, %v3681_v2, -inf }
0x3b70   :  { %3683 = vmax.xlane.f32.xlu0 %v3682_v21 }
0x3b75   :  { %v8172_v1 = vpop.f32.mrf.mxu0 }
0x3b77   :  { %v6633_v56 = vpop.f32.mrf.mxu0 }
0x3bf9   :  { %v3684_v37 = vpop.xlane.xlu0 %3683 }
0x3bfa   :  { %v3685_v40 = vsub.f32 %v3681_v2, %v3684_v37 }
0x3bfc   :  { %v3686_v48 = vmul.f32 1.442695, %v3685_v40 }
0x3bfe   :  { %6953 = vpow2.f32 %v3686_v48 }
0x3c0b   :  { %v6954_v14 = vpop.eup %6953 }
0x3c0c   :  { %v3688_v41 = vsel %vm1386_vm8, %v6954_v14, 0.0 }
0x3c0d   :  { %3689 = vadd.xlane.f32.xlu1 %v3688_v41 }
0x3c96   :  { %v3690_v44 = vpop.xlane.xlu1 %3689 }
0x3c97   :  { %6955 = vrcp.f32 %v3690_v44 }
0x3ca4   :  { %v6956_v42 = vpop.eup %6955 }
0x3ca5   :  { %v3692_v43 = vmul.f32 %v6956_v42, %v6954_v14 }
0x3ca7   :  { %6588 = vmatmul.mubr.msk.f32.vlgmr.msra.gmra.mxu1 %vm1398_vm9, %v3692_v43 }
0x3ca8   :  { %6591 = vmatpush3.msra.mxu1 %v8179_v13  ;;  %6598 = vmatprep.mubr.msk.f32.mxu1 %vm7075_vm0, %v7074_v0 }
0x3ca9   :  { %6592 = vmatprep.subr.mxu1 %v7074_v0 }
0x3caa   :  { %6593 = vmatpush3.msra.mxu1 %v8188_v45 }
0x3cab   :  { %6594 = vmatprep.subr.mxu1 %v7074_v0 }
0x3cac   :  { %6595 = vmatpush3.msra.mxu1 %v8195_v46 }
0x3cad   :  { %6596 = vmatprep.subr.mxu1 %v7074_v0 }
0x3cae   :  { %6597 = vmatpush3.msra.mxu1 %v8202_v49 }
0x3caf   :  { %6612 = vmatprep.subr.mxu1 %v7074_v0 }
0x3d67   :  { %v3762_v50 = vpop.f32.mrf.mxu1 }
0x3d68   :  { %6599 = vmatmul.mubr.msk.f32.vlgmr.msra.gmra.mxu1 %vm81_vm1, %v3762_v50 }
0x3d69   :  { %v6589_v53 = vpop.f32.mrf.mxu1  ;;  %6613 = vmatpush3.msra.mxu1 %v8207_v32  ;;  %6620 = vmatprep.mubr.msk.f32.mxu1 %vm7075_vm0, %v7074_v0 }
0x3d6a   :  { %6614 = vmatprep.subr.mxu1 %v7074_v0 }
0x3d6b   :  { %6615 = vmatpush3.msra.mxu1 %v8213_v18 }
0x3d6c   :  { %6616 = vmatprep.subr.mxu1 %v7074_v0 }
0x3d6d   :  { %6617 = vmatpush3.msra.mxu1 %v8217_v35 }
0x3d6e   :  { %6618 = vmatprep.subr.mxu1 %v7074_v0 }
0x3d6f   :  { %6619 = vmatpush3.msra.mxu1 %v8221_v19 }
0x3d70   :  { %6634 = vmatprep.subr.mxu1 %v7074_v0 }
0x3e28   :  { %v3835_v10 = vpop.f32.mrf.mxu1 }
0x3e29   :  { %v3906_v47 = vadd.f32 %v3905_v39, %v3835_v10 }
0x3e2a   :  { %v6600_v51 = vpop.f32.mrf.mxu1 }
0x3e2b   :  { %v3909_v17 = vadd.f32 %v8228_v4, %v3906_v47 }
0x3e2d   :  { %6957 = vtanh.f32 %v3909_v17 }
0x3e3a   :  { %v6958_v20 = vpop.eup %6957 }
0x3e3b   :  { %6621 = vmatmul.mubr.msk.f32.vlgmr.msra.gmra.mxu1 %vm81_vm1, %v6958_v20 }
0x3e3c   :  { %6635 = vmatpush3.msra.mxu1 %v7905_v61  ;;  %6650 = vmatprep.mubr.msk.f32.mxu1 %vm7075_vm0, %v7074_v0 }
0x3e3d   :  { %6636 = vmatprep.subr.mxu1 %v7074_v0 }
0x3e3e   :  { %6637 = vmatpush3.msra.mxu1 %v7914_v62 }
0x3e3f   :  { %6638 = vmatprep.subr.mxu1 %v7074_v0 }
0x3e40   :  { %6639 = vmatpush3.msra.mxu1 %v7921_v23 }
0x3e41   :  { %6640 = vmatprep.subr.mxu1 %v7074_v0 }
0x3e42   :  { %6641 = vmatpush3.msra.mxu1 %v7928_v9 }
0x3e43   :  { %6642 = vmatprep.subr.mxu1 %v7074_v0 }
0x3e44   :  { %6643 = vmatpush3.msra.mxu1 %v8066_v3 }
0x3e45   :  { %6644 = vmatprep.subr.mxu1 %v7074_v0 }
0x3e46   :  { %6645 = vmatpush3.msra.mxu1 %v8073_v5 }
0x3e47   :  { %6646 = vmatprep.subr.mxu1 %v7074_v0 }
0x3e48   :  { %6647 = vmatpush3.msra.mxu1 %v8080_v7 }
0x3e49   :  { %6648 = vmatprep.subr.mxu1 %v7074_v0 }
0x3e4a   :  { %6649 = vmatpush3.msra.mxu1 %v8087_v33 }
0x3e4b   :  { %6674 = vmatprep.subr.mxu1 %v7074_v0 }
0x3efb   :  { %v3980_v25 = vpop.f32.mrf.mxu1 }
0x3efc   :  { %v3981_v34 = vadd.f32 %v8256_v57, %v3980_v25 }
0x3efd   :  { %v6622_v58 = vpop.f32.mrf.mxu1 }
0x3efe   :  { %v3985_v59 = vadd.f32 %v3984_v26, %v3981_v34 }
0x3f00   :  { %v3986_v60 = vsel %vm1692_vm11, %v3985_v59, -inf }
0x3f01   :  { %3987 = vmax.xlane.f32.xlu0 %v3986_v60 }
0x3f8a   :  { %v3988_v28 = vpop.xlane.xlu0 %3987 }
0x3f8b   :  { %vm3989_vm4 = vcmp.ge.f32.partialorder %v3985_v59, %v3988_v28 }
0x3f8c   :  { %v3990_v52 = vsel %vm3989_vm4, %v7465_v30, 128 }
0x3f8d   :  { %v3991_v39 = vsel %vm1692_vm11, %v3990_v52, 2147483647 }
0x3f8e   :  { %v3993_v2 = vshra.s32 %v3991_v39, 16  ;;  %v3992_v15 = vand.u32 65535, %v3991_v39 }
0x3f90   :  { %v3995_v31 = vcvt.s32.f32 %v3993_v2  ;;  %v3994_v56 = vcvt.s32.f32 %v3992_v15 }
0x3f92   :  { %3996 = vmin.xlane.f32.xlu0 %v3995_v31 }
0x401b   :  { %v3997_v21 = vpop.xlane.xlu0 %3996 }
0x401c   :  { %vm3998_vm5 = vcmp.eq.f32.partialorder %v3995_v31, %v3997_v21  ;;  %v4003_v40 = vcvt.f32.s32 %v3997_v21 }
0x401d   :  { %v3999_v37 = vsel %vm3998_vm5, %v3994_v56, inf }
0x401e   :  { %4000 = vmin.xlane.f32.xlu1 %v3999_v37  ;;  %v4004_v14 = vshll.u32 %v4003_v40, 16 }
0x40a7   :  { %v4001_v48 = vpop.xlane.xlu1 %4000 }
0x40a8   :  { %v4002_v41 = vcvt.f32.s32 %v4001_v48 }
0x40aa   :  { %v4005_v44 = vadd.s32 %v4004_v14, %v4002_v41 }
0x40ac   :  { %4006 = vst.msk [vmem:[%s8571_s15 + $0x4] sm:$0x1] %vm1713_vm14, %v4005_v44  ;;  %vm4007_vm12 = vcmp.eq.s32.totalorder %v7465_v30, %v4005_v44 }
0x40ad   :  { %v5817_v42 = vsel %vm4007_vm12, 1.0, %v7074_v0 }
0x40ae   :  { %6651 = vmatmul.mubr.msk.f32.vlgmr.msra.gmra.mxu1 %vm1206_vm10, %v5817_v42 }
0x40af   :  { %6675 = vmatpush3.msra.mxu1 %v8108_v11  ;;  %6682 = vmatprep.mubr.msk.f32.mxu1 %vm7075_vm0, %v7074_v0 }
0x40b0   :  { %6676 = vmatprep.subr.mxu1 %v7074_v0 }
0x40b1   :  { %6677 = vmatpush3.msra.mxu1 %v8117_v29 }
0x40b2   :  { %6678 = vmatprep.subr.mxu1 %v7074_v0 }
0x40b3   :  { %6679 = vmatpush3.msra.mxu1 %v8124_v12 }
0x40b4   :  { %6680 = vmatprep.subr.mxu1 %v7074_v0 }
0x40b5   :  { %6681 = vmatpush3.msra.mxu1 %v8131_v16 }
0x40b6   :  { %6696 = vmatprep.subr.mxu1 %v7074_v0 }
0x416e   :  { %v4149_v43 = vpop.f32.mrf.mxu1 }
0x416f   :  { %v4150_v50 = vadd.f32 %v4149_v43, %v8172_v1 }
0x4170   :  { %v6652_v53 = vpop.f32.mrf.mxu1 }
0x4171   :  { %v4153_v10 = vadd.f32 %v7968_v6, %v4150_v50 }
0x4173   :  { %4161 = vrot.lane.b32.xlu0 %v4153_v10, %s7078_s1  ;;  %v5820_v47 = vmul.f32 -1.442695, %v4153_v10 }
0x4175   :  { %6959 = vpow2.f32 %v5820_v47 }
0x4182   :  { %v6960_v51 = vpop.eup %6959 }
0x4183   :  { %v4157_v17 = vadd.f32 1.0, %v6960_v51 }
0x4185   :  { %6961 = vrcp.f32 %v4157_v17 }
0x4192   :  { %v6962_v20 = vpop.eup %6961 }
0x4193   :  { %v4171_v1 = vsub.f32 1.0, %v6962_v20  ;;  %v4177_v28 = vmul.f32 %v6962_v20, %v8141_v63 }
0x41e5   :  { %v4162_v25 = vpop.permute.xlu0 %4161 }
0x41e6   :  { %v4164_v26 = vmul.f32 %v6962_v20, %v4162_v25 }
0x41e8   :  { %4166 = vrot.lane.b32.xlu1 %v4164_v26, %s7076_s3 }
0x425a   :  { %v4167_v34 = vpop.permute.xlu1 %4166 }
0x425b   :  { %v4169_v58 = vadd.f32 %v4167_v34, %v4153_v10 }
0x425d   :  { %6963 = vtanh.f32 %v4169_v58 }
0x426a   :  { %v6964_v59 = vpop.eup %6963 }
0x426b   :  { %4173 = vrot.lane.b32.xlu1 %v6964_v59, %s7077_s4 }
0x42dd   :  { %v4174_v60 = vpop.permute.xlu1 %4173 }
0x42de   :  { %v4176_v52 = vmul.f32 %v4174_v60, %v4171_v1 }
0x42e0   :  { %v8285_v39 = vadd.f32 %v4177_v28, %v4176_v52 }
0x42e2   :  { %4180 = vrot.lane.b32.xlu0 %v8285_v39, %s7077_s4 }
0x4354   :  { %v4181_v2 = vpop.permute.xlu0 %4180 }
0x4355   :  { %6656 = vmatmul.mubr.msk.f32.vlgmr.msra.gmra.mxu0 %vm81_vm1, %v4181_v2  ;;  %6683 = vmatmul.mubr.msk.f32.vlgmr.msra.gmra.mxu1 %vm81_vm1, %v4181_v2 }
0x4356   :  { %6659 = vmatpush3.msk.msra.mxu0 %vm7577_vm6, %v7581_v24  ;;  %6697 = vmatpush3.msra.mxu1 %v7987_v54 }
0x4357   :  { %6698 = vmatprep.subr.mxu1 %v7074_v0  ;;  %6704 = vmatprep.mubr.msk.f32.mxu1 %vm7075_vm0, %v7074_v0 }
0x4358   :  { %6699 = vmatpush3.msra.mxu1 %v7996_v27  ;;  %6660 = vmatprep.mubr.msk.f32.mxu0 %vm7075_vm0, %v7074_v0 }
0x4359   :  { %6700 = vmatprep.subr.mxu1 %v7074_v0  ;;  %6663 = vmatprep.subr.mxu0 %v7074_v0 }
0x435a   :  { %6701 = vmatpush3.msra.mxu1 %v8006_v55 }
0x435b   :  { %6702 = vmatprep.subr.mxu1 %v7074_v0 }
0x435c   :  { %6703 = vmatpush3.msra.mxu1 %v8013_v38 }
0x435d   :  { %6705 = vmatmul.mubr.msk.f32.vlgmr.msra.gmra.mxu1 %vm81_vm1, %v4181_v2  ;;  %6726 = vmatprep.subr.mxu1 %v7074_v0 }
0x435e   :  { %6727 = vmatpush3.xpose.msk.msra.mxu1 %vm81_vm1, %v7586_v8  ;;  %6728 = vmatprep.mubr.msk.f32.mxu1 %vm7075_vm0, %v7074_v0 }
0x435f   :  { %6731 = vmatprep.subr.mxu1 %v7074_v0 }
0x4415   :  { %v4250_v63 = vpop.f32.mrf.mxu0  ;;  %v4478_v31 = vpop.f32.mrf.mxu1 }
0x4416   :  { %v4254_v15 = vsel %vm7619_vm7, %v4250_v63, -1e+30 }
0x4417   :  { %v6657_v21 = vpop.f32.mrf.mxu0  ;;  %v6684_v56 = vpop.f32.mrf.mxu1  ;;  %v4255_v37 = vsel %vm1386_vm8, %v4254_v15, -inf }
0x4418   :  { %4256 = vmax.xlane.f32.xlu1 %v4255_v37 }
0x441d   :  { %v8316_v40 = vpop.f32.mrf.mxu1 }
0x441f   :  { %v6706_v48 = vpop.f32.mrf.mxu1 }
0x44a1   :  { %v4257_v14 = vpop.xlane.xlu1 %4256 }
0x44a2   :  { %v4258_v41 = vsub.f32 %v4254_v15, %v4257_v14 }
0x44a4   :  { %v4259_v44 = vmul.f32 1.442695, %v4258_v41 }
0x44a6   :  { %6965 = vpow2.f32 %v4259_v44 }
0x44b3   :  { %v6966_v42 = vpop.eup %6965 }
0x44b4   :  { %v4261_v43 = vsel %vm1386_vm8, %v6966_v42, 0.0 }
0x44b5   :  { %4262 = vadd.xlane.f32.xlu0 %v4261_v43 }
0x453e   :  { %v4263_v50 = vpop.xlane.xlu0 %4262 }
0x453f   :  { %6967 = vrcp.f32 %v4263_v50 }
0x454c   :  { %v6968_v53 = vpop.eup %6967 }
0x454d   :  { %v4265_v10 = vmul.f32 %v6968_v53, %v6966_v42 }
0x454f   :  { %6661 = vmatmul.mubr.msk.f32.vlgmr.msra.gmra.mxu0 %vm1398_vm9, %v4265_v10 }
0x4550   :  { %6664 = vmatpush3.msra.mxu0 %v8179_v13  ;;  %6671 = vmatprep.mubr.msk.f32.mxu0 %vm7075_vm0, %v7074_v0 }
0x4551   :  { %6665 = vmatprep.subr.mxu0 %v7074_v0 }
0x4552   :  { %6666 = vmatpush3.msra.mxu0 %v8188_v45 }
0x4553   :  { %6667 = vmatprep.subr.mxu0 %v7074_v0 }
0x4554   :  { %6668 = vmatpush3.msra.mxu0 %v8195_v46 }
0x4555   :  { %6669 = vmatprep.subr.mxu0 %v7074_v0 }
0x4556   :  { %6670 = vmatpush3.msra.mxu0 %v8202_v49 }
0x4557   :  { %6685 = vmatprep.subr.mxu0 %v7074_v0 }
0x460f   :  { %v4335_v47 = vpop.f32.mrf.mxu0 }
0x4610   :  { %6672 = vmatmul.mubr.msk.f32.vlgmr.msra.gmra.mxu0 %vm81_vm1, %v4335_v47 }
0x4611   :  { %v6662_v51 = vpop.f32.mrf.mxu0  ;;  %6686 = vmatpush3.msra.mxu0 %v8207_v32  ;;  %6693 = vmatprep.mubr.msk.f32.mxu0 %vm7075_vm0, %v7074_v0 }
0x4612   :  { %6687 = vmatprep.subr.mxu0 %v7074_v0 }
0x4613   :  { %6688 = vmatpush3.msra.mxu0 %v8213_v18 }
0x4614   :  { %6689 = vmatprep.subr.mxu0 %v7074_v0 }
0x4615   :  { %6690 = vmatpush3.msra.mxu0 %v8217_v35 }
0x4616   :  { %6691 = vmatprep.subr.mxu0 %v7074_v0 }
0x4617   :  { %6692 = vmatpush3.msra.mxu0 %v8221_v19 }
0x4618   :  { %6707 = vmatprep.subr.mxu0 %v7074_v0 }
0x46d0   :  { %v4408_v17 = vpop.f32.mrf.mxu0 }
0x46d1   :  { %v4479_v20 = vadd.f32 %v4478_v31, %v4408_v17 }
0x46d2   :  { %v6673_v25 = vpop.f32.mrf.mxu0 }
0x46d3   :  { %v4482_v26 = vadd.f32 %v8228_v4, %v4479_v20 }
0x46d5   :  { %6969 = vtanh.f32 %v4482_v26 }
0x46e2   :  { %v6970_v34 = vpop.eup %6969 }
0x46e3   :  { %6694 = vmatmul.mubr.msk.f32.vlgmr.msra.gmra.mxu0 %vm81_vm1, %v6970_v34 }
0x46e4   :  { %6708 = vmatpush3.msra.mxu0 %v7905_v61  ;;  %6723 = vmatprep.mubr.msk.f32.mxu0 %vm7075_vm0, %v7074_v0 }
0x46e5   :  { %6709 = vmatprep.subr.mxu0 %v7074_v0 }
0x46e6   :  { %6710 = vmatpush3.msra.mxu0 %v7914_v62  ;;  %v4557_v62 = vld [vmem:[%s8570_s14 + $0x5] sm:$0x1] }
0x46e7   :  { %6711 = vmatprep.subr.mxu0 %v7074_v0 }
0x46e8   :  { %6712 = vmatpush3.msra.mxu0 %v7921_v23 }
0x46e9   :  { %6713 = vmatprep.subr.mxu0 %v7074_v0 }
0x46ea   :  { %6714 = vmatpush3.msra.mxu0 %v7928_v9 }
0x46eb   :  { %6715 = vmatprep.subr.mxu0 %v7074_v0 }
0x46ec   :  { %6716 = vmatpush3.msra.mxu0 %v8066_v3 }
0x46ed   :  { %6717 = vmatprep.subr.mxu0 %v7074_v0 }
0x46ee   :  { %6718 = vmatpush3.msra.mxu0 %v8073_v5 }
0x46ef   :  { %6719 = vmatprep.subr.mxu0 %v7074_v0 }
0x46f0   :  { %6720 = vmatpush3.msra.mxu0 %v8080_v7 }
0x46f1   :  { %6721 = vmatprep.subr.mxu0 %v7074_v0 }
0x46f2   :  { %6722 = vmatpush3.msra.mxu0 %v8087_v33 }
0x46f3   :  { %6747 = vmatprep.subr.mxu0 %v7074_v0 }
0x47a3   :  { %v4553_v61 = vpop.f32.mrf.mxu0 }
0x47a4   :  { %v4554_v23 = vadd.f32 %v8256_v57, %v4553_v61 }
0x47a5   :  { %v6695_v9 = vpop.f32.mrf.mxu0 }
0x47a6   :  { %v4558_v58 = vadd.f32 %v4557_v62, %v4554_v23 }
0x47a8   :  { %v4559_v59 = vsel %vm1692_vm11, %v4558_v58, -inf }
0x47a9   :  { %4560 = vmax.xlane.f32.xlu0 %v4559_v59 }
0x4832   :  { %v4561_v1 = vpop.xlane.xlu0 %4560 }
0x4833   :  { %vm4562_vm13 = vcmp.ge.f32.partialorder %v4558_v58, %v4561_v1 }
0x4834   :  { %v4563_v60 = vsel %vm4562_vm13, %v7465_v30, 128 }
0x4835   :  { %v4564_v28 = vsel %vm1692_vm11, %v4563_v60, 2147483647 }
0x4836   :  { %v4566_v52 = vshra.s32 %v4564_v28, 16  ;;  %v4565_v63 = vand.u32 65535, %v4564_v28 }
0x4838   :  { %v4568_v2 = vcvt.s32.f32 %v4566_v52  ;;  %v4567_v15 = vcvt.s32.f32 %v4565_v63 }
0x483a   :  { %4569 = vmin.xlane.f32.xlu1 %v4568_v2 }
0x48c3   :  { %v4570_v31 = vpop.xlane.xlu1 %4569 }
0x48c4   :  { %vm4571_vm15 = vcmp.eq.f32.partialorder %v4568_v2, %v4570_v31  ;;  %v4576_v56 = vcvt.f32.s32 %v4570_v31 }
0x48c5   :  { %v4572_v21 = vsel %vm4571_vm15, %v4567_v15, inf }
0x48c6   :  { %4573 = vmin.xlane.f32.xlu0 %v4572_v21  ;;  %v4577_v48 = vshll.u32 %v4576_v56, 16 }
0x494f   :  { %v4574_v37 = vpop.xlane.xlu0 %4573 }
0x4950   :  { %v4575_v14 = vcvt.f32.s32 %v4574_v37 }
0x4952   :  { %v4578_v41 = vadd.s32 %v4577_v48, %v4575_v14 }
0x4954   :  { %4579 = vst.msk [vmem:[%s8571_s15 + $0x5] sm:$0x1] %vm1713_vm14, %v4578_v41  ;;  %vm4580_vm2 = vcmp.eq.s32.totalorder %v7465_v30, %v4578_v41 }
0x4955   :  { %v5828_v44 = vsel %vm4580_vm2, 1.0, %v7074_v0 }
0x4956   :  { %6724 = vmatmul.mubr.msk.f32.vlgmr.msra.gmra.mxu0 %vm1206_vm10, %v5828_v44 }
0x4957   :  { %6748 = vmatpush3.msra.mxu0 %v8108_v11  ;;  %6755 = vmatprep.mubr.msk.f32.mxu0 %vm7075_vm0, %v7074_v0 }
0x4958   :  { %6749 = vmatprep.subr.mxu0 %v7074_v0 }
0x4959   :  { %6750 = vmatpush3.msra.mxu0 %v8117_v29 }
0x495a   :  { %6751 = vmatprep.subr.mxu0 %v7074_v0 }
0x495b   :  { %6752 = vmatpush3.msra.mxu0 %v8124_v12 }
0x495c   :  { %6753 = vmatprep.subr.mxu0 %v7074_v0 }
0x495d   :  { %6754 = vmatpush3.msra.mxu0 %v8131_v16 }
0x495e   :  { %6769 = vmatprep.subr.mxu0 %v7074_v0 }
0x4a16   :  { %v4722_v42 = vpop.f32.mrf.mxu0 }
0x4a17   :  { %v4723_v43 = vadd.f32 %v4722_v42, %v8316_v40 }
0x4a18   :  { %v6725_v50 = vpop.f32.mrf.mxu0 }
0x4a19   :  { %v4726_v53 = vadd.f32 %v7968_v6, %v4723_v43  ;;  %v7022_v43 = vld [vmem:[%s8562_s6 + $0x38] sm:$0xff]  ;;  %v7023_v50 = vld [vmem:[%s8562_s6 + $0x30] sm:$0xff] }
0x4a1b   :  { %4734 = vrot.lane.b32.xlu1 %v4726_v53, %s7078_s1  ;;  %v5831_v10 = vmul.f32 -1.442695, %v4726_v53 }
0x4a1d   :  { %6971 = vpow2.f32 %v5831_v10  ;;  %v7025_v10 = vld [vmem:[%s8562_s6 + $0x20] sm:$0xff] }
0x4a2a   :  { %v6972_v47 = vpop.eup %6971 }
0x4a2b   :  { %v4730_v51 = vadd.f32 1.0, %v6972_v47 }
0x4a2d   :  { %6973 = vrcp.f32 %v4730_v51  ;;  %v5130_v51 = vld [vmem:[%s8570_s14 + $0x6] sm:$0x1] }
0x4a3a   :  { %v6974_v17 = vpop.eup %6973 }
0x4a3b   :  { %v4744_v40 = vsub.f32 1.0, %v6974_v17  ;;  %v4750_v62 = vmul.f32 %v6974_v17, %v8285_v39 }
0x4a8d   :  { %v4735_v20 = vpop.permute.xlu1 %4734 }
0x4a8e   :  { %v4737_v25 = vmul.f32 %v6974_v17, %v4735_v20 }
0x4a90   :  { %4739 = vrot.lane.b32.xlu0 %v4737_v25, %s7076_s3 }
0x4b02   :  { %v4740_v26 = vpop.permute.xlu0 %4739 }
0x4b03   :  { %v4742_v34 = vadd.f32 %v4740_v26, %v4726_v53  ;;  %v7024_v53 = vld [vmem:[%s8562_s6 + $0x28] sm:$0xff] }
0x4b05   :  { %6975 = vtanh.f32 %v4742_v34 }
0x4b12   :  { %v6976_v61 = vpop.eup %6975 }
0x4b13   :  { %4746 = vrot.lane.b32.xlu1 %v6976_v61, %s7077_s4 }
0x4b85   :  { %v4747_v6 = vpop.permute.xlu1 %4746 }
0x4b86   :  { %v4749_v23 = vmul.f32 %v4747_v6, %v4744_v40 }
0x4b88   :  { %v8391_v9 = vadd.f32 %v4750_v62, %v4749_v23 }
0x4b8a   :  { %4753 = vrot.lane.b32.xlu1 %v8391_v9, %s7077_s4 }
0x4bfc   :  { %v4754_v58 = vpop.permute.xlu1 %4753 }
0x4bfd   :  { %6729 = vmatmul.mubr.msk.f32.vlgmr.msra.gmra.mxu1 %vm81_vm1, %v4754_v58  ;;  %6756 = vmatmul.mubr.msk.f32.vlgmr.msra.gmra.mxu0 %vm81_vm1, %v4754_v58 }
0x4bfe   :  { %6732 = vmatpush3.msk.msra.mxu1 %vm7577_vm6, %v7581_v24  ;;  %6770 = vmatpush3.msra.mxu0 %v7987_v54 }
0x4bff   :  { %6771 = vmatprep.subr.mxu0 %v7074_v0  ;;  %6777 = vmatprep.mubr.msk.f32.mxu0 %vm7075_vm0, %v7074_v0 }
0x4c00   :  { %6772 = vmatpush3.msra.mxu0 %v7996_v27  ;;  %6733 = vmatprep.mubr.msk.f32.mxu1 %vm7075_vm0, %v7074_v0 }
0x4c01   :  { %6773 = vmatprep.subr.mxu0 %v7074_v0  ;;  %6736 = vmatprep.subr.mxu1 %v7074_v0 }
0x4c02   :  { %6774 = vmatpush3.msra.mxu0 %v8006_v55 }
0x4c03   :  { %6775 = vmatprep.subr.mxu0 %v7074_v0 }
0x4c04   :  { %6776 = vmatpush3.msra.mxu0 %v8013_v38 }
0x4c05   :  { %6778 = vmatmul.mubr.msk.f32.vlgmr.msra.gmra.mxu0 %vm81_vm1, %v4754_v58  ;;  %6799 = vmatprep.subr.mxu0 %v7074_v0 }
0x4c06   :  { %6800 = vmatpush3.xpose.msk.msra.mxu0 %vm81_vm1, %v7586_v8  ;;  %6801 = vmatprep.mubr.msk.f32.mxu0 %vm7075_vm0, %v7074_v0 }
0x4c07   :  { %6804 = vmatprep.subr.mxu0 %v7074_v0 }
0x4cbd   :  { %v4823_v54 = vpop.f32.mrf.mxu1  ;;  %v5051_v27 = vpop.f32.mrf.mxu0 }
0x4cbe   :  { %v4827_v55 = vsel %vm7619_vm7, %v4823_v54, -1e+30 }
0x4cbf   :  { %v4828_v39 = vsel %vm1386_vm8, %v4827_v55, -inf  ;;  %v6730_v38 = vpop.f32.mrf.mxu1  ;;  %v6757_v59 = vpop.f32.mrf.mxu0 }
0x4cc0   :  { %4829 = vmax.xlane.f32.xlu0 %v4828_v39 }
0x4cc5   :  { %v8422_v1 = vpop.f32.mrf.mxu0 }
0x4cc7   :  { %v6779_v60 = vpop.f32.mrf.mxu0 }
0x4d49   :  { %v4830_v28 = vpop.xlane.xlu0 %4829 }
0x4d4a   :  { %v4831_v8 = vsub.f32 %v4827_v55, %v4830_v28 }
0x4d4c   :  { %v4832_v52 = vmul.f32 1.442695, %v4831_v8 }
0x4d4e   :  { %6977 = vpow2.f32 %v4832_v52 }
0x4d5b   :  { %v6978_v2 = vpop.eup %6977 }
0x4d5c   :  { %v4834_v63 = vsel %vm1386_vm8, %v6978_v2, 0.0 }
0x4d5d   :  { %4835 = vadd.xlane.f32.xlu1 %v4834_v63 }
0x4de6   :  { %v4836_v31 = vpop.xlane.xlu1 %4835 }
0x4de7   :  { %6979 = vrcp.f32 %v4836_v31 }
0x4df4   :  { %v6980_v15 = vpop.eup %6979 }
0x4df5   :  { %v4838_v21 = vmul.f32 %v6980_v15, %v6978_v2 }
0x4df7   :  { %6734 = vmatmul.mubr.msk.f32.vlgmr.msra.gmra.mxu1 %vm1398_vm9, %v4838_v21 }
0x4df8   :  { %6737 = vmatpush3.msra.mxu1 %v8179_v13  ;;  %6744 = vmatprep.mubr.msk.f32.mxu1 %vm7075_vm0, %v7074_v0 }
0x4df9   :  { %6738 = vmatprep.subr.mxu1 %v7074_v0 }
0x4dfa   :  { %6739 = vmatpush3.msra.mxu1 %v8188_v45 }
0x4dfb   :  { %6740 = vmatprep.subr.mxu1 %v7074_v0 }
0x4dfc   :  { %6741 = vmatpush3.msra.mxu1 %v8195_v46 }
0x4dfd   :  { %6742 = vmatprep.subr.mxu1 %v7074_v0 }
0x4dfe   :  { %6743 = vmatpush3.msra.mxu1 %v8202_v49 }
0x4dff   :  { %6758 = vmatprep.subr.mxu1 %v7074_v0 }
0x4eb7   :  { %v4908_v56 = vpop.f32.mrf.mxu1 }
0x4eb8   :  { %6745 = vmatmul.mubr.msk.f32.vlgmr.msra.gmra.mxu1 %vm81_vm1, %v4908_v56 }
0x4eb9   :  { %v6735_v37 = vpop.f32.mrf.mxu1  ;;  %6759 = vmatpush3.msra.mxu1 %v8207_v32  ;;  %6766 = vmatprep.mubr.msk.f32.mxu1 %vm7075_vm0, %v7074_v0 }
0x4eba   :  { %6760 = vmatprep.subr.mxu1 %v7074_v0 }
0x4ebb   :  { %6761 = vmatpush3.msra.mxu1 %v8213_v18 }
0x4ebc   :  { %6762 = vmatprep.subr.mxu1 %v7074_v0 }
0x4ebd   :  { %6763 = vmatpush3.msra.mxu1 %v8217_v35 }
0x4ebe   :  { %6764 = vmatprep.subr.mxu1 %v7074_v0 }
0x4ebf   :  { %6765 = vmatpush3.msra.mxu1 %v8221_v19 }
0x4ec0   :  { %6780 = vmatprep.subr.mxu1 %v7074_v0 }
0x4f78   :  { %v4981_v48 = vpop.f32.mrf.mxu1 }
0x4f79   :  { %v5052_v14 = vadd.f32 %v5051_v27, %v4981_v48 }
0x4f7a   :  { %v6746_v41 = vpop.f32.mrf.mxu1 }
0x4f7b   :  { %v5055_v44 = vadd.f32 %v8228_v4, %v5052_v14 }
0x4f7d   :  { %6981 = vtanh.f32 %v5055_v44 }
0x4f8a   :  { %v6982_v42 = vpop.eup %6981 }
0x4f8b   :  { %6767 = vmatmul.mubr.msk.f32.vlgmr.msra.gmra.mxu1 %vm81_vm1, %v6982_v42 }
0x4f8c   :  { %6781 = vmatpush3.msra.mxu1 %v7022_v43  ;;  %6796 = vmatprep.mubr.msk.f32.mxu1 %vm7075_vm0, %v7074_v0 }
0x4f8d   :  { %6782 = vmatprep.subr.mxu1 %v7074_v0 }
0x4f8e   :  { %6783 = vmatpush3.msra.mxu1 %v7023_v50 }
0x4f8f   :  { %6784 = vmatprep.subr.mxu1 %v7074_v0 }
0x4f90   :  { %6785 = vmatpush3.msra.mxu1 %v7024_v53 }
0x4f91   :  { %6786 = vmatprep.subr.mxu1 %v7074_v0 }
0x4f92   :  { %6787 = vmatpush3.msra.mxu1 %v7025_v10 }
0x4f93   :  { %6788 = vmatprep.subr.mxu1 %v7074_v0 }
0x4f94   :  { %6789 = vmatpush3.msra.mxu1 %v8066_v3 }
0x4f95   :  { %6790 = vmatprep.subr.mxu1 %v7074_v0 }
0x4f96   :  { %6791 = vmatpush3.msra.mxu1 %v8073_v5 }
0x4f97   :  { %6792 = vmatprep.subr.mxu1 %v7074_v0 }
0x4f98   :  { %6793 = vmatpush3.msra.mxu1 %v8080_v7 }
0x4f99   :  { %6794 = vmatprep.subr.mxu1 %v7074_v0 }
0x4f9a   :  { %6795 = vmatpush3.msra.mxu1 %v8087_v33 }
0x4f9b   :  { %6820 = vmatprep.subr.mxu1 %v7074_v0 }
0x504b   :  { %v5126_v47 = vpop.f32.mrf.mxu1 }
0x504c   :  { %v5127_v3 = vadd.f32 %v8256_v57, %v5126_v47 }
0x504d   :  { %v6768_v17 = vpop.f32.mrf.mxu1 }
0x504e   :  { %v5131_v20 = vadd.f32 %v5130_v51, %v5127_v3 }
0x5050   :  { %v5132_v5 = vsel %vm1692_vm11, %v5131_v20, -inf }
0x5051   :  { %5133 = vmax.xlane.f32.xlu0 %v5132_v5 }
0x50da   :  { %v5134_v25 = vpop.xlane.xlu0 %5133 }
0x50db   :  { %vm5135_vm3 = vcmp.ge.f32.partialorder %v5131_v20, %v5134_v25 }
0x50dc   :  { %v5136_v7 = vsel %vm5135_vm3, %v7465_v30, 128 }
0x50dd   :  { %v5137_v33 = vsel %vm1692_vm11, %v5136_v7, 2147483647 }
0x50de   :  { %v5139_v26 = vshra.s32 %v5137_v33, 16  ;;  %v5138_v61 = vand.u32 65535, %v5137_v33 }
0x50e0   :  { %v5141_v34 = vcvt.s32.f32 %v5139_v26  ;;  %v5140_v6 = vcvt.s32.f32 %v5138_v61 }
0x50e2   :  { %5142 = vmin.xlane.f32.xlu0 %v5141_v34 }
0x516b   :  { %v5143_v40 = vpop.xlane.xlu0 %5142 }
0x516c   :  { %vm5144_vm4 = vcmp.eq.f32.partialorder %v5141_v34, %v5143_v40  ;;  %v5149_v23 = vcvt.f32.s32 %v5143_v40 }
0x516d   :  { %v5145_v62 = vsel %vm5144_vm4, %v5140_v6, inf }
0x516e   :  { %5146 = vmin.xlane.f32.xlu1 %v5145_v62  ;;  %v5150_v54 = vshll.u32 %v5149_v23, 16 }
0x51f7   :  { %v5147_v58 = vpop.xlane.xlu1 %5146 }
0x51f8   :  { %v5148_v27 = vcvt.f32.s32 %v5147_v58 }
0x51fa   :  { %v5151_v55 = vadd.s32 %v5150_v54, %v5148_v27 }
0x51fc   :  { %5152 = vst.msk [vmem:[%s8571_s15 + $0x6] sm:$0x1] %vm1713_vm14, %v5151_v55  ;;  %vm5153_vm5 = vcmp.eq.s32.totalorder %v7465_v30, %v5151_v55 }
0x51fd   :  { %v5839_v39 = vsel %vm5153_vm5, 1.0, %v7074_v0 }
0x51fe   :  { %6797 = vmatmul.mubr.msk.f32.vlgmr.msra.gmra.mxu1 %vm1206_vm10, %v5839_v39 }
0x51ff   :  { %6821 = vmatpush3.msra.mxu1 %v8108_v11  ;;  %6828 = vmatprep.mubr.msk.f32.mxu1 %vm7075_vm0, %v7074_v0  ;;  %v7026_v11 = vld [vmem:[%s8564_s8] sm:$0x1] }
0x5200   :  { %6822 = vmatprep.subr.mxu1 %v7074_v0 }
0x5201   :  { %6823 = vmatpush3.msra.mxu1 %v8117_v29 }
0x5202   :  { %6824 = vmatprep.subr.mxu1 %v7074_v0 }
0x5203   :  { %6825 = vmatpush3.msra.mxu1 %v8124_v12 }
0x5204   :  { %6826 = vmatprep.subr.mxu1 %v7074_v0 }
0x5205   :  { %6827 = vmatpush3.msra.mxu1 %v8131_v16 }
0x52be   :  { %v5295_v38 = vpop.f32.mrf.mxu1 }
0x52bf   :  { %v5296_v59 = vadd.f32 %v5295_v38, %v8422_v1 }
0x52c0   :  { %v6798_v60 = vpop.f32.mrf.mxu1 }
0x52c1   :  { %v5299_v28 = vadd.f32 %v7026_v11, %v5296_v59 }
0x52c3   :  { %5307 = vrot.lane.b32.xlu0 %v5299_v28, %s7078_s1  ;;  %v5842_v29 = vmul.f32 -1.442695, %v5299_v28 }
0x52c5   :  { %6983 = vpow2.f32 %v5842_v29 }
0x52d2   :  { %v6984_v8 = vpop.eup %6983 }
0x52d3   :  { %v5303_v52 = vadd.f32 1.0, %v6984_v8 }
0x52d5   :  { %6985 = vrcp.f32 %v5303_v52 }
0x52e2   :  { %v6986_v12 = vpop.eup %6985 }
0x52e3   :  { %v5317_v15 = vsub.f32 1.0, %v6986_v12  ;;  %v5323_v56 = vmul.f32 %v6986_v12, %v8391_v9 }
0x5335   :  { %v5308_v2 = vpop.permute.xlu0 %5307 }
0x5336   :  { %v5310_v63 = vmul.f32 %v6986_v12, %v5308_v2 }
0x5338   :  { %5312 = vrot.lane.b32.xlu1 %v5310_v63, %s7076_s3 }
0x53aa   :  { %v5313_v16 = vpop.permute.xlu1 %5312 }
0x53ab   :  { %v5315_v1 = vadd.f32 %v5313_v16, %v5299_v28 }
0x53ad   :  { %6987 = vtanh.f32 %v5315_v1 }
0x53ba   :  { %v6988_v31 = vpop.eup %6987 }
0x53bb   :  { %5319 = vrot.lane.b32.xlu1 %v6988_v31, %s7077_s4 }
0x542d   :  { %v5320_v21 = vpop.permute.xlu1 %5319 }
0x542e   :  { %v5322_v37 = vmul.f32 %v5320_v21, %v5317_v15 }
0x5430   :  { %v5324_v48 = vadd.f32 %v5323_v56, %v5322_v37 }
0x5432   :  { %5326 = vrot.lane.b32.xlu0 %v5324_v48, %s7077_s4 }
0x54a4   :  { %v5327_v14 = vpop.permute.xlu0 %5326 }
0x54a5   :  { %6802 = vmatmul.mubr.msk.f32.vlgmr.msra.gmra.mxu0 %vm81_vm1, %v5327_v14  ;;  %6829 = vmatmul.mubr.msk.f32.vlgmr.msra.gmra.mxu1 %vm81_vm1, %v5327_v14 }
0x54a6   :  { %6805 = vmatpush3.msk.msra.mxu0 %vm7577_vm6, %v7581_v24  ;;  %6806 = vmatprep.mubr.msk.f32.mxu0 %vm7075_vm0, %v7074_v0 }
0x54a7   :  { %6809 = vmatprep.subr.mxu0 %v7074_v0 }
0x5565   :  { %v5396_v41 = vpop.f32.mrf.mxu0  ;;  %v5624_v9 = vpop.f32.mrf.mxu1 }
0x5566   :  { %v5400_v44 = vsel %vm7619_vm7, %v5396_v41, -1e+30 }
0x5567   :  { %v5401_v42 = vsel %vm1386_vm8, %v5400_v44, -inf  ;;  %v6803_v43 = vpop.f32.mrf.mxu0  ;;  %v6830_v50 = vpop.f32.mrf.mxu1 }
0x5568   :  { %5402 = vmax.xlane.f32.xlu1 %v5401_v42 }
0x55f1   :  { %v5403_v53 = vpop.xlane.xlu1 %5402 }
0x55f2   :  { %v5404_v10 = vsub.f32 %v5400_v44, %v5403_v53 }
0x55f4   :  { %v5405_v47 = vmul.f32 1.442695, %v5404_v10 }
0x55f6   :  { %6989 = vpow2.f32 %v5405_v47 }
0x5603   :  { %v6990_v22 = vpop.eup %6989 }
0x5604   :  { %v5407_v24 = vsel %vm1386_vm8, %v6990_v22, 0.0 }
0x5605   :  { %5408 = vadd.xlane.f32.xlu0 %v5407_v24 }
0x568e   :  { %v5409_v51 = vpop.xlane.xlu0 %5408 }
0x568f   :  { %6991 = vrcp.f32 %v5409_v51 }
0x569c   :  { %v6992_v3 = vpop.eup %6991 }
0x569d   :  { %v5411_v17 = vmul.f32 %v6992_v3, %v6990_v22 }
0x569f   :  { %6807 = vmatmul.mubr.msk.f32.vlgmr.msra.gmra.mxu0 %vm1398_vm9, %v5411_v17 }
0x56a0   :  { %6810 = vmatpush3.msra.mxu0 %v8179_v13  ;;  %6817 = vmatprep.mubr.msk.f32.mxu0 %vm7075_vm0, %v7074_v0 }
0x56a1   :  { %6811 = vmatprep.subr.mxu0 %v7074_v0 }
0x56a2   :  { %6812 = vmatpush3.msra.mxu0 %v8188_v45 }
0x56a3   :  { %6813 = vmatprep.subr.mxu0 %v7074_v0 }
0x56a4   :  { %6814 = vmatpush3.msra.mxu0 %v8195_v46 }
0x56a5   :  { %6815 = vmatprep.subr.mxu0 %v7074_v0 }
0x56a6   :  { %6816 = vmatpush3.msra.mxu0 %v8202_v49 }
0x56a7   :  { %6831 = vmatprep.subr.mxu0 %v7074_v0 }
0x575f   :  { %v5481_v36 = vpop.f32.mrf.mxu0 }
0x5760   :  { %6818 = vmatmul.mubr.msk.f32.vlgmr.msra.gmra.mxu0 %vm81_vm1, %v5481_v36 }
0x5761   :  { %v6808_v13 = vpop.f32.mrf.mxu0  ;;  %6832 = vmatpush3.msra.mxu0 %v8207_v32  ;;  %6839 = vmatprep.mubr.msk.f32.mxu0 %vm7075_vm0, %v7074_v0 }
0x5762   :  { %6833 = vmatprep.subr.mxu0 %v7074_v0 }
0x5763   :  { %6834 = vmatpush3.msra.mxu0 %v8213_v18  ;;  %v5703_v18 = vld [vmem:[%s8570_s14 + $0x7] sm:$0x1]  ;;  %s7079_s14 = smov [#allocation6]  }
0x5764   :  { %6835 = vmatprep.subr.mxu0 %v7074_v0  ;;  %s5734_s4 = sshll.u32 %s7079_s14, 4  ;;  %s5735_s4 = int_to_ptr.vmem [resolvable:$true] %s5734_s4 }
0x5765   :  { %6836 = vmatpush3.msra.mxu0 %v8217_v35  ;;  %s7047_s1 = scalar_lea.vmem %s5735_s4, 128  ;;  %p7052_p0 = scmp.lt.s32.totalorder %s5735_s4, %s5735_s4 }
0x5766   :  { %6837 = vmatprep.subr.mxu0 %v7074_v0  ;;  %p7048_p13 = scmp.ne.s32.totalorder %s5735_s4, %s7047_s1  ;;  %p7053_p1 = scmp.lt.s32.totalorder %s7047_s1, %s7047_s1 }
0x5767   :  { %6838 = vmatpush3.msra.mxu0 %v8221_v19 }
0x5768   :  { %p7054_p2 = por %p7053_p1, %p7052_p0 }
0x576a   :  { %p7055_p3 = pnand %p7054_p2, %p7048_p13 }
0x5820   :  { %v5554_v45 = vpop.f32.mrf.mxu0 }
0x5821   :  { %v5625_v46 = vadd.f32 %v5624_v9, %v5554_v45 }
0x5822   :  { %v6819_v49 = vpop.f32.mrf.mxu0 }
0x5823   :  { %v5628_v32 = vadd.f32 %v8228_v4, %v5625_v46 }
0x5825   :  { %6993 = vtanh.f32 %v5628_v32 }
0x5832   :  { %v6994_v20 = vpop.eup %6993 }
0x5833   :  { %6840 = vmatmul.mubr.msk.f32.vlgmr.msra.gmra.mxu0 %vm81_vm1, %v6994_v20 }
0x58f3   :  { %v5699_v5 = vpop.f32.mrf.mxu0 }
0x58f4   :  { %v5700_v35 = vadd.f32 %v8256_v57, %v5699_v5 }
0x58f5   :  { %v6841_v25 = vpop.f32.mrf.mxu0 }
0x58f6   :  { %v5704_v0 = vadd.f32 %v5703_v18, %v5700_v35 }
0x58f8   :  { %v5705_v19 = vsel %vm1692_vm11, %v5704_v0, -inf }
0x58f9   :  { %5706 = vmax.xlane.f32.xlu0 %v5705_v19 }
0x5982   :  { %v5707_v7 = vpop.xlane.xlu0 %5706 }
0x5983   :  { %vm5708_vm0 = vcmp.ge.f32.partialorder %v5704_v0, %v5707_v7 }
0x5984   :  { %v5709_v4 = vsel %vm5708_vm0, %v7465_v30, 128 }
0x5985   :  { %v5710_v33 = vsel %vm1692_vm11, %v5709_v4, 2147483647 }
0x5986   :  { %v5712_v26 = vshra.s32 %v5710_v33, 16  ;;  %v5711_v61 = vand.u32 65535, %v5710_v33 }
0x5988   :  { %v5714_v34 = vcvt.s32.f32 %v5712_v26  ;;  %v5713_v6 = vcvt.s32.f32 %v5711_v61 }
0x598a   :  { %5715 = vmin.xlane.f32.xlu1 %v5714_v34 }
0x5a13   :  { %v5716_v40 = vpop.xlane.xlu1 %5715 }
0x5a14   :  { %vm5717_vm1 = vcmp.eq.f32.partialorder %v5714_v34, %v5716_v40 }
0x5a15   :  { %v5718_v62 = vsel %vm5717_vm1, %v5713_v6, inf }
0x5a16   :  { %5719 = vmin.xlane.f32.xlu0 %v5718_v62 }
0x5a17   :  { %7058 = shalt.err (!%p7055_p3)
}
0x5a18   :  { %5737 = dma.vmem_to_hbm [thread:$0]  %s5735_s4, 128, %s8572_s16, [#allocation5]   ;;  %v5722_v30 = vcvt.f32.s32 %v5716_v40 }
0x5a1a   :  { %v5723_v23 = vshll.u32 %v5722_v30, 16 }
0x5a9f   :  { %v5720_v57 = vpop.xlane.xlu0 %5719 }
0x5aa0   :  { %v5721_v58 = vcvt.f32.s32 %v5720_v57 }
0x5aa2   :  { %v5724_v54 = vadd.s32 %v5723_v23, %v5721_v58 }
0x5aa4   :  { %5725 = vst.msk [vmem:[%s8571_s15 + $0x7] sm:$0x1] %vm1713_vm14, %v5724_v54 }
0x5aa5   :  { %7069 = dma.done.wait [#allocation5], 128  }
0x5aa6   :  { %7070 = vsyncadd [#allocation5], 4294967168 }
0x5aa7   :  { %5743 = vsyncpa [#allocation4], 1 }
0x5aa8   :  { %5744 = vsyncpa [#allocation5], 1 }

</bundles_post_ra>
